<compile_context>
chip_gen: v6e
topology: v6e:2x2x1
jax: 0.10.0
libtpu: 0.0.40
codegen_flags: <defaults>
</compile_context>

<pallas_src>
import functools

import jax
import jax.numpy as jnp
from jax import lax
from jax.experimental import pallas as pl
from jax.experimental.pallas import tpu as pltpu

BF16 = jnp.bfloat16


def _log_softmax(x):
    m = jnp.max(x, axis=-1, keepdims=True)
    return x - (m + jnp.log(jnp.sum(jnp.exp(x - m), axis=-1, keepdims=True)))


def _sigmoid(x):
    # One EUP op (tanh) instead of exp + divide.
    return 0.5 * jnp.tanh(0.5 * x) + 0.5


# ----------------------------------------------------------------------------
# Fused kernel: input projection -> fused 2-LSTM recurrence -> merged heads
# ----------------------------------------------------------------------------
def _fused_kernel(xm_ref, xf_ref, wim_ref, wif_ref, whm_ref, whf_ref,
                  bm_ref, bfb_ref, h0m_ref, h0f_ref, c0m_ref, c0f_ref,
                  whd_ref, bhd_ref, out_ref, xproj_sc, hs_sc):
    TBP = xm_ref.shape[0]
    BP, H = h0m_ref.shape                   # BP == 8 (sublane-padded batch)
    T = TBP // BP
    G4 = 4 * H                              # per-LSTM gate width [i|f|g|o]

    # (1) Hoisted input projections for all timesteps: one bf16 MXU pass per
    #     LSTM (no zero blocks), f32 accumulation + combined bias.
    xproj_sc[:, :G4] = (
        jnp.dot(xm_ref[...].astype(BF16), wim_ref[...],
                preferred_element_type=jnp.float32) + bm_ref[...])
    xproj_sc[:, G4:] = (
        jnp.dot(xf_ref[...].astype(BF16), wif_ref[...],
                preferred_element_type=jnp.float32) + bfb_ref[...])

    # Loop-invariant recurrent weights (bf16, no block-diagonal zero half).
    whm = whm_ref[...]                      # (H, 4H)
    whf = whf_ref[...]                      # (H, 4H)

    def lstm_update(g, c):                  # all f32, H = 128 -> lane aligned
        i = _sigmoid(g[:, 0 * H:1 * H])
        f = _sigmoid(g[:, 1 * H:2 * H])
        gg = jnp.tanh(g[:, 2 * H:3 * H])
        o = _sigmoid(g[:, 3 * H:4 * H])
        c_new = f * c + i * gg
        return o * jnp.tanh(c_new), c_new

    # (2) Fused recurrence: two independent K=H bf16 matmuls per step; per-step
    #     scratch slabs are full (8,128) tiles (BP == 8, provably aligned).
    def step(t, carry):
        hm, hf, cm, cf = carry              # hm/hf bf16 (BP,H), cm/cf f32 (BP,H)
        r = pl.multiple_of(t * BP, BP)
        xp = xproj_sc[pl.ds(r, BP), :]      # (BP, 8H) f32
        gm = xp[:, :G4] + jnp.dot(hm, whm, preferred_element_type=jnp.float32)
        gf = xp[:, G4:] + jnp.dot(hf, whf, preferred_element_type=jnp.float32)
        hm_new, cm_new = lstm_update(gm, cm)
        hf_new, cf_new = lstm_update(gf, cf)
        hs_sc[pl.ds(r, BP), :] = jnp.concatenate([hm_new, hf_new], axis=-1)
        return (hm_new.astype(BF16), hf_new.astype(BF16), cm_new, cf_new)

    unroll = T if T <= 8 else 8             # partial unroll for long sequences
    lax.fori_loop(
        0, T, step,
        (h0m_ref[...].astype(BF16), h0f_ref[...].astype(BF16),
         c0m_ref[...], c0f_ref[...]),
        unroll=unroll)

    # (3) Merged prediction heads: one (TBP,2H)x(2H,2C) bf16 matmul, per-head
    #     log_softmax (f32), single output store.
    hs_bf = hs_sc[...].astype(BF16)
    logits = (jnp.dot(hs_bf, whd_ref[...], preferred_element_type=jnp.float32)
              + bhd_ref[...])               # (TBP, 2C) = [mfcc head | total head]
    C = logits.shape[1] // 2
    out_ref[...] = jnp.concatenate(
        [_log_softmax(logits[:, :C]), _log_softmax(logits[:, C:])], axis=-1)


def _fused_call(x_m, x_f, packed, h0m, h0f, c0m, c0f):
    TBP = x_m.shape[0]
    H = h0m.shape[1]
    C2 = packed["w_heads"].shape[1]
    vspec = pl.BlockSpec(memory_space=pltpu.MemorySpace.VMEM)
    return pl.pallas_call(
        _fused_kernel,
        out_shape=jax.ShapeDtypeStruct((TBP, C2), jnp.float32),
        in_specs=[vspec] * 14,
        out_specs=vspec,
        scratch_shapes=[pltpu.VMEM((TBP, 8 * H), jnp.float32),   # x-projection
                        pltpu.VMEM((TBP, 2 * H), jnp.float32)],  # hidden states
    )(x_m, x_f,
      packed["wih_m"], packed["wih_f"], packed["whh_m"], packed["whh_f"],
      packed["b_m"], packed["b_f"], h0m, h0f, c0m, c0f,
      packed["w_heads"], packed["b_heads"])


# ----------------------------------------------------------------------------
# One-time weight packing (hoisted out of the per-forward path)
# ----------------------------------------------------------------------------
def pack_params(params):
    H = params["whh_m"].shape[0]
    C = params["w_pm"].shape[1]
    dt = params["w_pm"].dtype
    # Merged heads: cols [0:C] -> predict_mfcc (acts on h_mfcc only),
    #               cols [C:2C] -> predict_total (acts on [h_mfcc | h_fbank]).
    w_heads = jnp.concatenate(
        [jnp.concatenate([params["w_pm"], jnp.zeros((H, C), dt)], axis=0),
         jnp.concatenate([params["w_pt1"], params["w_pt2"]], axis=0)], axis=1)
    b_heads = jnp.concatenate([params["b_pm"], params["b_pt"]], axis=1)
    return {
        "wih_m": params["wih_m"].astype(BF16),
        "wih_f": params["wih_f"].astype(BF16),
        "whh_m": params["whh_m"].astype(BF16),
        "whh_f": params["whh_f"].astype(BF16),
        "b_m": params["b_m"].astype(jnp.float32),
        "b_f": params["b_f"].astype(jnp.float32),
        "w_heads": w_heads.astype(BF16),
        "b_heads": b_heads.astype(jnp.float32),
    }


# ----------------------------------------------------------------------------
# Module-level wrapper (mirrors MultiInputRNN.forward)
# ----------------------------------------------------------------------------
def multi_input_rnn_forward(packed, sequence, h0c0_mfcc, h0c0_fbank,
                            mfcc_features, fbank_features):
    T, B, _ = sequence.shape
    C = packed["w_heads"].shape[1] // 2
    BP = -(-B // 8) * 8                     # pad batch to f32 sublane count (8)
    pad_b = BP - B

    seq_p = jnp.pad(sequence, ((0, 0), (0, pad_b), (0, 0)))
    x_m = seq_p[..., :mfcc_features].reshape(T * BP, mfcc_features)
    x_f = seq_p[..., mfcc_features:mfcc_features + fbank_features].reshape(
        T * BP, fbank_features)

    def pad_state(s):
        return jnp.pad(s, ((0, pad_b), (0, 0)))

    h0m, c0m = pad_state(h0c0_mfcc[0]), pad_state(h0c0_mfcc[1])
    h0f, c0f = pad_state(h0c0_fbank[0]), pad_state(h0c0_fbank[1])

    out = _fused_call(x_m, x_f, packed, h0m, h0f, c0m, c0f)
    out = out.reshape(T, BP, 2 * C)[:, :B]
    return out[..., :C], out[..., C:]


# ----------------------------------------------------------------------------
# Pure-JAX references (numerical validation)
# ----------------------------------------------------------------------------
def _ref_lstm_f32(x, w_ih, w_hh, bias, h0, c0):
    H = h0.shape[1]

    def step(carry, x_t):
        h, c = carry
        g = x_t @ w_ih + h @ w_hh + bias
        i = jax.nn.sigmoid(g[:, :H]); f = jax.nn.sigmoid(g[:, H:2 * H])
        gg = jnp.tanh(g[:, 2 * H:3 * H]); o = jax.nn.sigmoid(g[:, 3 * H:])
        c = f * c + i * gg
        h = o * jnp.tanh(c)
        return (h, c), h

    _, hs = lax.scan(step, (h0, c0), x)
    return hs


def _ref_forward_f32(params, sequence, h0c0_m, h0c0_f, mfcc, fbank):
    seq_m = sequence[..., :mfcc]
    seq_f = sequence[..., mfcc:mfcc + fbank]
    om = _ref_lstm_f32(seq_m, params["wih_m"], params["whh_m"], params["b_m"],
                       h0c0_m[0], h0c0_m[1])
    of = _ref_lstm_f32(seq_f, params["wih_f"], params["whh_f"], params["b_f"],
                       h0c0_f[0], h0c0_f[1])
    lm = om @ params["w_pm"] + params["b_pm"]
    lt = om @ params["w_pt1"] + of @ params["w_pt2"] + params["b_pt"]
    return jax.nn.log_softmax(lm, axis=-1), jax.nn.log_softmax(lt, axis=-1)


def _ref_lstm_bf16(x, w_ih_bf, w_hh_bf, bias, h0, c0):
    """Precision-matched reference (bf16 MXU operands, f32 accumulation)."""
    H = h0.shape[1]
    xproj = jnp.dot(x.astype(BF16), w_ih_bf,
                    preferred_element_type=jnp.float32) + bias

    def step(carry, xp_t):
        h_bf, c = carry
        g = xp_t + jnp.dot(h_bf, w_hh_bf, preferred_element_type=jnp.float32)
        i = _sigmoid(g[:, :H]); f = _sigmoid(g[:, H:2 * H])
        gg = jnp.tanh(g[:, 2 * H:3 * H]); o = _sigmoid(g[:, 3 * H:])
        c = f * c + i * gg
        h = o * jnp.tanh(c)
        return (h.astype(BF16), c), h.astype(BF16)

    _, hs = lax.scan(step, (h0.astype(BF16), c0), xproj)
    return hs


def _ref_forward_matched(packed, sequence, h0c0_m, h0c0_f, mfcc, fbank):
    seq_m = sequence[..., :mfcc]
    seq_f = sequence[..., mfcc:mfcc + fbank]
    hm = _ref_lstm_bf16(seq_m, packed["wih_m"], packed["whh_m"], packed["b_m"],
                        h0c0_m[0], h0c0_m[1])
    hf = _ref_lstm_bf16(seq_f, packed["wih_f"], packed["whh_f"], packed["b_f"],
                        h0c0_f[0], h0c0_f[1])
    hs = jnp.concatenate([hm, hf], axis=-1)
    logits = jnp.dot(hs, packed["w_heads"],
                     preferred_element_type=jnp.float32) + packed["b_heads"]
    C = logits.shape[-1] // 2
    return _log_softmax(logits[..., :C]), _log_softmax(logits[..., C:])


# ----------------------------------------------------------------------------
# Main
# ----------------------------------------------------------------------------
if __name__ == "__main__":
    MFCC = 13
    FBANK = 23
    HIDDEN = 128          # module default; keeps all gate slices lane-aligned
    T, B = 8, 2

    key = jax.random.PRNGKey(0)
    keys = jax.random.split(key, 16)
    scale = 1.0 / jnp.sqrt(HIDDEN)

    def unif(k, shape):
        return jax.random.uniform(k, shape, jnp.float32, -scale, scale)

    params = {
        # lstm_mfcc: W_ih as (F, 4H), W_hh as (H, 4H), combined bias (1, 4H)
        "wih_m": unif(keys[0], (MFCC, 4 * HIDDEN)),
        "whh_m": unif(keys[1], (HIDDEN, 4 * HIDDEN)),
        "b_m": unif(keys[2], (1, 4 * HIDDEN)) + unif(keys[3], (1, 4 * HIDDEN)),
        # lstm_fbank
        "wih_f": unif(keys[4], (FBANK, 4 * HIDDEN)),
        "whh_f": unif(keys[5], (HIDDEN, 4 * HIDDEN)),
        "b_f": unif(keys[6], (1, 4 * HIDDEN)) + unif(keys[7], (1, 4 * HIDDEN)),
        # predict_mfcc: Linear(H, 2)
        "w_pm": unif(keys[8], (HIDDEN, 2)),
        "b_pm": unif(keys[9], (1, 2)),
        # predict_total: Linear(2H, 2), split into the two H-sized halves
        "w_pt1": unif(keys[10], (HIDDEN, 2)),
        "w_pt2": unif(keys[11], (HIDDEN, 2)),
        "b_pt": unif(keys[12], (1, 2)),
    }

    # Deterministic stand-ins for the torch.randn initial hidden states.
    h0_m = jax.random.normal(keys[13], (B, HIDDEN), jnp.float32)
    c0_m = jax.random.normal(keys[14], (B, HIDDEN), jnp.float32)
    h0_f = jax.random.normal(keys[15], (B, HIDDEN), jnp.float32)
    c0_f = jax.random.normal(jax.random.fold_in(key, 99), (B, HIDDEN), jnp.float32)

    sequence = jax.random.normal(jax.random.fold_in(key, 7),
                                 (T, B, MFCC + FBANK), jnp.float32)

    packed = pack_params(params)   # one-time weight packing / bf16 cast

    fwd = jax.jit(functools.partial(multi_input_rnn_forward,
                                    mfcc_features=MFCC, fbank_features=FBANK))
    pred_mfcc, pred_total = fwd(packed, sequence, (h0_m, c0_m), (h0_f, c0_f))
    jax.block_until_ready((pred_mfcc, pred_total))
    assert pred_mfcc.shape == (T, B, 2) and pred_total.shape == (T, B, 2)

    # (a) precision-matched reference (same bf16-operand / f32-accum scheme)
    rm_m, rm_t = _ref_forward_matched(packed, sequence, (h0_m, c0_m),
                                      (h0_f, c0_f), MFCC, FBANK)
    assert jnp.allclose(pred_mfcc, rm_m, atol=5e-3, rtol=5e-3)
    assert jnp.allclose(pred_total, rm_t, atol=5e-3, rtol=5e-3)

    # (b) pure-f32 reference (PyTorch semantics); looser tolerance because the
    #     kernel uses bf16 MXU operands with f32 accumulation.
    rf_m, rf_t = _ref_forward_f32(params, sequence, (h0_m, c0_m),
                                  (h0_f, c0_f), MFCC, FBANK)
    assert jnp.allclose(pred_mfcc, rf_m, atol=3e-2, rtol=3e-2)
    assert jnp.allclose(pred_total, rf_t, atol=3e-2, rtol=3e-2)

    print("KERNEL_OK")
</pallas_src>

<mosaic_0001>
module attributes {stable_mosaic.version = 11 : i64} {
  func.func @_fused_kernel(%arg0: memref<64x13xf32, #tpu.memory_space<vmem>>, %arg1: memref<64x23xf32, #tpu.memory_space<vmem>>, %arg2: memref<13x512xbf16, #tpu.memory_space<vmem>>, %arg3: memref<23x512xbf16, #tpu.memory_space<vmem>>, %arg4: memref<128x512xbf16, #tpu.memory_space<vmem>>, %arg5: memref<128x512xbf16, #tpu.memory_space<vmem>>, %arg6: memref<1x512xf32, #tpu.memory_space<vmem>>, %arg7: memref<1x512xf32, #tpu.memory_space<vmem>>, %arg8: memref<8x128xf32, #tpu.memory_space<vmem>>, %arg9: memref<8x128xf32, #tpu.memory_space<vmem>>, %arg10: memref<8x128xf32, #tpu.memory_space<vmem>>, %arg11: memref<8x128xf32, #tpu.memory_space<vmem>>, %arg12: memref<256x4xbf16, #tpu.memory_space<vmem>>, %arg13: memref<1x4xf32, #tpu.memory_space<vmem>>, %arg14: memref<64x4xf32, #tpu.memory_space<vmem>>, %arg15: memref<64x1024xf32, #tpu.memory_space<vmem>>, %arg16: memref<64x256xf32, #tpu.memory_space<vmem>>) attributes {dimension_semantics = [], scalar_prefetch = 0 : i64, scratch_operands = 2 : i64, tpu.core_type = #tpu.core_type<tc>} {
    %c0 = arith.constant 0 : index
    %c0_0 = arith.constant 0 : index
    %0 = vector.load %arg0[%c0, %c0_0] : memref<64x13xf32, #tpu.memory_space<vmem>>, vector<64x13xf32>
    %1 = arith.truncf %0 : vector<64x13xf32> to vector<64x13xbf16>
    %c0_1 = arith.constant 0 : index
    %c0_2 = arith.constant 0 : index
    %2 = vector.load %arg2[%c0_1, %c0_2] : memref<13x512xbf16, #tpu.memory_space<vmem>>, vector<13x512xbf16>
    %cst = arith.constant dense<0.000000e+00> : vector<64x512xf32>
    %3 = tpu.matmul %1, %2, %cst {dimension_numbers = #tpu.dot_dimension_numbers<[1], [0], [0], [1], [0, 0, 1, 1], [], []>} : vector<64x13xbf16>, vector<13x512xbf16>, vector<64x512xf32> -> vector<64x512xf32>
    %c0_3 = arith.constant 0 : index
    %c0_4 = arith.constant 0 : index
    %4 = vector.load %arg6[%c0_3, %c0_4] : memref<1x512xf32, #tpu.memory_space<vmem>>, vector<1x512xf32>
    %5 = vector.broadcast %4 : vector<1x512xf32> to vector<64x512xf32>
    %6 = arith.addf %3, %5 : vector<64x512xf32>
    %c0_5 = arith.constant 0 : index
    %c0_6 = arith.constant 0 : index
    %7 = vector.load %arg15[%c0_5, %c0_6] : memref<64x1024xf32, #tpu.memory_space<vmem>>, vector<64x512xf32>
    tpu.vector_store %arg15[%c0_5, %c0_6], %6 {strides = array<i32>} : memref<64x1024xf32, #tpu.memory_space<vmem>>, vector<64x512xf32>,
    %c0_7 = arith.constant 0 : index
    %c0_8 = arith.constant 0 : index
    %8 = vector.load %arg1[%c0_7, %c0_8] : memref<64x23xf32, #tpu.memory_space<vmem>>, vector<64x23xf32>
    %9 = arith.truncf %8 : vector<64x23xf32> to vector<64x23xbf16>
    %c0_9 = arith.constant 0 : index
    %c0_10 = arith.constant 0 : index
    %10 = vector.load %arg3[%c0_9, %c0_10] : memref<23x512xbf16, #tpu.memory_space<vmem>>, vector<23x512xbf16>
    %cst_11 = arith.constant dense<0.000000e+00> : vector<64x512xf32>
    %11 = tpu.matmul %9, %10, %cst_11 {dimension_numbers = #tpu.dot_dimension_numbers<[1], [0], [0], [1], [0, 0, 1, 1], [], []>} : vector<64x23xbf16>, vector<23x512xbf16>, vector<64x512xf32> -> vector<64x512xf32>
    %c0_12 = arith.constant 0 : index
    %c0_13 = arith.constant 0 : index
    %12 = vector.load %arg7[%c0_12, %c0_13] : memref<1x512xf32, #tpu.memory_space<vmem>>, vector<1x512xf32>
    %13 = vector.broadcast %12 : vector<1x512xf32> to vector<64x512xf32>
    %14 = arith.addf %11, %13 : vector<64x512xf32>
    %c0_14 = arith.constant 0 : index
    %c512 = arith.constant 512 : index
    %15 = vector.load %arg15[%c0_14, %c512] : memref<64x1024xf32, #tpu.memory_space<vmem>>, vector<64x512xf32>
    tpu.vector_store %arg15[%c0_14, %c512], %14 {strides = array<i32>} : memref<64x1024xf32, #tpu.memory_space<vmem>>, vector<64x512xf32>,
    %c0_15 = arith.constant 0 : index
    %c0_16 = arith.constant 0 : index
    %16 = vector.load %arg4[%c0_15, %c0_16] : memref<128x512xbf16, #tpu.memory_space<vmem>>, vector<128x512xbf16>
    %c0_17 = arith.constant 0 : index
    %c0_18 = arith.constant 0 : index
    %17 = vector.load %arg5[%c0_17, %c0_18] : memref<128x512xbf16, #tpu.memory_space<vmem>>, vector<128x512xbf16>
    %c0_19 = arith.constant 0 : index
    %c0_20 = arith.constant 0 : index
    %18 = vector.load %arg8[%c0_19, %c0_20] : memref<8x128xf32, #tpu.memory_space<vmem>>, vector<8x128xf32>
    %19 = arith.truncf %18 : vector<8x128xf32> to vector<8x128xbf16>
    %c0_21 = arith.constant 0 : index
    %c0_22 = arith.constant 0 : index
    %20 = vector.load %arg9[%c0_21, %c0_22] : memref<8x128xf32, #tpu.memory_space<vmem>>, vector<8x128xf32>
    %21 = arith.truncf %20 : vector<8x128xf32> to vector<8x128xbf16>
    %c0_23 = arith.constant 0 : index
    %c0_24 = arith.constant 0 : index
    %22 = vector.load %arg10[%c0_23, %c0_24] : memref<8x128xf32, #tpu.memory_space<vmem>>, vector<8x128xf32>
    %c0_25 = arith.constant 0 : index
    %c0_26 = arith.constant 0 : index
    %23 = vector.load %arg11[%c0_25, %c0_26] : memref<8x128xf32, #tpu.memory_space<vmem>>, vector<8x128xf32>
    %c0_i32 = arith.constant 0 : i32
    %c8_i32 = arith.constant 8 : i32
    %24 = arith.muli %c0_i32, %c8_i32 : i32
    %25 = tpu.assume_multiple %24, 8 : i32
    %26 = arith.index_cast %25 : i32 to index
    %c0_27 = arith.constant 0 : index
    %27 = vector.load %arg15[%26, %c0_27] : memref<64x1024xf32, #tpu.memory_space<vmem>>, vector<8x1024xf32>
    %28 = vector.extract_strided_slice %27 {offsets = [0, 0], sizes = [8, 512], strides = [1, 1]} : vector<8x1024xf32> to vector<8x512xf32>
    %cst_28 = arith.constant dense<0.000000e+00> : vector<8x512xf32>
    %29 = tpu.matmul %19, %16, %cst_28 {dimension_numbers = #tpu.dot_dimension_numbers<[1], [0], [0], [1], [0, 0, 1, 1], [], []>} : vector<8x128xbf16>, vector<128x512xbf16>, vector<8x512xf32> -> vector<8x512xf32>
    %30 = arith.addf %28, %29 : vector<8x512xf32>
    %31 = vector.extract_strided_slice %27 {offsets = [0, 512], sizes = [8, 512], strides = [1, 1]} : vector<8x1024xf32> to vector<8x512xf32>
    %cst_29 = arith.constant dense<0.000000e+00> : vector<8x512xf32>
    %32 = tpu.matmul %21, %17, %cst_29 {dimension_numbers = #tpu.dot_dimension_numbers<[1], [0], [0], [1], [0, 0, 1, 1], [], []>} : vector<8x128xbf16>, vector<128x512xbf16>, vector<8x512xf32> -> vector<8x512xf32>
    %33 = arith.addf %31, %32 : vector<8x512xf32>
    %34 = vector.extract_strided_slice %30 {offsets = [0, 0], sizes = [8, 128], strides = [1, 1]} : vector<8x512xf32> to vector<8x128xf32>
    %cst_30 = arith.constant 5.000000e-01 : f32
    %35 = vector.broadcast %cst_30 : f32 to vector<8x128xf32>
    %36 = arith.mulf %35, %34 : vector<8x128xf32>
    %37 = math.tanh %36 : vector<8x128xf32>
    %cst_31 = arith.constant 5.000000e-01 : f32
    %38 = vector.broadcast %cst_31 : f32 to vector<8x128xf32>
    %39 = arith.mulf %38, %37 : vector<8x128xf32>
    %cst_32 = arith.constant 5.000000e-01 : f32
    %40 = vector.broadcast %cst_32 : f32 to vector<8x128xf32>
    %41 = arith.addf %39, %40 : vector<8x128xf32>
    %42 = vector.extract_strided_slice %30 {offsets = [0, 128], sizes = [8, 128], strides = [1, 1]} : vector<8x512xf32> to vector<8x128xf32>
    %cst_33 = arith.constant 5.000000e-01 : f32
    %43 = vector.broadcast %cst_33 : f32 to vector<8x128xf32>
    %44 = arith.mulf %43, %42 : vector<8x128xf32>
    %45 = math.tanh %44 : vector<8x128xf32>
    %cst_34 = arith.constant 5.000000e-01 : f32
    %46 = vector.broadcast %cst_34 : f32 to vector<8x128xf32>
    %47 = arith.mulf %46, %45 : vector<8x128xf32>
    %cst_35 = arith.constant 5.000000e-01 : f32
    %48 = vector.broadcast %cst_35 : f32 to vector<8x128xf32>
    %49 = arith.addf %47, %48 : vector<8x128xf32>
    %50 = vector.extract_strided_slice %30 {offsets = [0, 256], sizes = [8, 128], strides = [1, 1]} : vector<8x512xf32> to vector<8x128xf32>
    %51 = math.tanh %50 : vector<8x128xf32>
    %52 = vector.extract_strided_slice %30 {offsets = [0, 384], sizes = [8, 128], strides = [1, 1]} : vector<8x512xf32> to vector<8x128xf32>
    %cst_36 = arith.constant 5.000000e-01 : f32
    %53 = vector.broadcast %cst_36 : f32 to vector<8x128xf32>
    %54 = arith.mulf %53, %52 : vector<8x128xf32>
    %55 = math.tanh %54 : vector<8x128xf32>
    %cst_37 = arith.constant 5.000000e-01 : f32
    %56 = vector.broadcast %cst_37 : f32 to vector<8x128xf32>
    %57 = arith.mulf %56, %55 : vector<8x128xf32>
    %cst_38 = arith.constant 5.000000e-01 : f32
    %58 = vector.broadcast %cst_38 : f32 to vector<8x128xf32>
    %59 = arith.addf %57, %58 : vector<8x128xf32>
    %60 = arith.mulf %49, %22 : vector<8x128xf32>
    %61 = arith.mulf %41, %51 : vector<8x128xf32>
    %62 = arith.addf %60, %61 : vector<8x128xf32>
    %63 = math.tanh %62 : vector<8x128xf32>
    %64 = arith.mulf %59, %63 : vector<8x128xf32>
    %65 = vector.extract_strided_slice %33 {offsets = [0, 0], sizes = [8, 128], strides = [1, 1]} : vector<8x512xf32> to vector<8x128xf32>
    %cst_39 = arith.constant 5.000000e-01 : f32
    %66 = vector.broadcast %cst_39 : f32 to vector<8x128xf32>
    %67 = arith.mulf %66, %65 : vector<8x128xf32>
    %68 = math.tanh %67 : vector<8x128xf32>
    %cst_40 = arith.constant 5.000000e-01 : f32
    %69 = vector.broadcast %cst_40 : f32 to vector<8x128xf32>
    %70 = arith.mulf %69, %68 : vector<8x128xf32>
    %cst_41 = arith.constant 5.000000e-01 : f32
    %71 = vector.broadcast %cst_41 : f32 to vector<8x128xf32>
    %72 = arith.addf %70, %71 : vector<8x128xf32>
    %73 = vector.extract_strided_slice %33 {offsets = [0, 128], sizes = [8, 128], strides = [1, 1]} : vector<8x512xf32> to vector<8x128xf32>
    %cst_42 = arith.constant 5.000000e-01 : f32
    %74 = vector.broadcast %cst_42 : f32 to vector<8x128xf32>
    %75 = arith.mulf %74, %73 : vector<8x128xf32>
    %76 = math.tanh %75 : vector<8x128xf32>
    %cst_43 = arith.constant 5.000000e-01 : f32
    %77 = vector.broadcast %cst_43 : f32 to vector<8x128xf32>
    %78 = arith.mulf %77, %76 : vector<8x128xf32>
    %cst_44 = arith.constant 5.000000e-01 : f32
    %79 = vector.broadcast %cst_44 : f32 to vector<8x128xf32>
    %80 = arith.addf %78, %79 : vector<8x128xf32>
    %81 = vector.extract_strided_slice %33 {offsets = [0, 256], sizes = [8, 128], strides = [1, 1]} : vector<8x512xf32> to vector<8x128xf32>
    %82 = math.tanh %81 : vector<8x128xf32>
    %83 = vector.extract_strided_slice %33 {offsets = [0, 384], sizes = [8, 128], strides = [1, 1]} : vector<8x512xf32> to vector<8x128xf32>
    %cst_45 = arith.constant 5.000000e-01 : f32
    %84 = vector.broadcast %cst_45 : f32 to vector<8x128xf32>
    %85 = arith.mulf %84, %83 : vector<8x128xf32>
    %86 = math.tanh %85 : vector<8x128xf32>
    %cst_46 = arith.constant 5.000000e-01 : f32
    %87 = vector.broadcast %cst_46 : f32 to vector<8x128xf32>
    %88 = arith.mulf %87, %86 : vector<8x128xf32>
    %cst_47 = arith.constant 5.000000e-01 : f32
    %89 = vector.broadcast %cst_47 : f32 to vector<8x128xf32>
    %90 = arith.addf %88, %89 : vector<8x128xf32>
    %91 = arith.mulf %80, %23 : vector<8x128xf32>
    %92 = arith.mulf %72, %82 : vector<8x128xf32>
    %93 = arith.addf %91, %92 : vector<8x128xf32>
    %94 = math.tanh %93 : vector<8x128xf32>
    %95 = arith.mulf %90, %94 : vector<8x128xf32>
    %96 = tpu.concatenate %64, %95 in 1 : vector<8x128xf32>, vector<8x128xf32> -> vector<8x256xf32>
    %97 = arith.index_cast %25 : i32 to index
    %c0_48 = arith.constant 0 : index
    %98 = vector.load %arg16[%97, %c0_48] : memref<64x256xf32, #tpu.memory_space<vmem>>, vector<8x256xf32>
    tpu.vector_store %arg16[%97, %c0_48], %96 {strides = array<i32>} : memref<64x256xf32, #tpu.memory_space<vmem>>, vector<8x256xf32>,
    %99 = arith.truncf %64 : vector<8x128xf32> to vector<8x128xbf16>
    %100 = arith.truncf %95 : vector<8x128xf32> to vector<8x128xbf16>
    %c1_i32 = arith.constant 1 : i32
    %c8_i32_49 = arith.constant 8 : i32
    %101 = arith.muli %c1_i32, %c8_i32_49 : i32
    %102 = tpu.assume_multiple %101, 8 : i32
    %103 = arith.index_cast %102 : i32 to index
    %c0_50 = arith.constant 0 : index
    %104 = vector.load %arg15[%103, %c0_50] : memref<64x1024xf32, #tpu.memory_space<vmem>>, vector<8x1024xf32>
    %105 = vector.extract_strided_slice %104 {offsets = [0, 0], sizes = [8, 512], strides = [1, 1]} : vector<8x1024xf32> to vector<8x512xf32>
    %cst_51 = arith.constant dense<0.000000e+00> : vector<8x512xf32>
    %106 = tpu.matmul %99, %16, %cst_51 {dimension_numbers = #tpu.dot_dimension_numbers<[1], [0], [0], [1], [0, 0, 1, 1], [], []>} : vector<8x128xbf16>, vector<128x512xbf16>, vector<8x512xf32> -> vector<8x512xf32>
    %107 = arith.addf %105, %106 : vector<8x512xf32>
    %108 = vector.extract_strided_slice %104 {offsets = [0, 512], sizes = [8, 512], strides = [1, 1]} : vector<8x1024xf32> to vector<8x512xf32>
    %cst_52 = arith.constant dense<0.000000e+00> : vector<8x512xf32>
    %109 = tpu.matmul %100, %17, %cst_52 {dimension_numbers = #tpu.dot_dimension_numbers<[1], [0], [0], [1], [0, 0, 1, 1], [], []>} : vector<8x128xbf16>, vector<128x512xbf16>, vector<8x512xf32> -> vector<8x512xf32>
    %110 = arith.addf %108, %109 : vector<8x512xf32>
    %111 = vector.extract_strided_slice %107 {offsets = [0, 0], sizes = [8, 128], strides = [1, 1]} : vector<8x512xf32> to vector<8x128xf32>
    %cst_53 = arith.constant 5.000000e-01 : f32
    %112 = vector.broadcast %cst_53 : f32 to vector<8x128xf32>
    %113 = arith.mulf %112, %111 : vector<8x128xf32>
    %114 = math.tanh %113 : vector<8x128xf32>
    %cst_54 = arith.constant 5.000000e-01 : f32
    %115 = vector.broadcast %cst_54 : f32 to vector<8x128xf32>
    %116 = arith.mulf %115, %114 : vector<8x128xf32>
    %cst_55 = arith.constant 5.000000e-01 : f32
    %117 = vector.broadcast %cst_55 : f32 to vector<8x128xf32>
    %118 = arith.addf %116, %117 : vector<8x128xf32>
    %119 = vector.extract_strided_slice %107 {offsets = [0, 128], sizes = [8, 128], strides = [1, 1]} : vector<8x512xf32> to vector<8x128xf32>
    %cst_56 = arith.constant 5.000000e-01 : f32
    %120 = vector.broadcast %cst_56 : f32 to vector<8x128xf32>
    %121 = arith.mulf %120, %119 : vector<8x128xf32>
    %122 = math.tanh %121 : vector<8x128xf32>
    %cst_57 = arith.constant 5.000000e-01 : f32
    %123 = vector.broadcast %cst_57 : f32 to vector<8x128xf32>
    %124 = arith.mulf %123, %122 : vector<8x128xf32>
    %cst_58 = arith.constant 5.000000e-01 : f32
    %125 = vector.broadcast %cst_58 : f32 to vector<8x128xf32>
    %126 = arith.addf %124, %125 : vector<8x128xf32>
    %127 = vector.extract_strided_slice %107 {offsets = [0, 256], sizes = [8, 128], strides = [1, 1]} : vector<8x512xf32> to vector<8x128xf32>
    %128 = math.tanh %127 : vector<8x128xf32>
    %129 = vector.extract_strided_slice %107 {offsets = [0, 384], sizes = [8, 128], strides = [1, 1]} : vector<8x512xf32> to vector<8x128xf32>
    %cst_59 = arith.constant 5.000000e-01 : f32
    %130 = vector.broadcast %cst_59 : f32 to vector<8x128xf32>
    %131 = arith.mulf %130, %129 : vector<8x128xf32>
    %132 = math.tanh %131 : vector<8x128xf32>
    %cst_60 = arith.constant 5.000000e-01 : f32
    %133 = vector.broadcast %cst_60 : f32 to vector<8x128xf32>
    %134 = arith.mulf %133, %132 : vector<8x128xf32>
    %cst_61 = arith.constant 5.000000e-01 : f32
    %135 = vector.broadcast %cst_61 : f32 to vector<8x128xf32>
    %136 = arith.addf %134, %135 : vector<8x128xf32>
    %137 = arith.mulf %126, %62 : vector<8x128xf32>
    %138 = arith.mulf %118, %128 : vector<8x128xf32>
    %139 = arith.addf %137, %138 : vector<8x128xf32>
    %140 = math.tanh %139 : vector<8x128xf32>
    %141 = arith.mulf %136, %140 : vector<8x128xf32>
    %142 = vector.extract_strided_slice %110 {offsets = [0, 0], sizes = [8, 128], strides = [1, 1]} : vector<8x512xf32> to vector<8x128xf32>
    %cst_62 = arith.constant 5.000000e-01 : f32
    %143 = vector.broadcast %cst_62 : f32 to vector<8x128xf32>
    %144 = arith.mulf %143, %142 : vector<8x128xf32>
    %145 = math.tanh %144 : vector<8x128xf32>
    %cst_63 = arith.constant 5.000000e-01 : f32
    %146 = vector.broadcast %cst_63 : f32 to vector<8x128xf32>
    %147 = arith.mulf %146, %145 : vector<8x128xf32>
    %cst_64 = arith.constant 5.000000e-01 : f32
    %148 = vector.broadcast %cst_64 : f32 to vector<8x128xf32>
    %149 = arith.addf %147, %148 : vector<8x128xf32>
    %150 = vector.extract_strided_slice %110 {offsets = [0, 128], sizes = [8, 128], strides = [1, 1]} : vector<8x512xf32> to vector<8x128xf32>
    %cst_65 = arith.constant 5.000000e-01 : f32
    %151 = vector.broadcast %cst_65 : f32 to vector<8x128xf32>
    %152 = arith.mulf %151, %150 : vector<8x128xf32>
    %153 = math.tanh %152 : vector<8x128xf32>
    %cst_66 = arith.constant 5.000000e-01 : f32
    %154 = vector.broadcast %cst_66 : f32 to vector<8x128xf32>
    %155 = arith.mulf %154, %153 : vector<8x128xf32>
    %cst_67 = arith.constant 5.000000e-01 : f32
    %156 = vector.broadcast %cst_67 : f32 to vector<8x128xf32>
    %157 = arith.addf %155, %156 : vector<8x128xf32>
    %158 = vector.extract_strided_slice %110 {offsets = [0, 256], sizes = [8, 128], strides = [1, 1]} : vector<8x512xf32> to vector<8x128xf32>
    %159 = math.tanh %158 : vector<8x128xf32>
    %160 = vector.extract_strided_slice %110 {offsets = [0, 384], sizes = [8, 128], strides = [1, 1]} : vector<8x512xf32> to vector<8x128xf32>
    %cst_68 = arith.constant 5.000000e-01 : f32
    %161 = vector.broadcast %cst_68 : f32 to vector<8x128xf32>
    %162 = arith.mulf %161, %160 : vector<8x128xf32>
    %163 = math.tanh %162 : vector<8x128xf32>
    %cst_69 = arith.constant 5.000000e-01 : f32
    %164 = vector.broadcast %cst_69 : f32 to vector<8x128xf32>
    %165 = arith.mulf %164, %163 : vector<8x128xf32>
    %cst_70 = arith.constant 5.000000e-01 : f32
    %166 = vector.broadcast %cst_70 : f32 to vector<8x128xf32>
    %167 = arith.addf %165, %166 : vector<8x128xf32>
    %168 = arith.mulf %157, %93 : vector<8x128xf32>
    %169 = arith.mulf %149, %159 : vector<8x128xf32>
    %170 = arith.addf %168, %169 : vector<8x128xf32>
    %171 = math.tanh %170 : vector<8x128xf32>
    %172 = arith.mulf %167, %171 : vector<8x128xf32>
    %173 = tpu.concatenate %141, %172 in 1 : vector<8x128xf32>, vector<8x128xf32> -> vector<8x256xf32>
    %174 = arith.index_cast %102 : i32 to index
    %c0_71 = arith.constant 0 : index
    %175 = vector.load %arg16[%174, %c0_71] : memref<64x256xf32, #tpu.memory_space<vmem>>, vector<8x256xf32>
    tpu.vector_store %arg16[%174, %c0_71], %173 {strides = array<i32>} : memref<64x256xf32, #tpu.memory_space<vmem>>, vector<8x256xf32>,
    %176 = arith.truncf %141 : vector<8x128xf32> to vector<8x128xbf16>
    %177 = arith.truncf %172 : vector<8x128xf32> to vector<8x128xbf16>
    %c2_i32 = arith.constant 2 : i32
    %c8_i32_72 = arith.constant 8 : i32
    %178 = arith.muli %c2_i32, %c8_i32_72 : i32
    %179 = tpu.assume_multiple %178, 8 : i32
    %180 = arith.index_cast %179 : i32 to index
    %c0_73 = arith.constant 0 : index
    %181 = vector.load %arg15[%180, %c0_73] : memref<64x1024xf32, #tpu.memory_space<vmem>>, vector<8x1024xf32>
    %182 = vector.extract_strided_slice %181 {offsets = [0, 0], sizes = [8, 512], strides = [1, 1]} : vector<8x1024xf32> to vector<8x512xf32>
    %cst_74 = arith.constant dense<0.000000e+00> : vector<8x512xf32>
    %183 = tpu.matmul %176, %16, %cst_74 {dimension_numbers = #tpu.dot_dimension_numbers<[1], [0], [0], [1], [0, 0, 1, 1], [], []>} : vector<8x128xbf16>, vector<128x512xbf16>, vector<8x512xf32> -> vector<8x512xf32>
    %184 = arith.addf %182, %183 : vector<8x512xf32>
    %185 = vector.extract_strided_slice %181 {offsets = [0, 512], sizes = [8, 512], strides = [1, 1]} : vector<8x1024xf32> to vector<8x512xf32>
    %cst_75 = arith.constant dense<0.000000e+00> : vector<8x512xf32>
    %186 = tpu.matmul %177, %17, %cst_75 {dimension_numbers = #tpu.dot_dimension_numbers<[1], [0], [0], [1], [0, 0, 1, 1], [], []>} : vector<8x128xbf16>, vector<128x512xbf16>, vector<8x512xf32> -> vector<8x512xf32>
    %187 = arith.addf %185, %186 : vector<8x512xf32>
    %188 = vector.extract_strided_slice %184 {offsets = [0, 0], sizes = [8, 128], strides = [1, 1]} : vector<8x512xf32> to vector<8x128xf32>
    %cst_76 = arith.constant 5.000000e-01 : f32
    %189 = vector.broadcast %cst_76 : f32 to vector<8x128xf32>
    %190 = arith.mulf %189, %188 : vector<8x128xf32>
    %191 = math.tanh %190 : vector<8x128xf32>
    %cst_77 = arith.constant 5.000000e-01 : f32
    %192 = vector.broadcast %cst_77 : f32 to vector<8x128xf32>
    %193 = arith.mulf %192, %191 : vector<8x128xf32>
    %cst_78 = arith.constant 5.000000e-01 : f32
    %194 = vector.broadcast %cst_78 : f32 to vector<8x128xf32>
    %195 = arith.addf %193, %194 : vector<8x128xf32>
    %196 = vector.extract_strided_slice %184 {offsets = [0, 128], sizes = [8, 128], strides = [1, 1]} : vector<8x512xf32> to vector<8x128xf32>
    %cst_79 = arith.constant 5.000000e-01 : f32
    %197 = vector.broadcast %cst_79 : f32 to vector<8x128xf32>
    %198 = arith.mulf %197, %196 : vector<8x128xf32>
    %199 = math.tanh %198 : vector<8x128xf32>
    %cst_80 = arith.constant 5.000000e-01 : f32
    %200 = vector.broadcast %cst_80 : f32 to vector<8x128xf32>
    %201 = arith.mulf %200, %199 : vector<8x128xf32>
    %cst_81 = arith.constant 5.000000e-01 : f32
    %202 = vector.broadcast %cst_81 : f32 to vector<8x128xf32>
    %203 = arith.addf %201, %202 : vector<8x128xf32>
    %204 = vector.extract_strided_slice %184 {offsets = [0, 256], sizes = [8, 128], strides = [1, 1]} : vector<8x512xf32> to vector<8x128xf32>
    %205 = math.tanh %204 : vector<8x128xf32>
    %206 = vector.extract_strided_slice %184 {offsets = [0, 384], sizes = [8, 128], strides = [1, 1]} : vector<8x512xf32> to vector<8x128xf32>
    %cst_82 = arith.constant 5.000000e-01 : f32
    %207 = vector.broadcast %cst_82 : f32 to vector<8x128xf32>
    %208 = arith.mulf %207, %206 : vector<8x128xf32>
    %209 = math.tanh %208 : vector<8x128xf32>
    %cst_83 = arith.constant 5.000000e-01 : f32
    %210 = vector.broadcast %cst_83 : f32 to vector<8x128xf32>
    %211 = arith.mulf %210, %209 : vector<8x128xf32>
    %cst_84 = arith.constant 5.000000e-01 : f32
    %212 = vector.broadcast %cst_84 : f32 to vector<8x128xf32>
    %213 = arith.addf %211, %212 : vector<8x128xf32>
    %214 = arith.mulf %203, %139 : vector<8x128xf32>
    %215 = arith.mulf %195, %205 : vector<8x128xf32>
    %216 = arith.addf %214, %215 : vector<8x128xf32>
    %217 = math.tanh %216 : vector<8x128xf32>
    %218 = arith.mulf %213, %217 : vector<8x128xf32>
    %219 = vector.extract_strided_slice %187 {offsets = [0, 0], sizes = [8, 128], strides = [1, 1]} : vector<8x512xf32> to vector<8x128xf32>
    %cst_85 = arith.constant 5.000000e-01 : f32
    %220 = vector.broadcast %cst_85 : f32 to vector<8x128xf32>
    %221 = arith.mulf %220, %219 : vector<8x128xf32>
    %222 = math.tanh %221 : vector<8x128xf32>
    %cst_86 = arith.constant 5.000000e-01 : f32
    %223 = vector.broadcast %cst_86 : f32 to vector<8x128xf32>
    %224 = arith.mulf %223, %222 : vector<8x128xf32>
    %cst_87 = arith.constant 5.000000e-01 : f32
    %225 = vector.broadcast %cst_87 : f32 to vector<8x128xf32>
    %226 = arith.addf %224, %225 : vector<8x128xf32>
    %227 = vector.extract_strided_slice %187 {offsets = [0, 128], sizes = [8, 128], strides = [1, 1]} : vector<8x512xf32> to vector<8x128xf32>
    %cst_88 = arith.constant 5.000000e-01 : f32
    %228 = vector.broadcast %cst_88 : f32 to vector<8x128xf32>
    %229 = arith.mulf %228, %227 : vector<8x128xf32>
    %230 = math.tanh %229 : vector<8x128xf32>
    %cst_89 = arith.constant 5.000000e-01 : f32
    %231 = vector.broadcast %cst_89 : f32 to vector<8x128xf32>
    %232 = arith.mulf %231, %230 : vector<8x128xf32>
    %cst_90 = arith.constant 5.000000e-01 : f32
    %233 = vector.broadcast %cst_90 : f32 to vector<8x128xf32>
    %234 = arith.addf %232, %233 : vector<8x128xf32>
    %235 = vector.extract_strided_slice %187 {offsets = [0, 256], sizes = [8, 128], strides = [1, 1]} : vector<8x512xf32> to vector<8x128xf32>
    %236 = math.tanh %235 : vector<8x128xf32>
    %237 = vector.extract_strided_slice %187 {offsets = [0, 384], sizes = [8, 128], strides = [1, 1]} : vector<8x512xf32> to vector<8x128xf32>
    %cst_91 = arith.constant 5.000000e-01 : f32
    %238 = vector.broadcast %cst_91 : f32 to vector<8x128xf32>
    %239 = arith.mulf %238, %237 : vector<8x128xf32>
    %240 = math.tanh %239 : vector<8x128xf32>
    %cst_92 = arith.constant 5.000000e-01 : f32
    %241 = vector.broadcast %cst_92 : f32 to vector<8x128xf32>
    %242 = arith.mulf %241, %240 : vector<8x128xf32>
    %cst_93 = arith.constant 5.000000e-01 : f32
    %243 = vector.broadcast %cst_93 : f32 to vector<8x128xf32>
    %244 = arith.addf %242, %243 : vector<8x128xf32>
    %245 = arith.mulf %234, %170 : vector<8x128xf32>
    %246 = arith.mulf %226, %236 : vector<8x128xf32>
    %247 = arith.addf %245, %246 : vector<8x128xf32>
    %248 = math.tanh %247 : vector<8x128xf32>
    %249 = arith.mulf %244, %248 : vector<8x128xf32>
    %250 = tpu.concatenate %218, %249 in 1 : vector<8x128xf32>, vector<8x128xf32> -> vector<8x256xf32>
    %251 = arith.index_cast %179 : i32 to index
    %c0_94 = arith.constant 0 : index
    %252 = vector.load %arg16[%251, %c0_94] : memref<64x256xf32, #tpu.memory_space<vmem>>, vector<8x256xf32>
    tpu.vector_store %arg16[%251, %c0_94], %250 {strides = array<i32>} : memref<64x256xf32, #tpu.memory_space<vmem>>, vector<8x256xf32>,
    %253 = arith.truncf %218 : vector<8x128xf32> to vector<8x128xbf16>
    %254 = arith.truncf %249 : vector<8x128xf32> to vector<8x128xbf16>
    %c3_i32 = arith.constant 3 : i32
    %c8_i32_95 = arith.constant 8 : i32
    %255 = arith.muli %c3_i32, %c8_i32_95 : i32
    %256 = tpu.assume_multiple %255, 8 : i32
    %257 = arith.index_cast %256 : i32 to index
    %c0_96 = arith.constant 0 : index
    %258 = vector.load %arg15[%257, %c0_96] : memref<64x1024xf32, #tpu.memory_space<vmem>>, vector<8x1024xf32>
    %259 = vector.extract_strided_slice %258 {offsets = [0, 0], sizes = [8, 512], strides = [1, 1]} : vector<8x1024xf32> to vector<8x512xf32>
    %cst_97 = arith.constant dense<0.000000e+00> : vector<8x512xf32>
    %260 = tpu.matmul %253, %16, %cst_97 {dimension_numbers = #tpu.dot_dimension_numbers<[1], [0], [0], [1], [0, 0, 1, 1], [], []>} : vector<8x128xbf16>, vector<128x512xbf16>, vector<8x512xf32> -> vector<8x512xf32>
    %261 = arith.addf %259, %260 : vector<8x512xf32>
    %262 = vector.extract_strided_slice %258 {offsets = [0, 512], sizes = [8, 512], strides = [1, 1]} : vector<8x1024xf32> to vector<8x512xf32>
    %cst_98 = arith.constant dense<0.000000e+00> : vector<8x512xf32>
    %263 = tpu.matmul %254, %17, %cst_98 {dimension_numbers = #tpu.dot_dimension_numbers<[1], [0], [0], [1], [0, 0, 1, 1], [], []>} : vector<8x128xbf16>, vector<128x512xbf16>, vector<8x512xf32> -> vector<8x512xf32>
    %264 = arith.addf %262, %263 : vector<8x512xf32>
    %265 = vector.extract_strided_slice %261 {offsets = [0, 0], sizes = [8, 128], strides = [1, 1]} : vector<8x512xf32> to vector<8x128xf32>
    %cst_99 = arith.constant 5.000000e-01 : f32
    %266 = vector.broadcast %cst_99 : f32 to vector<8x128xf32>
    %267 = arith.mulf %266, %265 : vector<8x128xf32>
    %268 = math.tanh %267 : vector<8x128xf32>
    %cst_100 = arith.constant 5.000000e-01 : f32
    %269 = vector.broadcast %cst_100 : f32 to vector<8x128xf32>
    %270 = arith.mulf %269, %268 : vector<8x128xf32>
    %cst_101 = arith.constant 5.000000e-01 : f32
    %271 = vector.broadcast %cst_101 : f32 to vector<8x128xf32>
    %272 = arith.addf %270, %271 : vector<8x128xf32>
    %273 = vector.extract_strided_slice %261 {offsets = [0, 128], sizes = [8, 128], strides = [1, 1]} : vector<8x512xf32> to vector<8x128xf32>
    %cst_102 = arith.constant 5.000000e-01 : f32
    %274 = vector.broadcast %cst_102 : f32 to vector<8x128xf32>
    %275 = arith.mulf %274, %273 : vector<8x128xf32>
    %276 = math.tanh %275 : vector<8x128xf32>
    %cst_103 = arith.constant 5.000000e-01 : f32
    %277 = vector.broadcast %cst_103 : f32 to vector<8x128xf32>
    %278 = arith.mulf %277, %276 : vector<8x128xf32>
    %cst_104 = arith.constant 5.000000e-01 : f32
    %279 = vector.broadcast %cst_104 : f32 to vector<8x128xf32>
    %280 = arith.addf %278, %279 : vector<8x128xf32>
    %281 = vector.extract_strided_slice %261 {offsets = [0, 256], sizes = [8, 128], strides = [1, 1]} : vector<8x512xf32> to vector<8x128xf32>
    %282 = math.tanh %281 : vector<8x128xf32>
    %283 = vector.extract_strided_slice %261 {offsets = [0, 384], sizes = [8, 128], strides = [1, 1]} : vector<8x512xf32> to vector<8x128xf32>
    %cst_105 = arith.constant 5.000000e-01 : f32
    %284 = vector.broadcast %cst_105 : f32 to vector<8x128xf32>
    %285 = arith.mulf %284, %283 : vector<8x128xf32>
    %286 = math.tanh %285 : vector<8x128xf32>
    %cst_106 = arith.constant 5.000000e-01 : f32
    %287 = vector.broadcast %cst_106 : f32 to vector<8x128xf32>
    %288 = arith.mulf %287, %286 : vector<8x128xf32>
    %cst_107 = arith.constant 5.000000e-01 : f32
    %289 = vector.broadcast %cst_107 : f32 to vector<8x128xf32>
    %290 = arith.addf %288, %289 : vector<8x128xf32>
    %291 = arith.mulf %280, %216 : vector<8x128xf32>
    %292 = arith.mulf %272, %282 : vector<8x128xf32>
    %293 = arith.addf %291, %292 : vector<8x128xf32>
    %294 = math.tanh %293 : vector<8x128xf32>
    %295 = arith.mulf %290, %294 : vector<8x128xf32>
    %296 = vector.extract_strided_slice %264 {offsets = [0, 0], sizes = [8, 128], strides = [1, 1]} : vector<8x512xf32> to vector<8x128xf32>
    %cst_108 = arith.constant 5.000000e-01 : f32
    %297 = vector.broadcast %cst_108 : f32 to vector<8x128xf32>
    %298 = arith.mulf %297, %296 : vector<8x128xf32>
    %299 = math.tanh %298 : vector<8x128xf32>
    %cst_109 = arith.constant 5.000000e-01 : f32
    %300 = vector.broadcast %cst_109 : f32 to vector<8x128xf32>
    %301 = arith.mulf %300, %299 : vector<8x128xf32>
    %cst_110 = arith.constant 5.000000e-01 : f32
    %302 = vector.broadcast %cst_110 : f32 to vector<8x128xf32>
    %303 = arith.addf %301, %302 : vector<8x128xf32>
    %304 = vector.extract_strided_slice %264 {offsets = [0, 128], sizes = [8, 128], strides = [1, 1]} : vector<8x512xf32> to vector<8x128xf32>
    %cst_111 = arith.constant 5.000000e-01 : f32
    %305 = vector.broadcast %cst_111 : f32 to vector<8x128xf32>
    %306 = arith.mulf %305, %304 : vector<8x128xf32>
    %307 = math.tanh %306 : vector<8x128xf32>
    %cst_112 = arith.constant 5.000000e-01 : f32
    %308 = vector.broadcast %cst_112 : f32 to vector<8x128xf32>
    %309 = arith.mulf %308, %307 : vector<8x128xf32>
    %cst_113 = arith.constant 5.000000e-01 : f32
    %310 = vector.broadcast %cst_113 : f32 to vector<8x128xf32>
    %311 = arith.addf %309, %310 : vector<8x128xf32>
    %312 = vector.extract_strided_slice %264 {offsets = [0, 256], sizes = [8, 128], strides = [1, 1]} : vector<8x512xf32> to vector<8x128xf32>
    %313 = math.tanh %312 : vector<8x128xf32>
    %314 = vector.extract_strided_slice %264 {offsets = [0, 384], sizes = [8, 128], strides = [1, 1]} : vector<8x512xf32> to vector<8x128xf32>
    %cst_114 = arith.constant 5.000000e-01 : f32
    %315 = vector.broadcast %cst_114 : f32 to vector<8x128xf32>
    %316 = arith.mulf %315, %314 : vector<8x128xf32>
    %317 = math.tanh %316 : vector<8x128xf32>
    %cst_115 = arith.constant 5.000000e-01 : f32
    %318 = vector.broadcast %cst_115 : f32 to vector<8x128xf32>
    %319 = arith.mulf %318, %317 : vector<8x128xf32>
    %cst_116 = arith.constant 5.000000e-01 : f32
    %320 = vector.broadcast %cst_116 : f32 to vector<8x128xf32>
    %321 = arith.addf %319, %320 : vector<8x128xf32>
    %322 = arith.mulf %311, %247 : vector<8x128xf32>
    %323 = arith.mulf %303, %313 : vector<8x128xf32>
    %324 = arith.addf %322, %323 : vector<8x128xf32>
    %325 = math.tanh %324 : vector<8x128xf32>
    %326 = arith.mulf %321, %325 : vector<8x128xf32>
    %327 = tpu.concatenate %295, %326 in 1 : vector<8x128xf32>, vector<8x128xf32> -> vector<8x256xf32>
    %328 = arith.index_cast %256 : i32 to index
    %c0_117 = arith.constant 0 : index
    %329 = vector.load %arg16[%328, %c0_117] : memref<64x256xf32, #tpu.memory_space<vmem>>, vector<8x256xf32>
    tpu.vector_store %arg16[%328, %c0_117], %327 {strides = array<i32>} : memref<64x256xf32, #tpu.memory_space<vmem>>, vector<8x256xf32>,
    %330 = arith.truncf %295 : vector<8x128xf32> to vector<8x128xbf16>
    %331 = arith.truncf %326 : vector<8x128xf32> to vector<8x128xbf16>
    %c4_i32 = arith.constant 4 : i32
    %c8_i32_118 = arith.constant 8 : i32
    %332 = arith.muli %c4_i32, %c8_i32_118 : i32
    %333 = tpu.assume_multiple %332, 8 : i32
    %334 = arith.index_cast %333 : i32 to index
    %c0_119 = arith.constant 0 : index
    %335 = vector.load %arg15[%334, %c0_119] : memref<64x1024xf32, #tpu.memory_space<vmem>>, vector<8x1024xf32>
    %336 = vector.extract_strided_slice %335 {offsets = [0, 0], sizes = [8, 512], strides = [1, 1]} : vector<8x1024xf32> to vector<8x512xf32>
    %cst_120 = arith.constant dense<0.000000e+00> : vector<8x512xf32>
    %337 = tpu.matmul %330, %16, %cst_120 {dimension_numbers = #tpu.dot_dimension_numbers<[1], [0], [0], [1], [0, 0, 1, 1], [], []>} : vector<8x128xbf16>, vector<128x512xbf16>, vector<8x512xf32> -> vector<8x512xf32>
    %338 = arith.addf %336, %337 : vector<8x512xf32>
    %339 = vector.extract_strided_slice %335 {offsets = [0, 512], sizes = [8, 512], strides = [1, 1]} : vector<8x1024xf32> to vector<8x512xf32>
    %cst_121 = arith.constant dense<0.000000e+00> : vector<8x512xf32>
    %340 = tpu.matmul %331, %17, %cst_121 {dimension_numbers = #tpu.dot_dimension_numbers<[1], [0], [0], [1], [0, 0, 1, 1], [], []>} : vector<8x128xbf16>, vector<128x512xbf16>, vector<8x512xf32> -> vector<8x512xf32>
    %341 = arith.addf %339, %340 : vector<8x512xf32>
    %342 = vector.extract_strided_slice %338 {offsets = [0, 0], sizes = [8, 128], strides = [1, 1]} : vector<8x512xf32> to vector<8x128xf32>
    %cst_122 = arith.constant 5.000000e-01 : f32
    %343 = vector.broadcast %cst_122 : f32 to vector<8x128xf32>
    %344 = arith.mulf %343, %342 : vector<8x128xf32>
    %345 = math.tanh %344 : vector<8x128xf32>
    %cst_123 = arith.constant 5.000000e-01 : f32
    %346 = vector.broadcast %cst_123 : f32 to vector<8x128xf32>
    %347 = arith.mulf %346, %345 : vector<8x128xf32>
    %cst_124 = arith.constant 5.000000e-01 : f32
    %348 = vector.broadcast %cst_124 : f32 to vector<8x128xf32>
    %349 = arith.addf %347, %348 : vector<8x128xf32>
    %350 = vector.extract_strided_slice %338 {offsets = [0, 128], sizes = [8, 128], strides = [1, 1]} : vector<8x512xf32> to vector<8x128xf32>
    %cst_125 = arith.constant 5.000000e-01 : f32
    %351 = vector.broadcast %cst_125 : f32 to vector<8x128xf32>
    %352 = arith.mulf %351, %350 : vector<8x128xf32>
    %353 = math.tanh %352 : vector<8x128xf32>
    %cst_126 = arith.constant 5.000000e-01 : f32
    %354 = vector.broadcast %cst_126 : f32 to vector<8x128xf32>
    %355 = arith.mulf %354, %353 : vector<8x128xf32>
    %cst_127 = arith.constant 5.000000e-01 : f32
    %356 = vector.broadcast %cst_127 : f32 to vector<8x128xf32>
    %357 = arith.addf %355, %356 : vector<8x128xf32>
    %358 = vector.extract_strided_slice %338 {offsets = [0, 256], sizes = [8, 128], strides = [1, 1]} : vector<8x512xf32> to vector<8x128xf32>
    %359 = math.tanh %358 : vector<8x128xf32>
    %360 = vector.extract_strided_slice %338 {offsets = [0, 384], sizes = [8, 128], strides = [1, 1]} : vector<8x512xf32> to vector<8x128xf32>
    %cst_128 = arith.constant 5.000000e-01 : f32
    %361 = vector.broadcast %cst_128 : f32 to vector<8x128xf32>
    %362 = arith.mulf %361, %360 : vector<8x128xf32>
    %363 = math.tanh %362 : vector<8x128xf32>
    %cst_129 = arith.constant 5.000000e-01 : f32
    %364 = vector.broadcast %cst_129 : f32 to vector<8x128xf32>
    %365 = arith.mulf %364, %363 : vector<8x128xf32>
    %cst_130 = arith.constant 5.000000e-01 : f32
    %366 = vector.broadcast %cst_130 : f32 to vector<8x128xf32>
    %367 = arith.addf %365, %366 : vector<8x128xf32>
    %368 = arith.mulf %357, %293 : vector<8x128xf32>
    %369 = arith.mulf %349, %359 : vector<8x128xf32>
    %370 = arith.addf %368, %369 : vector<8x128xf32>
    %371 = math.tanh %370 : vector<8x128xf32>
    %372 = arith.mulf %367, %371 : vector<8x128xf32>
    %373 = vector.extract_strided_slice %341 {offsets = [0, 0], sizes = [8, 128], strides = [1, 1]} : vector<8x512xf32> to vector<8x128xf32>
    %cst_131 = arith.constant 5.000000e-01 : f32
    %374 = vector.broadcast %cst_131 : f32 to vector<8x128xf32>
    %375 = arith.mulf %374, %373 : vector<8x128xf32>
    %376 = math.tanh %375 : vector<8x128xf32>
    %cst_132 = arith.constant 5.000000e-01 : f32
    %377 = vector.broadcast %cst_132 : f32 to vector<8x128xf32>
    %378 = arith.mulf %377, %376 : vector<8x128xf32>
    %cst_133 = arith.constant 5.000000e-01 : f32
    %379 = vector.broadcast %cst_133 : f32 to vector<8x128xf32>
    %380 = arith.addf %378, %379 : vector<8x128xf32>
    %381 = vector.extract_strided_slice %341 {offsets = [0, 128], sizes = [8, 128], strides = [1, 1]} : vector<8x512xf32> to vector<8x128xf32>
    %cst_134 = arith.constant 5.000000e-01 : f32
    %382 = vector.broadcast %cst_134 : f32 to vector<8x128xf32>
    %383 = arith.mulf %382, %381 : vector<8x128xf32>
    %384 = math.tanh %383 : vector<8x128xf32>
    %cst_135 = arith.constant 5.000000e-01 : f32
    %385 = vector.broadcast %cst_135 : f32 to vector<8x128xf32>
    %386 = arith.mulf %385, %384 : vector<8x128xf32>
    %cst_136 = arith.constant 5.000000e-01 : f32
    %387 = vector.broadcast %cst_136 : f32 to vector<8x128xf32>
    %388 = arith.addf %386, %387 : vector<8x128xf32>
    %389 = vector.extract_strided_slice %341 {offsets = [0, 256], sizes = [8, 128], strides = [1, 1]} : vector<8x512xf32> to vector<8x128xf32>
    %390 = math.tanh %389 : vector<8x128xf32>
    %391 = vector.extract_strided_slice %341 {offsets = [0, 384], sizes = [8, 128], strides = [1, 1]} : vector<8x512xf32> to vector<8x128xf32>
    %cst_137 = arith.constant 5.000000e-01 : f32
    %392 = vector.broadcast %cst_137 : f32 to vector<8x128xf32>
    %393 = arith.mulf %392, %391 : vector<8x128xf32>
    %394 = math.tanh %393 : vector<8x128xf32>
    %cst_138 = arith.constant 5.000000e-01 : f32
    %395 = vector.broadcast %cst_138 : f32 to vector<8x128xf32>
    %396 = arith.mulf %395, %394 : vector<8x128xf32>
    %cst_139 = arith.constant 5.000000e-01 : f32
    %397 = vector.broadcast %cst_139 : f32 to vector<8x128xf32>
    %398 = arith.addf %396, %397 : vector<8x128xf32>
    %399 = arith.mulf %388, %324 : vector<8x128xf32>
    %400 = arith.mulf %380, %390 : vector<8x128xf32>
    %401 = arith.addf %399, %400 : vector<8x128xf32>
    %402 = math.tanh %401 : vector<8x128xf32>
    %403 = arith.mulf %398, %402 : vector<8x128xf32>
    %404 = tpu.concatenate %372, %403 in 1 : vector<8x128xf32>, vector<8x128xf32> -> vector<8x256xf32>
    %405 = arith.index_cast %333 : i32 to index
    %c0_140 = arith.constant 0 : index
    %406 = vector.load %arg16[%405, %c0_140] : memref<64x256xf32, #tpu.memory_space<vmem>>, vector<8x256xf32>
    tpu.vector_store %arg16[%405, %c0_140], %404 {strides = array<i32>} : memref<64x256xf32, #tpu.memory_space<vmem>>, vector<8x256xf32>,
    %407 = arith.truncf %372 : vector<8x128xf32> to vector<8x128xbf16>
    %408 = arith.truncf %403 : vector<8x128xf32> to vector<8x128xbf16>
    %c5_i32 = arith.constant 5 : i32
    %c8_i32_141 = arith.constant 8 : i32
    %409 = arith.muli %c5_i32, %c8_i32_141 : i32
    %410 = tpu.assume_multiple %409, 8 : i32
    %411 = arith.index_cast %410 : i32 to index
    %c0_142 = arith.constant 0 : index
    %412 = vector.load %arg15[%411, %c0_142] : memref<64x1024xf32, #tpu.memory_space<vmem>>, vector<8x1024xf32>
    %413 = vector.extract_strided_slice %412 {offsets = [0, 0], sizes = [8, 512], strides = [1, 1]} : vector<8x1024xf32> to vector<8x512xf32>
    %cst_143 = arith.constant dense<0.000000e+00> : vector<8x512xf32>
    %414 = tpu.matmul %407, %16, %cst_143 {dimension_numbers = #tpu.dot_dimension_numbers<[1], [0], [0], [1], [0, 0, 1, 1], [], []>} : vector<8x128xbf16>, vector<128x512xbf16>, vector<8x512xf32> -> vector<8x512xf32>
    %415 = arith.addf %413, %414 : vector<8x512xf32>
    %416 = vector.extract_strided_slice %412 {offsets = [0, 512], sizes = [8, 512], strides = [1, 1]} : vector<8x1024xf32> to vector<8x512xf32>
    %cst_144 = arith.constant dense<0.000000e+00> : vector<8x512xf32>
    %417 = tpu.matmul %408, %17, %cst_144 {dimension_numbers = #tpu.dot_dimension_numbers<[1], [0], [0], [1], [0, 0, 1, 1], [], []>} : vector<8x128xbf16>, vector<128x512xbf16>, vector<8x512xf32> -> vector<8x512xf32>
    %418 = arith.addf %416, %417 : vector<8x512xf32>
    %419 = vector.extract_strided_slice %415 {offsets = [0, 0], sizes = [8, 128], strides = [1, 1]} : vector<8x512xf32> to vector<8x128xf32>
    %cst_145 = arith.constant 5.000000e-01 : f32
    %420 = vector.broadcast %cst_145 : f32 to vector<8x128xf32>
    %421 = arith.mulf %420, %419 : vector<8x128xf32>
    %422 = math.tanh %421 : vector<8x128xf32>
    %cst_146 = arith.constant 5.000000e-01 : f32
    %423 = vector.broadcast %cst_146 : f32 to vector<8x128xf32>
    %424 = arith.mulf %423, %422 : vector<8x128xf32>
    %cst_147 = arith.constant 5.000000e-01 : f32
    %425 = vector.broadcast %cst_147 : f32 to vector<8x128xf32>
    %426 = arith.addf %424, %425 : vector<8x128xf32>
    %427 = vector.extract_strided_slice %415 {offsets = [0, 128], sizes = [8, 128], strides = [1, 1]} : vector<8x512xf32> to vector<8x128xf32>
    %cst_148 = arith.constant 5.000000e-01 : f32
    %428 = vector.broadcast %cst_148 : f32 to vector<8x128xf32>
    %429 = arith.mulf %428, %427 : vector<8x128xf32>
    %430 = math.tanh %429 : vector<8x128xf32>
    %cst_149 = arith.constant 5.000000e-01 : f32
    %431 = vector.broadcast %cst_149 : f32 to vector<8x128xf32>
    %432 = arith.mulf %431, %430 : vector<8x128xf32>
    %cst_150 = arith.constant 5.000000e-01 : f32
    %433 = vector.broadcast %cst_150 : f32 to vector<8x128xf32>
    %434 = arith.addf %432, %433 : vector<8x128xf32>
    %435 = vector.extract_strided_slice %415 {offsets = [0, 256], sizes = [8, 128], strides = [1, 1]} : vector<8x512xf32> to vector<8x128xf32>
    %436 = math.tanh %435 : vector<8x128xf32>
    %437 = vector.extract_strided_slice %415 {offsets = [0, 384], sizes = [8, 128], strides = [1, 1]} : vector<8x512xf32> to vector<8x128xf32>
    %cst_151 = arith.constant 5.000000e-01 : f32
    %438 = vector.broadcast %cst_151 : f32 to vector<8x128xf32>
    %439 = arith.mulf %438, %437 : vector<8x128xf32>
    %440 = math.tanh %439 : vector<8x128xf32>
    %cst_152 = arith.constant 5.000000e-01 : f32
    %441 = vector.broadcast %cst_152 : f32 to vector<8x128xf32>
    %442 = arith.mulf %441, %440 : vector<8x128xf32>
    %cst_153 = arith.constant 5.000000e-01 : f32
    %443 = vector.broadcast %cst_153 : f32 to vector<8x128xf32>
    %444 = arith.addf %442, %443 : vector<8x128xf32>
    %445 = arith.mulf %434, %370 : vector<8x128xf32>
    %446 = arith.mulf %426, %436 : vector<8x128xf32>
    %447 = arith.addf %445, %446 : vector<8x128xf32>
    %448 = math.tanh %447 : vector<8x128xf32>
    %449 = arith.mulf %444, %448 : vector<8x128xf32>
    %450 = vector.extract_strided_slice %418 {offsets = [0, 0], sizes = [8, 128], strides = [1, 1]} : vector<8x512xf32> to vector<8x128xf32>
    %cst_154 = arith.constant 5.000000e-01 : f32
    %451 = vector.broadcast %cst_154 : f32 to vector<8x128xf32>
    %452 = arith.mulf %451, %450 : vector<8x128xf32>
    %453 = math.tanh %452 : vector<8x128xf32>
    %cst_155 = arith.constant 5.000000e-01 : f32
    %454 = vector.broadcast %cst_155 : f32 to vector<8x128xf32>
    %455 = arith.mulf %454, %453 : vector<8x128xf32>
    %cst_156 = arith.constant 5.000000e-01 : f32
    %456 = vector.broadcast %cst_156 : f32 to vector<8x128xf32>
    %457 = arith.addf %455, %456 : vector<8x128xf32>
    %458 = vector.extract_strided_slice %418 {offsets = [0, 128], sizes = [8, 128], strides = [1, 1]} : vector<8x512xf32> to vector<8x128xf32>
    %cst_157 = arith.constant 5.000000e-01 : f32
    %459 = vector.broadcast %cst_157 : f32 to vector<8x128xf32>
    %460 = arith.mulf %459, %458 : vector<8x128xf32>
    %461 = math.tanh %460 : vector<8x128xf32>
    %cst_158 = arith.constant 5.000000e-01 : f32
    %462 = vector.broadcast %cst_158 : f32 to vector<8x128xf32>
    %463 = arith.mulf %462, %461 : vector<8x128xf32>
    %cst_159 = arith.constant 5.000000e-01 : f32
    %464 = vector.broadcast %cst_159 : f32 to vector<8x128xf32>
    %465 = arith.addf %463, %464 : vector<8x128xf32>
    %466 = vector.extract_strided_slice %418 {offsets = [0, 256], sizes = [8, 128], strides = [1, 1]} : vector<8x512xf32> to vector<8x128xf32>
    %467 = math.tanh %466 : vector<8x128xf32>
    %468 = vector.extract_strided_slice %418 {offsets = [0, 384], sizes = [8, 128], strides = [1, 1]} : vector<8x512xf32> to vector<8x128xf32>
    %cst_160 = arith.constant 5.000000e-01 : f32
    %469 = vector.broadcast %cst_160 : f32 to vector<8x128xf32>
    %470 = arith.mulf %469, %468 : vector<8x128xf32>
    %471 = math.tanh %470 : vector<8x128xf32>
    %cst_161 = arith.constant 5.000000e-01 : f32
    %472 = vector.broadcast %cst_161 : f32 to vector<8x128xf32>
    %473 = arith.mulf %472, %471 : vector<8x128xf32>
    %cst_162 = arith.constant 5.000000e-01 : f32
    %474 = vector.broadcast %cst_162 : f32 to vector<8x128xf32>
    %475 = arith.addf %473, %474 : vector<8x128xf32>
    %476 = arith.mulf %465, %401 : vector<8x128xf32>
    %477 = arith.mulf %457, %467 : vector<8x128xf32>
    %478 = arith.addf %476, %477 : vector<8x128xf32>
    %479 = math.tanh %478 : vector<8x128xf32>
    %480 = arith.mulf %475, %479 : vector<8x128xf32>
    %481 = tpu.concatenate %449, %480 in 1 : vector<8x128xf32>, vector<8x128xf32> -> vector<8x256xf32>
    %482 = arith.index_cast %410 : i32 to index
    %c0_163 = arith.constant 0 : index
    %483 = vector.load %arg16[%482, %c0_163] : memref<64x256xf32, #tpu.memory_space<vmem>>, vector<8x256xf32>
    tpu.vector_store %arg16[%482, %c0_163], %481 {strides = array<i32>} : memref<64x256xf32, #tpu.memory_space<vmem>>, vector<8x256xf32>,
    %484 = arith.truncf %449 : vector<8x128xf32> to vector<8x128xbf16>
    %485 = arith.truncf %480 : vector<8x128xf32> to vector<8x128xbf16>
    %c6_i32 = arith.constant 6 : i32
    %c8_i32_164 = arith.constant 8 : i32
    %486 = arith.muli %c6_i32, %c8_i32_164 : i32
    %487 = tpu.assume_multiple %486, 8 : i32
    %488 = arith.index_cast %487 : i32 to index
    %c0_165 = arith.constant 0 : index
    %489 = vector.load %arg15[%488, %c0_165] : memref<64x1024xf32, #tpu.memory_space<vmem>>, vector<8x1024xf32>
    %490 = vector.extract_strided_slice %489 {offsets = [0, 0], sizes = [8, 512], strides = [1, 1]} : vector<8x1024xf32> to vector<8x512xf32>
    %cst_166 = arith.constant dense<0.000000e+00> : vector<8x512xf32>
    %491 = tpu.matmul %484, %16, %cst_166 {dimension_numbers = #tpu.dot_dimension_numbers<[1], [0], [0], [1], [0, 0, 1, 1], [], []>} : vector<8x128xbf16>, vector<128x512xbf16>, vector<8x512xf32> -> vector<8x512xf32>
    %492 = arith.addf %490, %491 : vector<8x512xf32>
    %493 = vector.extract_strided_slice %489 {offsets = [0, 512], sizes = [8, 512], strides = [1, 1]} : vector<8x1024xf32> to vector<8x512xf32>
    %cst_167 = arith.constant dense<0.000000e+00> : vector<8x512xf32>
    %494 = tpu.matmul %485, %17, %cst_167 {dimension_numbers = #tpu.dot_dimension_numbers<[1], [0], [0], [1], [0, 0, 1, 1], [], []>} : vector<8x128xbf16>, vector<128x512xbf16>, vector<8x512xf32> -> vector<8x512xf32>
    %495 = arith.addf %493, %494 : vector<8x512xf32>
    %496 = vector.extract_strided_slice %492 {offsets = [0, 0], sizes = [8, 128], strides = [1, 1]} : vector<8x512xf32> to vector<8x128xf32>
    %cst_168 = arith.constant 5.000000e-01 : f32
    %497 = vector.broadcast %cst_168 : f32 to vector<8x128xf32>
    %498 = arith.mulf %497, %496 : vector<8x128xf32>
    %499 = math.tanh %498 : vector<8x128xf32>
    %cst_169 = arith.constant 5.000000e-01 : f32
    %500 = vector.broadcast %cst_169 : f32 to vector<8x128xf32>
    %501 = arith.mulf %500, %499 : vector<8x128xf32>
    %cst_170 = arith.constant 5.000000e-01 : f32
    %502 = vector.broadcast %cst_170 : f32 to vector<8x128xf32>
    %503 = arith.addf %501, %502 : vector<8x128xf32>
    %504 = vector.extract_strided_slice %492 {offsets = [0, 128], sizes = [8, 128], strides = [1, 1]} : vector<8x512xf32> to vector<8x128xf32>
    %cst_171 = arith.constant 5.000000e-01 : f32
    %505 = vector.broadcast %cst_171 : f32 to vector<8x128xf32>
    %506 = arith.mulf %505, %504 : vector<8x128xf32>
    %507 = math.tanh %506 : vector<8x128xf32>
    %cst_172 = arith.constant 5.000000e-01 : f32
    %508 = vector.broadcast %cst_172 : f32 to vector<8x128xf32>
    %509 = arith.mulf %508, %507 : vector<8x128xf32>
    %cst_173 = arith.constant 5.000000e-01 : f32
    %510 = vector.broadcast %cst_173 : f32 to vector<8x128xf32>
    %511 = arith.addf %509, %510 : vector<8x128xf32>
    %512 = vector.extract_strided_slice %492 {offsets = [0, 256], sizes = [8, 128], strides = [1, 1]} : vector<8x512xf32> to vector<8x128xf32>
    %513 = math.tanh %512 : vector<8x128xf32>
    %514 = vector.extract_strided_slice %492 {offsets = [0, 384], sizes = [8, 128], strides = [1, 1]} : vector<8x512xf32> to vector<8x128xf32>
    %cst_174 = arith.constant 5.000000e-01 : f32
    %515 = vector.broadcast %cst_174 : f32 to vector<8x128xf32>
    %516 = arith.mulf %515, %514 : vector<8x128xf32>
    %517 = math.tanh %516 : vector<8x128xf32>
    %cst_175 = arith.constant 5.000000e-01 : f32
    %518 = vector.broadcast %cst_175 : f32 to vector<8x128xf32>
    %519 = arith.mulf %518, %517 : vector<8x128xf32>
    %cst_176 = arith.constant 5.000000e-01 : f32
    %520 = vector.broadcast %cst_176 : f32 to vector<8x128xf32>
    %521 = arith.addf %519, %520 : vector<8x128xf32>
    %522 = arith.mulf %511, %447 : vector<8x128xf32>
    %523 = arith.mulf %503, %513 : vector<8x128xf32>
    %524 = arith.addf %522, %523 : vector<8x128xf32>
    %525 = math.tanh %524 : vector<8x128xf32>
    %526 = arith.mulf %521, %525 : vector<8x128xf32>
    %527 = vector.extract_strided_slice %495 {offsets = [0, 0], sizes = [8, 128], strides = [1, 1]} : vector<8x512xf32> to vector<8x128xf32>
    %cst_177 = arith.constant 5.000000e-01 : f32
    %528 = vector.broadcast %cst_177 : f32 to vector<8x128xf32>
    %529 = arith.mulf %528, %527 : vector<8x128xf32>
    %530 = math.tanh %529 : vector<8x128xf32>
    %cst_178 = arith.constant 5.000000e-01 : f32
    %531 = vector.broadcast %cst_178 : f32 to vector<8x128xf32>
    %532 = arith.mulf %531, %530 : vector<8x128xf32>
    %cst_179 = arith.constant 5.000000e-01 : f32
    %533 = vector.broadcast %cst_179 : f32 to vector<8x128xf32>
    %534 = arith.addf %532, %533 : vector<8x128xf32>
    %535 = vector.extract_strided_slice %495 {offsets = [0, 128], sizes = [8, 128], strides = [1, 1]} : vector<8x512xf32> to vector<8x128xf32>
    %cst_180 = arith.constant 5.000000e-01 : f32
    %536 = vector.broadcast %cst_180 : f32 to vector<8x128xf32>
    %537 = arith.mulf %536, %535 : vector<8x128xf32>
    %538 = math.tanh %537 : vector<8x128xf32>
    %cst_181 = arith.constant 5.000000e-01 : f32
    %539 = vector.broadcast %cst_181 : f32 to vector<8x128xf32>
    %540 = arith.mulf %539, %538 : vector<8x128xf32>
    %cst_182 = arith.constant 5.000000e-01 : f32
    %541 = vector.broadcast %cst_182 : f32 to vector<8x128xf32>
    %542 = arith.addf %540, %541 : vector<8x128xf32>
    %543 = vector.extract_strided_slice %495 {offsets = [0, 256], sizes = [8, 128], strides = [1, 1]} : vector<8x512xf32> to vector<8x128xf32>
    %544 = math.tanh %543 : vector<8x128xf32>
    %545 = vector.extract_strided_slice %495 {offsets = [0, 384], sizes = [8, 128], strides = [1, 1]} : vector<8x512xf32> to vector<8x128xf32>
    %cst_183 = arith.constant 5.000000e-01 : f32
    %546 = vector.broadcast %cst_183 : f32 to vector<8x128xf32>
    %547 = arith.mulf %546, %545 : vector<8x128xf32>
    %548 = math.tanh %547 : vector<8x128xf32>
    %cst_184 = arith.constant 5.000000e-01 : f32
    %549 = vector.broadcast %cst_184 : f32 to vector<8x128xf32>
    %550 = arith.mulf %549, %548 : vector<8x128xf32>
    %cst_185 = arith.constant 5.000000e-01 : f32
    %551 = vector.broadcast %cst_185 : f32 to vector<8x128xf32>
    %552 = arith.addf %550, %551 : vector<8x128xf32>
    %553 = arith.mulf %542, %478 : vector<8x128xf32>
    %554 = arith.mulf %534, %544 : vector<8x128xf32>
    %555 = arith.addf %553, %554 : vector<8x128xf32>
    %556 = math.tanh %555 : vector<8x128xf32>
    %557 = arith.mulf %552, %556 : vector<8x128xf32>
    %558 = tpu.concatenate %526, %557 in 1 : vector<8x128xf32>, vector<8x128xf32> -> vector<8x256xf32>
    %559 = arith.index_cast %487 : i32 to index
    %c0_186 = arith.constant 0 : index
    %560 = vector.load %arg16[%559, %c0_186] : memref<64x256xf32, #tpu.memory_space<vmem>>, vector<8x256xf32>
    tpu.vector_store %arg16[%559, %c0_186], %558 {strides = array<i32>} : memref<64x256xf32, #tpu.memory_space<vmem>>, vector<8x256xf32>,
    %561 = arith.truncf %526 : vector<8x128xf32> to vector<8x128xbf16>
    %562 = arith.truncf %557 : vector<8x128xf32> to vector<8x128xbf16>
    %c7_i32 = arith.constant 7 : i32
    %c8_i32_187 = arith.constant 8 : i32
    %563 = arith.muli %c7_i32, %c8_i32_187 : i32
    %564 = tpu.assume_multiple %563, 8 : i32
    %565 = arith.index_cast %564 : i32 to index
    %c0_188 = arith.constant 0 : index
    %566 = vector.load %arg15[%565, %c0_188] : memref<64x1024xf32, #tpu.memory_space<vmem>>, vector<8x1024xf32>
    %567 = vector.extract_strided_slice %566 {offsets = [0, 0], sizes = [8, 512], strides = [1, 1]} : vector<8x1024xf32> to vector<8x512xf32>
    %cst_189 = arith.constant dense<0.000000e+00> : vector<8x512xf32>
    %568 = tpu.matmul %561, %16, %cst_189 {dimension_numbers = #tpu.dot_dimension_numbers<[1], [0], [0], [1], [0, 0, 1, 1], [], []>} : vector<8x128xbf16>, vector<128x512xbf16>, vector<8x512xf32> -> vector<8x512xf32>
    %569 = arith.addf %567, %568 : vector<8x512xf32>
    %570 = vector.extract_strided_slice %566 {offsets = [0, 512], sizes = [8, 512], strides = [1, 1]} : vector<8x1024xf32> to vector<8x512xf32>
    %cst_190 = arith.constant dense<0.000000e+00> : vector<8x512xf32>
    %571 = tpu.matmul %562, %17, %cst_190 {dimension_numbers = #tpu.dot_dimension_numbers<[1], [0], [0], [1], [0, 0, 1, 1], [], []>} : vector<8x128xbf16>, vector<128x512xbf16>, vector<8x512xf32> -> vector<8x512xf32>
    %572 = arith.addf %570, %571 : vector<8x512xf32>
    %573 = vector.extract_strided_slice %569 {offsets = [0, 0], sizes = [8, 128], strides = [1, 1]} : vector<8x512xf32> to vector<8x128xf32>
    %cst_191 = arith.constant 5.000000e-01 : f32
    %574 = vector.broadcast %cst_191 : f32 to vector<8x128xf32>
    %575 = arith.mulf %574, %573 : vector<8x128xf32>
    %576 = math.tanh %575 : vector<8x128xf32>
    %cst_192 = arith.constant 5.000000e-01 : f32
    %577 = vector.broadcast %cst_192 : f32 to vector<8x128xf32>
    %578 = arith.mulf %577, %576 : vector<8x128xf32>
    %cst_193 = arith.constant 5.000000e-01 : f32
    %579 = vector.broadcast %cst_193 : f32 to vector<8x128xf32>
    %580 = arith.addf %578, %579 : vector<8x128xf32>
    %581 = vector.extract_strided_slice %569 {offsets = [0, 128], sizes = [8, 128], strides = [1, 1]} : vector<8x512xf32> to vector<8x128xf32>
    %cst_194 = arith.constant 5.000000e-01 : f32
    %582 = vector.broadcast %cst_194 : f32 to vector<8x128xf32>
    %583 = arith.mulf %582, %581 : vector<8x128xf32>
    %584 = math.tanh %583 : vector<8x128xf32>
    %cst_195 = arith.constant 5.000000e-01 : f32
    %585 = vector.broadcast %cst_195 : f32 to vector<8x128xf32>
    %586 = arith.mulf %585, %584 : vector<8x128xf32>
    %cst_196 = arith.constant 5.000000e-01 : f32
    %587 = vector.broadcast %cst_196 : f32 to vector<8x128xf32>
    %588 = arith.addf %586, %587 : vector<8x128xf32>
    %589 = vector.extract_strided_slice %569 {offsets = [0, 256], sizes = [8, 128], strides = [1, 1]} : vector<8x512xf32> to vector<8x128xf32>
    %590 = math.tanh %589 : vector<8x128xf32>
    %591 = vector.extract_strided_slice %569 {offsets = [0, 384], sizes = [8, 128], strides = [1, 1]} : vector<8x512xf32> to vector<8x128xf32>
    %cst_197 = arith.constant 5.000000e-01 : f32
    %592 = vector.broadcast %cst_197 : f32 to vector<8x128xf32>
    %593 = arith.mulf %592, %591 : vector<8x128xf32>
    %594 = math.tanh %593 : vector<8x128xf32>
    %cst_198 = arith.constant 5.000000e-01 : f32
    %595 = vector.broadcast %cst_198 : f32 to vector<8x128xf32>
    %596 = arith.mulf %595, %594 : vector<8x128xf32>
    %cst_199 = arith.constant 5.000000e-01 : f32
    %597 = vector.broadcast %cst_199 : f32 to vector<8x128xf32>
    %598 = arith.addf %596, %597 : vector<8x128xf32>
    %599 = arith.mulf %588, %524 : vector<8x128xf32>
    %600 = arith.mulf %580, %590 : vector<8x128xf32>
    %601 = arith.addf %599, %600 : vector<8x128xf32>
    %602 = math.tanh %601 : vector<8x128xf32>
    %603 = arith.mulf %598, %602 : vector<8x128xf32>
    %604 = vector.extract_strided_slice %572 {offsets = [0, 0], sizes = [8, 128], strides = [1, 1]} : vector<8x512xf32> to vector<8x128xf32>
    %cst_200 = arith.constant 5.000000e-01 : f32
    %605 = vector.broadcast %cst_200 : f32 to vector<8x128xf32>
    %606 = arith.mulf %605, %604 : vector<8x128xf32>
    %607 = math.tanh %606 : vector<8x128xf32>
    %cst_201 = arith.constant 5.000000e-01 : f32
    %608 = vector.broadcast %cst_201 : f32 to vector<8x128xf32>
    %609 = arith.mulf %608, %607 : vector<8x128xf32>
    %cst_202 = arith.constant 5.000000e-01 : f32
    %610 = vector.broadcast %cst_202 : f32 to vector<8x128xf32>
    %611 = arith.addf %609, %610 : vector<8x128xf32>
    %612 = vector.extract_strided_slice %572 {offsets = [0, 128], sizes = [8, 128], strides = [1, 1]} : vector<8x512xf32> to vector<8x128xf32>
    %cst_203 = arith.constant 5.000000e-01 : f32
    %613 = vector.broadcast %cst_203 : f32 to vector<8x128xf32>
    %614 = arith.mulf %613, %612 : vector<8x128xf32>
    %615 = math.tanh %614 : vector<8x128xf32>
    %cst_204 = arith.constant 5.000000e-01 : f32
    %616 = vector.broadcast %cst_204 : f32 to vector<8x128xf32>
    %617 = arith.mulf %616, %615 : vector<8x128xf32>
    %cst_205 = arith.constant 5.000000e-01 : f32
    %618 = vector.broadcast %cst_205 : f32 to vector<8x128xf32>
    %619 = arith.addf %617, %618 : vector<8x128xf32>
    %620 = vector.extract_strided_slice %572 {offsets = [0, 256], sizes = [8, 128], strides = [1, 1]} : vector<8x512xf32> to vector<8x128xf32>
    %621 = math.tanh %620 : vector<8x128xf32>
    %622 = vector.extract_strided_slice %572 {offsets = [0, 384], sizes = [8, 128], strides = [1, 1]} : vector<8x512xf32> to vector<8x128xf32>
    %cst_206 = arith.constant 5.000000e-01 : f32
    %623 = vector.broadcast %cst_206 : f32 to vector<8x128xf32>
    %624 = arith.mulf %623, %622 : vector<8x128xf32>
    %625 = math.tanh %624 : vector<8x128xf32>
    %cst_207 = arith.constant 5.000000e-01 : f32
    %626 = vector.broadcast %cst_207 : f32 to vector<8x128xf32>
    %627 = arith.mulf %626, %625 : vector<8x128xf32>
    %cst_208 = arith.constant 5.000000e-01 : f32
    %628 = vector.broadcast %cst_208 : f32 to vector<8x128xf32>
    %629 = arith.addf %627, %628 : vector<8x128xf32>
    %630 = arith.mulf %619, %555 : vector<8x128xf32>
    %631 = arith.mulf %611, %621 : vector<8x128xf32>
    %632 = arith.addf %630, %631 : vector<8x128xf32>
    %633 = math.tanh %632 : vector<8x128xf32>
    %634 = arith.mulf %629, %633 : vector<8x128xf32>
    %635 = tpu.concatenate %603, %634 in 1 : vector<8x128xf32>, vector<8x128xf32> -> vector<8x256xf32>
    %636 = arith.index_cast %564 : i32 to index
    %c0_209 = arith.constant 0 : index
    %637 = vector.load %arg16[%636, %c0_209] : memref<64x256xf32, #tpu.memory_space<vmem>>, vector<8x256xf32>
    tpu.vector_store %arg16[%636, %c0_209], %635 {strides = array<i32>} : memref<64x256xf32, #tpu.memory_space<vmem>>, vector<8x256xf32>,
    %638 = arith.truncf %603 : vector<8x128xf32> to vector<8x128xbf16>
    %639 = arith.truncf %634 : vector<8x128xf32> to vector<8x128xbf16>
    %c8_i32_210 = arith.constant 8 : i32
    %c0_211 = arith.constant 0 : index
    %c0_212 = arith.constant 0 : index
    %640 = vector.load %arg16[%c0_211, %c0_212] : memref<64x256xf32, #tpu.memory_space<vmem>>, vector<64x256xf32>
    %641 = arith.truncf %640 : vector<64x256xf32> to vector<64x256xbf16>
    %c0_213 = arith.constant 0 : index
    %c0_214 = arith.constant 0 : index
    %642 = vector.load %arg12[%c0_213, %c0_214] : memref<256x4xbf16, #tpu.memory_space<vmem>>, vector<256x4xbf16>
    %cst_215 = arith.constant dense<0.000000e+00> : vector<64x4xf32>
    %643 = tpu.matmul %641, %642, %cst_215 {dimension_numbers = #tpu.dot_dimension_numbers<[1], [0], [0], [1], [0, 0, 1, 1], [], []>} : vector<64x256xbf16>, vector<256x4xbf16>, vector<64x4xf32> -> vector<64x4xf32>
    %c0_216 = arith.constant 0 : index
    %c0_217 = arith.constant 0 : index
    %644 = vector.load %arg13[%c0_216, %c0_217] : memref<1x4xf32, #tpu.memory_space<vmem>>, vector<1x4xf32>
    %645 = vector.broadcast %644 : vector<1x4xf32> to vector<64x4xf32>
    %646 = arith.addf %643, %645 : vector<64x4xf32>
    %647 = vector.extract_strided_slice %646 {offsets = [0, 0], sizes = [64, 2], strides = [1, 1]} : vector<64x4xf32> to vector<64x2xf32>
    %cst_218 = arith.constant dense<0xFF800000> : vector<64xf32>
    %648 = vector.multi_reduction <maximumf>, %647, %cst_218 [1] : vector<64x2xf32> to vector<64xf32>
    %649 = vector.shape_cast %648 : vector<64xf32> to vector<64x1xf32>
    %650 = vector.broadcast %649 : vector<64x1xf32> to vector<64x2xf32>
    %651 = arith.subf %647, %650 : vector<64x2xf32>
    %652 = math.exp %651 : vector<64x2xf32>
    %cst_219 = arith.constant dense<0.000000e+00> : vector<64xf32>
    %653 = vector.multi_reduction <add>, %652, %cst_219 [1] : vector<64x2xf32> to vector<64xf32>
    %654 = vector.shape_cast %653 : vector<64xf32> to vector<64x1xf32>
    %655 = math.log %654 : vector<64x1xf32>
    %656 = arith.addf %649, %655 : vector<64x1xf32>
    %657 = vector.broadcast %656 : vector<64x1xf32> to vector<64x2xf32>
    %658 = arith.subf %647, %657 : vector<64x2xf32>
    %659 = vector.extract_strided_slice %646 {offsets = [0, 2], sizes = [64, 2], strides = [1, 1]} : vector<64x4xf32> to vector<64x2xf32>
    %cst_220 = arith.constant dense<0xFF800000> : vector<64xf32>
    %660 = vector.multi_reduction <maximumf>, %659, %cst_220 [1] : vector<64x2xf32> to vector<64xf32>
    %661 = vector.shape_cast %660 : vector<64xf32> to vector<64x1xf32>
    %662 = vector.broadcast %661 : vector<64x1xf32> to vector<64x2xf32>
    %663 = arith.subf %659, %662 : vector<64x2xf32>
    %664 = math.exp %663 : vector<64x2xf32>
    %cst_221 = arith.constant dense<0.000000e+00> : vector<64xf32>
    %665 = vector.multi_reduction <add>, %664, %cst_221 [1] : vector<64x2xf32> to vector<64xf32>
    %666 = vector.shape_cast %665 : vector<64xf32> to vector<64x1xf32>
    %667 = math.log %666 : vector<64x1xf32>
    %668 = arith.addf %661, %667 : vector<64x1xf32>
    %669 = vector.broadcast %668 : vector<64x1xf32> to vector<64x2xf32>
    %670 = arith.subf %659, %669 : vector<64x2xf32>
    %671 = tpu.concatenate %658, %670 in 1 : vector<64x2xf32>, vector<64x2xf32> -> vector<64x4xf32>
    %c0_222 = arith.constant 0 : index
    %c0_223 = arith.constant 0 : index
    %672 = vector.load %arg14[%c0_222, %c0_223] : memref<64x4xf32, #tpu.memory_space<vmem>>, vector<64x4xf32>
    tpu.vector_store %arg14[%c0_222, %c0_223], %671 {strides = array<i32>} : memref<64x4xf32, #tpu.memory_space<vmem>>, vector<64x4xf32>,
    return
  }
}

</mosaic_0001>

<bundles_post_ra>
// kernel: multi_input_rnn_forward.1
= control target key start
LH: loop header
LB: loop body
LE: loop exit
PB: predicated region body
PF: predicated region fallthrough
CT: control target
= control target key end

     0   :  { %19 = vsyncpa [#allocation5], 0  ;;  %s6009_s0 = inlined_call_operand.vmem [shape: f32[64,13], index: 0, kind: input, shape index: {}]   ;;  %s6010_s1 = inlined_call_operand.vmem [shape: f32[64,23], index: 1, kind: input, shape index: {}]   ;;  %s6011_s2 = inlined_call_operand.hbm [shape: bf16[13,512], index: 2, kind: input, shape index: {}]   ;;  %s6012_s3 = inlined_call_operand.vmem [shape: bf16[23,512], index: 3, kind: input, shape index: {}]   ;;  %s6013_s4 = inlined_call_operand.vmem [shape: bf16[128,512], index: 4, kind: input, shape index: {}]   ;;  %s6014_s5 = inlined_call_operand.hbm [shape: bf16[128,512], index: 5, kind: input, shape index: {}]   ;;  %s6015_s6 = inlined_call_operand.vmem [shape: f32[1,512], index: 6, kind: input, shape index: {}]   ;;  %s6016_s7 = inlined_call_operand.vmem [shape: f32[1,512], index: 7, kind: input, shape index: {}]   ;;  %s6017_s8 = inlined_call_operand.vmem [shape: f32[8,128], index: 8, kind: input, shape index: {}]   ;;  %s6018_s9 = inlined_call_operand.vmem [shape: f32[8,128], index: 9, kind: input, shape index: {}]   ;;  %s6019_s10 = inlined_call_operand.vmem [shape: f32[8,128], index: 10, kind: input, shape index: {}]   ;;  %s6020_s11 = inlined_call_operand.vmem [shape: f32[8,128], index: 11, kind: input, shape index: {}]   ;;  %s6021_s12 = inlined_call_operand.vmem [shape: bf16[256,4], index: 12, kind: input, shape index: {}]   ;;  %s6022_s13 = inlined_call_operand.vmem [shape: f32[1,4], index: 13, kind: input, shape index: {}]   ;;  %s6023_s14 = inlined_call_operand.vmem [shape: f32[64,4], index: 14, kind: output, shape index: {}]  }
   0x1   :  { %20 = vsyncpa [#allocation7], 0  ;;  %s3981_s29 = smov [#allocation4]  }
   0x2   :  { %s30_s30 = sshll.u32 %s3981_s29, 4  ;;  %s31_s30 = int_to_ptr.vmem [resolvable:$true] %s30_s30 }
   0x3   :  { %s3945_s15 = scalar_lea.vmem %s31_s30, 512  ;;  %p3950_p1 = scmp.lt.s32.totalorder %s31_s30, %s31_s30 }
   0x4   :  { %p3946_p0 = scmp.ne.s32.totalorder %s31_s30, %s3945_s15  ;;  %p3951_p2 = scmp.lt.s32.totalorder %s3945_s15, %s3945_s15 }
   0x6   :  { %p3952_p3 = por %p3951_p2, %p3950_p1 }
   0x8   :  { %p3953_p4 = pnand %p3952_p3, %p3946_p0 }
   0xa   :  { %3956 = shalt.err (!%p3953_p4)
}
   0xb   :  { %s3982_s16 = smov 256   ;;  %s3983_s17 = smov 16  }
   0xc   :  { %36 = dma.hbm_to_vmem [thread:$0]  %s6011_s2, 512, %s31_s30, [#allocation5], %s3982_s16, %s3982_s16, %s3983_s17  }
   0xd   :  { %s3984_s20 = smov [#allocation6]  }
   0xe   :  { %s46_s21 = sshll.u32 %s3984_s20, 4  ;;  %s47_s21 = int_to_ptr.vmem [resolvable:$true] %s46_s21 }
   0xf   :  { %s3965_s22 = scalar_lea.vmem %s47_s21, 4096  ;;  %p3970_p6 = scmp.lt.s32.totalorder %s47_s21, %s47_s21 }
  0x10   :  { %p3966_p5 = scmp.ne.s32.totalorder %s47_s21, %s3965_s22  ;;  %p3971_p7 = scmp.lt.s32.totalorder %s3965_s22, %s3965_s22 }
  0x12   :  { %p3972_p8 = por %p3971_p7, %p3970_p6 }
  0x14   :  { %p3973_p9 = pnand %p3972_p8, %p3966_p5 }
  0x16   :  { %3976 = shalt.err (!%p3973_p9)
}
  0x17   :  { %52 = dma.hbm_to_vmem [thread:$0]  %s6014_s5, 4096, %s47_s21, [#allocation7], %s3982_s16, %s3982_s16, %s3983_s17  }
  0x18   :  { %3977 = dma.done.wait [#allocation5], 512  }
  0x19   :  { %3978 = vsyncadd [#allocation5], 4294966784 }
  0x1a   :  { %3979 = dma.done.wait [#allocation7], 4096  }
  0x1b   :  { %3980 = vsyncadd [#allocation7], 4294963200  ;;  %vm143_vm0 = vcmask 1045504   ;;  %vm420_vm1 = vcmask 1042432   ;;  %v6024_v0 = vmov 0   ;;  %vm144_vm2 = vcmask 1046528  }
  0x1c   :  { %191 = vmatprep.mubr.bf16.mxu1 %v6024_v0  ;;  %468 = vmatprep.mubr.bf16.mxu0 %v6024_v0  ;;  %v3986_v1 = vmov 65535   ;;  %vm421_vm3 = vcmask 1043456   ;;  %v3469_v5 = vld [vmem:[#allocation4 + $0x4] ss:$16 sps:$4 sm:$0x7f]   ;;  %v77_v13 = vld [vmem:[%s6009_s0 + $0x8] sm:$0xff] }
  0x1d   :  { %v145_v2 = vsel %vm143_vm0, 4294967295, %v3986_v1  ;;  %v422_v3 = vsel %vm420_vm1, 4294967295, %v3986_v1  ;;  %v353_v6 = vld [vmem:[%s6012_s3 + $0x20] sm:$0xff]  ;;  %v3474_v15 = vld [vmem:[#allocation4 + $0x8] ss:$16 sps:$4 sm:$0x7f]  }
  0x1e   :  { %v146_v4 = vsel %vm144_vm2, %v145_v2, 0  ;;  %v4074_v7 = vsel %vm421_vm3, %v422_v3, 0  ;;  %v3472_v8 = vld [vmem:[#allocation4] ss:$16 sps:$4 sm:$0x7f]   ;;  %v3330_v11 = vcombine.high %v353_v6, %v353_v6  ;;  %v3329_v12 = vcombine.low %v353_v6, %v353_v6  ;;  %v338_v25 = vld [vmem:[%s6010_s1 + $0x8] sm:$0xff] }
  0x1f   :  { %v76_v9 = vld [vmem:[%s6009_s0] sm:$0xff]  ;;  %v151_v10 = vand.u32 %v3469_v5, %v146_v4  ;;  %v148_v14 = vand.u32 %v3472_v8, %v146_v4  ;;  %v3476_v16 = vld [vmem:[#allocation4 + $0xc] ss:$16 sps:$4 sm:$0x7f]   ;;  %vm130_vm4 = vcmask 105472   ;;  %v154_v22 = vand.u32 %v3474_v15, %v146_v4  ;;  %v78_v27 = vld [vmem:[%s6009_s0 + $0x10] sm:$0xff] }
  0x20   :  { %v428_v17 = vand.u32 %v3330_v11, %v4074_v7  ;;  %v425_v18 = vand.u32 %v3329_v12, %v4074_v7  ;;  %v4084_v19 = vpack.c.bf16 %v77_v13, %v76_v9  ;;  %v3477_v20 = vld [vmem:[%s6012_s3 + $0x4] ss:$16 sps:$4 sm:$0xff]   ;;  %v157_v21 = vand.u32 %v3476_v16, %v146_v4  ;;  %v3479_v23 = vld [vmem:[%s6012_s3] ss:$16 sps:$4 sm:$0xff]   ;;  %v79_v28 = vld [vmem:[%s6009_s0 + $0x18] sm:$0xff] }
  0x21   :  { %173 = vmatprep.subr.bf16.mxu1 %v151_v10  ;;  %v337_v24 = vld [vmem:[%s6010_s1] sm:$0xff]  ;;  %vm407_vm5 = vcmask 187392   ;;  %v4120_v31 = vpack.c.bf16 %v79_v28, %v78_v27  ;;  %v339_v34 = vld [vmem:[%s6010_s1 + $0x10] sm:$0xff]  ;;  %v340_v35 = vld [vmem:[%s6010_s1 + $0x18] sm:$0xff]  ;;  %vm3139_vm6 = vcmask 31760   ;;  %vm3034_vm7 = vcmask 15360  }
  0x22   :  { %174 = vmatpush1.bf16.msra.mxu1 %v148_v14  ;;  %448 = vmatprep.subr.bf16.mxu0 %v428_v17  ;;  %v4103_v26 = vld [vmem:[%s6013_s4 + $0xe4] ss:$16 sps:$4 sm:$0xff]   ;;  %v4112_v29 = vpack.c.bf16 %v338_v25, %v337_v24  ;;  %v4117_v30 = vld [vmem:[%s6013_s4 + $0xe0] ss:$16 sps:$4 sm:$0xff]   ;;  %v81_v38 = vld [vmem:[%s6009_s0 + $0x28] sm:$0xff]  ;;  %v4157_v39 = vpack.c.bf16 %v340_v35, %v339_v34  ;;  %vm3284_vm8 = vcmask 31744  }
  0x23   :  { %449 = vmatpush1.bf16.msra.mxu0 %v425_v18  ;;  %246 = vmatprep.subr.bf16.mxu1 %v157_v21  ;;  %v4125_v32 = vld [vmem:[%s6013_s4 + $0xc4] ss:$16 sps:$4 sm:$0xff]   ;;  %v4133_v33 = vld [vmem:[%s6013_s4 + $0xc0] ss:$16 sps:$4 sm:$0xff]   ;;  %v354_v41 = vld [vmem:[%s6012_s3 + $0x28] sm:$0xff] }
  0x24   :  { %450 = vmatprep.subr.bf16.mxu0 %v3477_v20  ;;  %v4148_v36 = vld [vmem:[%s6013_s4 + $0xa4] ss:$16 sps:$4 sm:$0xff]   ;;  %v4163_v40 = vld [vmem:[%s6013_s4 + $0xa0] ss:$16 sps:$4 sm:$0xff]   ;;  %v3332_v44 = vcombine.high %v354_v41, %v354_v41  ;;  %v342_v48 = vld [vmem:[%s6010_s1 + $0x28] sm:$0xff]  ;;  %v3331_v60 = vcombine.low %v354_v41, %v354_v41 }
  0x25   :  { %3317 = vmatmul.mubr.msk.bf16.vlgmr.msra.gmra.mxu1 %vm130_vm4, %v4084_v19  ;;  %v80_v37 = vld [vmem:[%s6009_s0 + $0x20] sm:$0xff]  ;;  %v82_v50 = vld [vmem:[%s6009_s0 + $0x30] sm:$0xff]  ;;  %v83_v51 = vld [vmem:[%s6009_s0 + $0x38] sm:$0xff] }
  0x26   :  { %247 = vmatpush1.bf16.msra.mxu1 %v154_v22  ;;  %201 = vmatprep.mubr.bf16.mxu1 %v6024_v0  ;;  %v4169_v42 = vpack.c.bf16 %v81_v38, %v80_v37  ;;  %v4174_v43 = vld [vmem:[%s6013_s4 + $0x84] ss:$16 sps:$4 sm:$0xff]   ;;  %v4181_v45 = vld [vmem:[%s6013_s4 + $0x80] ss:$16 sps:$4 sm:$0xff]   ;;  %v434_v47 = vand.u32 %v3332_v44, %v4074_v7  ;;  %v4216_v54 = vpack.c.bf16 %v83_v51, %v82_v50  ;;  %v344_v58 = vld [vmem:[%s6010_s1 + $0x38] sm:$0xff] }
  0x27   :  { %451 = vmatpush1.bf16.msra.mxu0 %v3479_v23  ;;  %v341_v46 = vld [vmem:[%s6010_s1 + $0x20] sm:$0xff]  ;;  %v343_v57 = vld [vmem:[%s6010_s1 + $0x30] sm:$0xff]  ;;  %v431_v1 = vand.u32 %v3331_v60, %v4074_v7  ;;  %v3517_v3 = vld [vmem:[%s6012_s3 + $0xc] ss:$16 sps:$4 sm:$0xff]  }
  0x28   :  { %855 = vmatprep.subr.bf16.mxu0 %v4103_v26  ;;  %v4195_v49 = vld [vmem:[%s6013_s4 + $0x64] ss:$16 sps:$4 sm:$0xff]   ;;  %521 = vmatprep.subr.bf16.mxu1 %v434_v47  ;;  %v4207_v52 = vpack.c.bf16 %v342_v48, %v341_v46  ;;  %v4213_v53 = vld [vmem:[%s6013_s4 + $0x60] ss:$16 sps:$4 sm:$0xff]   ;;  %v4247_v61 = vpack.c.bf16 %v344_v58, %v343_v57  ;;  %v3515_v6 = vld [vmem:[%s6012_s3 + $0x8] ss:$16 sps:$4 sm:$0xff]   ;;  %v94_v57 = vlaneseq }
  0x29   :  { %v4221_v55 = vld [vmem:[%s6013_s4 + $0x44] ss:$16 sps:$4 sm:$0xff]   ;;  %v4228_v56 = vld [vmem:[%s6013_s4 + $0x40] ss:$16 sps:$4 sm:$0xff]   ;;  %v4291_v8 = vld [vmem:[%s6013_s4 + $0xec] ss:$16 sps:$4 sm:$0xff]  }
  0x2a   :  { %3333 = vmatmul.mubr.msk.bf16.vlgmr.msra.gmra.mxu0 %vm407_vm5, %v4112_v29  ;;  %v4244_v59 = vld [vmem:[%s6013_s4 + $0x24] ss:$16 sps:$4 sm:$0xff]   ;;  %v4253_v62 = vld [vmem:[%s6013_s4 + $0x20] ss:$16 sps:$4 sm:$0xff]   ;;  %v4350_v23 = vld [vmem:[%s6013_s4 + $0xe8] ss:$16 sps:$4 sm:$0xff]  }
  0x2b   :  { %856 = vmatpush1.bf16.msra.mxu0 %v4117_v30  ;;  %478 = vmatprep.mubr.bf16.mxu0 %v6024_v0  ;;  %v4259_v63 = vld [vmem:[%s6013_s4 + $0x4] ss:$16 sps:$4 sm:$0xff]   ;;  %v4267_v2 = vld [vmem:[%s6013_s4] ss:$16 sps:$4 sm:$0xff]   ;;  %v4355_v24 = vld [vmem:[%s6013_s4 + $0xcc] ss:$16 sps:$4 sm:$0xff]  }
  0x2c   :  { %857 = vmatprep.subr.bf16.mxu0 %v4125_v32  ;;  %6106 = vst [vmem:[#allocation10_spill] sm:$0xff] %v4267_v2  ;;  %v678_v4 = vld [vmem:[%s6017_s8] sm:$0xff]  ;;  %6108 = vst [vmem:[#allocation12_spill] sm:$0xff] %v4355_v24  ;;  %v4370_v28 = vld [vmem:[%s6013_s4 + $0xc8] ss:$16 sps:$4 sm:$0xff]   ;;  %v4547_v58 = vshrl.u32 %v94_v57, 7 }
  0x2d   :  { %3318 = vmatmul.mubr.msk.bf16.gmra.mxu1 %vm130_vm4, %v4120_v31  ;;  %v4280_v5 = vld [vmem:[#allocation6 + $0xe4] ss:$16 sps:$4 sm:$0xff]   ;;  %v4286_v7 = vpack.c.bf16 %v678_v4, %v678_v4  ;;  %v4294_v9 = vld [vmem:[#allocation6 + $0xe0] ss:$16 sps:$4 sm:$0xff]   ;;  %6109 = vst [vmem:[#allocation13_spill] sm:$0xff] %v4370_v28 }
  0x2e   :  { %211 = vmatprep.mubr.bf16.mxu1 %v6024_v0  ;;  %6107 = vst [vmem:[#allocation11_spill] sm:$0xff] %v4280_v5  ;;  %v4297_v10 = vld [vmem:[#allocation6 + $0xc4] ss:$16 sps:$4 sm:$0xff]   ;;  %v4302_v11 = vld [vmem:[#allocation6 + $0xc0] ss:$16 sps:$4 sm:$0xff]  }
  0x2f   :  { %858 = vmatpush1.bf16.msra.mxu0 %v4133_v33  ;;  %v4308_v12 = vld [vmem:[#allocation6 + $0xa4] ss:$16 sps:$4 sm:$0xff]   ;;  %v4312_v13 = vld [vmem:[#allocation6 + $0xa0] ss:$16 sps:$4 sm:$0xff]   ;;  %v4379_v34 = vld [vmem:[%s6013_s4 + $0xac] ss:$16 sps:$4 sm:$0xff]  }
  0x30   :  { %859 = vmatprep.subr.bf16.mxu0 %v4148_v36  ;;  %v4315_v14 = vld [vmem:[#allocation6 + $0x84] ss:$16 sps:$4 sm:$0xff]   ;;  %v4317_v15 = vld [vmem:[#allocation6 + $0x80] ss:$16 sps:$4 sm:$0xff]   ;;  %6110 = vst [vmem:[#allocation14_spill] sm:$0xff] %v4379_v34 }
  0x31   :  { %v4320_v16 = vld [vmem:[#allocation6 + $0x64] ss:$16 sps:$4 sm:$0xff]   ;;  %v4325_v17 = vld [vmem:[#allocation6 + $0x60] ss:$16 sps:$4 sm:$0xff]   ;;  %v4394_v35 = vld [vmem:[%s6013_s4 + $0x8c] ss:$16 sps:$4 sm:$0xff]  }
  0x32   :  { %3334 = vmatmul.mubr.msk.bf16.gmra.mxu0 %vm407_vm5, %v4157_v39  ;;  %v4328_v18 = vld [vmem:[#allocation6 + $0x44] ss:$16 sps:$4 sm:$0xff]   ;;  %v4342_v21 = vld [vmem:[#allocation6 + $0x20] ss:$16 sps:$4 sm:$0xff]   ;;  %6112 = vst [vmem:[#allocation16_spill] sm:$0xff] %v4394_v35 }
  0x33   :  { %860 = vmatpush1.bf16.msra.mxu0 %v4163_v40  ;;  %488 = vmatprep.mubr.bf16.mxu0 %v6024_v0  ;;  %v4334_v20 = vld [vmem:[#allocation6 + $0x24] ss:$16 sps:$4 sm:$0xff]   ;;  %v4358_v25 = vld [vmem:[#allocation6] ss:$16 sps:$4 sm:$0xff]   ;;  %v4426_v37 = vld [vmem:[%s6013_s4 + $0x4c] ss:$16 sps:$4 sm:$0xff]  }
  0x34   :  { %861 = vmatprep.subr.bf16.mxu0 %v4174_v43  ;;  %v4345_v22 = vld [vmem:[#allocation6 + $0x4] ss:$16 sps:$4 sm:$0xff]   ;;  %6116 = vst [vmem:[#allocation20_spill] sm:$0xff] %v4426_v37  ;;  %v4451_v38 = vld [vmem:[%s6013_s4 + $0x28] ss:$16 sps:$4 sm:$0xff]  }
  0x35   :  { %3319 = vmatmul.mubr.msk.bf16.gmra.mxu1 %vm130_vm4, %v4169_v42  ;;  %v680_v27 = vld [vmem:[%s6018_s9] sm:$0xff]  ;;  %6119 = vst [vmem:[#allocation23_spill] sm:$0xff] %v4451_v38  ;;  %v4471_v41 = vld [vmem:[#allocation6 + $0xec] ss:$16 sps:$4 sm:$0xff]   ;;  %v4485_v44 = vld [vmem:[#allocation6 + $0xc8] ss:$16 sps:$4 sm:$0xff]  }
  0x36   :  { %221 = vmatprep.mubr.bf16.mxu1 %v6024_v0  ;;  %6122 = vst [vmem:[#allocation26_spill] sm:$0xff] %v4471_v41  ;;  %v4494_v46 = vld [vmem:[#allocation6 + $0xa8] ss:$16 sps:$4 sm:$0xff]   ;;  %v4497_v47 = vld [vmem:[#allocation6 + $0x8c] ss:$16 sps:$4 sm:$0xff]  }
  0x37   :  { %862 = vmatpush1.bf16.msra.mxu0 %v4181_v45  ;;  %v4500_v48 = vld [vmem:[#allocation6 + $0x88] ss:$16 sps:$4 sm:$0xff]   ;;  %v4509_v51 = vld [vmem:[#allocation6 + $0x4c] ss:$16 sps:$4 sm:$0xff]   ;;  %v4553_v60 = vld [vmem:[%s6015_s6] sm:$0xf] }
  0x38   :  { %863 = vmatprep.subr.bf16.mxu0 %v4195_v49  ;;  %v4506_v50 = vld [vmem:[#allocation6 + $0x68] ss:$16 sps:$4 sm:$0xff]   ;;  %v4566_v4 = vld [vmem:[%s6016_s7] sm:$0xf] }
  0x3a   :  { %3335 = vmatmul.mubr.msk.bf16.gmra.mxu0 %vm407_vm5, %v4207_v52 }
  0x3b   :  { %864 = vmatpush1.bf16.msra.mxu0 %v4213_v53  ;;  %498 = vmatprep.mubr.bf16.mxu0 %v6024_v0 }
  0x3c   :  { %865 = vmatprep.subr.bf16.mxu0 %v4221_v55 }
  0x3d   :  { %3320 = vmatmul.mubr.msk.bf16.gmra.mxu1 %vm130_vm4, %v4216_v54 }
  0x3e   :  { %264 = vmatprep.mubr.bf16.mxu1 %v6024_v0 }
  0x3f   :  { %866 = vmatpush1.bf16.msra.mxu0 %v4228_v56 }
  0x40   :  { %867 = vmatprep.subr.bf16.mxu0 %v4244_v59 }
  0x42   :  { %3336 = vmatmul.mubr.msk.bf16.gmra.mxu0 %vm407_vm5, %v4247_v61 }
  0x43   :  { %868 = vmatpush1.bf16.msra.mxu0 %v4253_v62  ;;  %887 = vmatprep.mubr.bf16.mxu0 %v6024_v0 }
  0x44   :  { %869 = vmatprep.subr.bf16.mxu0 %v4259_v63 }
  0x45   :  { %3321 = vmatmul.mubr.msk.bf16.vlgmr.msra.gmra.mxu1 %vm130_vm4, %v4084_v19  ;;  %v4332_v19 = vld [vmem:[#allocation6 + $0x40] ss:$16 sps:$4 sm:$0xff]  }
  0x46   :  { %522 = vmatpush1.bf16.msra.mxu1 %v431_v1  ;;  %274 = vmatprep.mubr.bf16.mxu1 %v6024_v0 }
  0x47   :  { %523 = vmatprep.subr.bf16.mxu1 %v3517_v3  ;;  %870 = vmatpush1.bf16.msra.mxu0 %v4267_v2 }
  0x48   :  { %1101 = vmatprep.subr.bf16.mxu0 %v4280_v5 }
  0x4a   :  { %524 = vmatpush1.bf16.msra.mxu1 %v3515_v6  ;;  %888 = vmatmul.mubr.bf16.vlgmr.msra.gmra.mxu0 %v4286_v7 }
  0x4b   :  { %896 = vmatprep.subr.bf16.mxu1 %v4291_v8  ;;  %1102 = vmatpush1.bf16.msra.mxu0 %v4294_v9 }
  0x4c   :  { %1133 = vmatprep.mubr.bf16.mxu0 %v6024_v0  ;;  %1103 = vmatprep.subr.bf16.mxu0 %v4297_v10 }
  0x4d   :  { %3322 = vmatmul.mubr.msk.bf16.gmra.mxu1 %vm130_vm4, %v4120_v31  ;;  %v4374_v31 = vpack.c.bf16 %v680_v27, %v680_v27 }
  0x4e   :  { %284 = vmatprep.mubr.bf16.mxu1 %v6024_v0 }
  0x4f   :  { %1104 = vmatpush1.bf16.msra.mxu0 %v4302_v11 }
  0x50   :  { %1105 = vmatprep.subr.bf16.mxu0 %v4308_v12 }
  0x53   :  { %1106 = vmatpush1.bf16.msra.mxu0 %v4312_v13 }
  0x54   :  { %1107 = vmatprep.subr.bf16.mxu0 %v4315_v14 }
  0x55   :  { %3323 = vmatmul.mubr.msk.bf16.gmra.mxu1 %vm130_vm4, %v4169_v42  ;;  %v4476_v42 = vld [vmem:[#allocation6 + $0xe8] ss:$16 sps:$4 sm:$0xff]  }
  0x56   :  { %294 = vmatprep.mubr.bf16.mxu1 %v6024_v0 }
  0x57   :  { %1108 = vmatpush1.bf16.msra.mxu0 %v4317_v15 }
  0x58   :  { %1109 = vmatprep.subr.bf16.mxu0 %v4320_v16 }
  0x5b   :  { %1110 = vmatpush1.bf16.msra.mxu0 %v4325_v17 }
  0x5c   :  { %1111 = vmatprep.subr.bf16.mxu0 %v4328_v18 }
  0x5d   :  { %3324 = vmatmul.mubr.msk.bf16.gmra.mxu1 %vm130_vm4, %v4216_v54  ;;  %v4518_v54 = vld [vmem:[#allocation6 + $0x28] ss:$16 sps:$4 sm:$0xff]  }
  0x5e   :  { %541 = vmatprep.mubr.bf16.mxu1 %v6024_v0 }
  0x5f   :  { %1112 = vmatpush1.bf16.msra.mxu0 %v4332_v19 }
  0x60   :  { %1113 = vmatprep.subr.bf16.mxu0 %v4334_v20 }
  0x63   :  { %1114 = vmatpush1.bf16.msra.mxu0 %v4342_v21 }
  0x64   :  { %1115 = vmatprep.subr.bf16.mxu0 %v4345_v22 }
  0x65   :  { %3337 = vmatmul.mubr.msk.bf16.vlgmr.msra.gmra.mxu1 %vm407_vm5, %v4112_v29  ;;  %v4387_v29 = vld [vmem:[%s6013_s4 + $0xa8] ss:$16 sps:$4 sm:$0xff]  }
  0x66   :  { %897 = vmatpush1.bf16.msra.mxu1 %v4350_v23  ;;  %551 = vmatprep.mubr.bf16.mxu1 %v6024_v0  ;;  %6111 = vst [vmem:[#allocation15_spill] sm:$0xff] %v4387_v29 }
  0x67   :  { %898 = vmatprep.subr.bf16.mxu1 %v4355_v24  ;;  %1116 = vmatpush1.bf16.msra.mxu0 %v4358_v25 }
  0x68   :  { %1241 = vmatprep.subr.bf16.mxu0 %v4103_v26  ;;  %v4405_v26 = vld [vmem:[%s6013_s4 + $0x88] ss:$16 sps:$4 sm:$0xff]  }
  0x69   :  { %6113 = vst [vmem:[#allocation17_spill] sm:$0xff] %v4405_v26 }
  0x6a   :  { %899 = vmatpush1.bf16.msra.mxu1 %v4370_v28  ;;  %1134 = vmatmul.mubr.bf16.vlgmr.msra.gmra.mxu0 %v4374_v31 }
  0x6b   :  { %900 = vmatprep.subr.bf16.mxu1 %v4379_v34  ;;  %1242 = vmatpush1.bf16.msra.mxu0 %v4117_v30  ;;  %v4412_v30 = vld [vmem:[%s6013_s4 + $0x6c] ss:$16 sps:$4 sm:$0xff]  }
  0x6c   :  { %1273 = vmatprep.mubr.bf16.mxu0 %v6024_v0  ;;  %1243 = vmatprep.subr.bf16.mxu0 %v4125_v32  ;;  %6114 = vst [vmem:[#allocation18_spill] sm:$0xff] %v4412_v30  ;;  %v4420_v32 = vld [vmem:[%s6013_s4 + $0x68] ss:$16 sps:$4 sm:$0xff]  }
  0x6d   :  { %3338 = vmatmul.mubr.msk.bf16.gmra.mxu1 %vm407_vm5, %v4157_v39  ;;  %6115 = vst [vmem:[#allocation19_spill] sm:$0xff] %v4420_v32  ;;  %v4457_v39 = vld [vmem:[%s6013_s4 + $0xc] ss:$16 sps:$4 sm:$0xff]  }
  0x6e   :  { %901 = vmatpush1.bf16.msra.mxu1 %v4387_v29  ;;  %561 = vmatprep.mubr.bf16.mxu1 %v6024_v0  ;;  %6120 = vst [vmem:[#allocation24_spill] sm:$0xff] %v4457_v39 }
  0x6f   :  { %902 = vmatprep.subr.bf16.mxu1 %v4394_v35  ;;  %1244 = vmatpush1.bf16.msra.mxu0 %v4133_v33  ;;  %v4436_v33 = vld [vmem:[%s6013_s4 + $0x48] ss:$16 sps:$4 sm:$0xff]  }
  0x70   :  { %1245 = vmatprep.subr.bf16.mxu0 %v4148_v36  ;;  %6117 = vst [vmem:[#allocation21_spill] sm:$0xff] %v4436_v33  ;;  %v4443_v36 = vld [vmem:[%s6013_s4 + $0x2c] ss:$16 sps:$4 sm:$0xff]  }
  0x71   :  { %6118 = vst [vmem:[#allocation22_spill] sm:$0xff] %v4443_v36 }
  0x72   :  { %903 = vmatpush1.bf16.msra.mxu1 %v4405_v26 }
  0x73   :  { %904 = vmatprep.subr.bf16.mxu1 %v4412_v30  ;;  %1246 = vmatpush1.bf16.msra.mxu0 %v4163_v40  ;;  %v4467_v40 = vld [vmem:[%s6013_s4 + $0x8] ss:$16 sps:$4 sm:$0xff]  }
  0x74   :  { %1247 = vmatprep.subr.bf16.mxu0 %v4174_v43  ;;  %6121 = vst [vmem:[#allocation25_spill] sm:$0xff] %v4467_v40  ;;  %v4479_v43 = vld [vmem:[#allocation6 + $0xcc] ss:$16 sps:$4 sm:$0xff]  }
  0x75   :  { %3339 = vmatmul.mubr.msk.bf16.gmra.mxu1 %vm407_vm5, %v4207_v52  ;;  %v4512_v52 = vld [vmem:[#allocation6 + $0x48] ss:$16 sps:$4 sm:$0xff]  }
  0x76   :  { %905 = vmatpush1.bf16.msra.mxu1 %v4420_v32  ;;  %571 = vmatprep.mubr.bf16.mxu1 %v6024_v0 }
  0x77   :  { %906 = vmatprep.subr.bf16.mxu1 %v4426_v37  ;;  %1248 = vmatpush1.bf16.msra.mxu0 %v4181_v45  ;;  %v4489_v45 = vld [vmem:[#allocation6 + $0xac] ss:$16 sps:$4 sm:$0xff]  }
  0x78   :  { %1249 = vmatprep.subr.bf16.mxu0 %v4195_v49  ;;  %v4503_v49 = vld [vmem:[#allocation6 + $0x6c] ss:$16 sps:$4 sm:$0xff]  }
  0x7a   :  { %907 = vmatpush1.bf16.msra.mxu1 %v4436_v33 }
  0x7b   :  { %908 = vmatprep.subr.bf16.mxu1 %v4443_v36  ;;  %1250 = vmatpush1.bf16.msra.mxu0 %v4213_v53  ;;  %v4515_v53 = vld [vmem:[#allocation6 + $0x2c] ss:$16 sps:$4 sm:$0xff]  }
  0x7c   :  { %1251 = vmatprep.subr.bf16.mxu0 %v4221_v55  ;;  %v4521_v55 = vld [vmem:[#allocation6 + $0xc] ss:$16 sps:$4 sm:$0xff]  }
  0x7d   :  { %3340 = vmatmul.mubr.msk.bf16.gmra.mxu1 %vm407_vm5, %v4247_v61 }
  0x7e   :  { %909 = vmatpush1.bf16.msra.mxu1 %v4451_v38  ;;  %928 = vmatprep.mubr.bf16.mxu1 %v6024_v0 }
  0x7f   :  { %910 = vmatprep.subr.bf16.mxu1 %v4457_v39  ;;  %1252 = vmatpush1.bf16.msra.mxu0 %v4228_v56  ;;  %v4524_v56 = vld [vmem:[#allocation6 + $0x8] ss:$16 sps:$4 sm:$0xff]  }
  0x80   :  { %1253 = vmatprep.subr.bf16.mxu0 %v4244_v59  ;;  %v96_v59 = vsub.s32 0, %v4547_v58 }
  0x82   :  { %911 = vmatpush1.bf16.msra.mxu1 %v4467_v40  ;;  %v4561_v1 = vrot.slane %v4553_v60, %v96_v59  ;;  %v4577_v57 = vrot.slane %v4566_v4, %v96_v59 }
  0x83   :  { %1142 = vmatprep.subr.bf16.mxu1 %v4471_v41  ;;  %1254 = vmatpush1.bf16.msra.mxu0 %v4253_v62  ;;  %v100_v62 = vsub.s32 1, %v4547_v58 }
  0x84   :  { %1255 = vmatprep.subr.bf16.mxu0 %v4259_v63 }
  0x85   :  { %929 = vmatmul.mubr.bf16.vlgmr.msra.gmra.mxu1 %v4286_v7  ;;  %v4569_v6 = vrot.slane %v4553_v60, %v100_v62 }
  0x86   :  { %1143 = vmatpush1.bf16.msra.mxu1 %v4476_v42  ;;  %1174 = vmatprep.mubr.bf16.mxu1 %v6024_v0 }
  0x87   :  { %1144 = vmatprep.subr.bf16.mxu1 %v4479_v43  ;;  %1256 = vmatpush1.bf16.msra.mxu0 %v4267_v2 }
  0x88   :  { %1327 = vmatprep.subr.bf16.mxu0 %v4280_v5 }
  0x8a   :  { %1145 = vmatpush1.bf16.msra.mxu1 %v4485_v44 }
  0x8b   :  { %1146 = vmatprep.subr.bf16.mxu1 %v4489_v45 }
  0x8e   :  { %1147 = vmatpush1.bf16.msra.mxu1 %v4494_v46 }
  0x8f   :  { %1148 = vmatprep.subr.bf16.mxu1 %v4497_v47 }
  0x92   :  { %1149 = vmatpush1.bf16.msra.mxu1 %v4500_v48 }
  0x93   :  { %1150 = vmatprep.subr.bf16.mxu1 %v4503_v49 }
  0x96   :  { %1151 = vmatpush1.bf16.msra.mxu1 %v4506_v50 }
  0x97   :  { %1152 = vmatprep.subr.bf16.mxu1 %v4509_v51 }
  0x9a   :  { %1153 = vmatpush1.bf16.msra.mxu1 %v4512_v52 }
  0x9b   :  { %1154 = vmatprep.subr.bf16.mxu1 %v4515_v53 }
  0x9e   :  { %1155 = vmatpush1.bf16.msra.mxu1 %v4518_v54 }
  0x9f   :  { %1156 = vmatprep.subr.bf16.mxu1 %v4521_v55 }
  0xa2   :  { %1157 = vmatpush1.bf16.msra.mxu1 %v4524_v56 }
  0xa3   :  { %1282 = vmatprep.subr.bf16.mxu1 %v4291_v8 }
  0xa5   :  { %1175 = vmatmul.mubr.bf16.vlgmr.msra.gmra.mxu1 %v4374_v31 }
  0xa6   :  { %1283 = vmatpush1.bf16.msra.mxu1 %v4350_v23  ;;  %1314 = vmatprep.mubr.bf16.mxu1 %v6024_v0 }
  0xa7   :  { %1284 = vmatprep.subr.bf16.mxu1 %v4355_v24 }
  0xaa   :  { %1285 = vmatpush1.bf16.msra.mxu1 %v4370_v28 }
  0xab   :  { %1286 = vmatprep.subr.bf16.mxu1 %v4379_v34 }
  0xae   :  { %1287 = vmatpush1.bf16.msra.mxu1 %v4387_v29 }
  0xaf   :  { %1288 = vmatprep.subr.bf16.mxu1 %v4394_v35 }
  0xb2   :  { %1289 = vmatpush1.bf16.msra.mxu1 %v4405_v26 }
  0xb3   :  { %1290 = vmatprep.subr.bf16.mxu1 %v4412_v30 }
  0xb6   :  { %1291 = vmatpush1.bf16.msra.mxu1 %v4420_v32 }
  0xb7   :  { %1292 = vmatprep.subr.bf16.mxu1 %v4426_v37 }
  0xba   :  { %1293 = vmatpush1.bf16.msra.mxu1 %v4436_v33 }
  0xbb   :  { %1294 = vmatprep.subr.bf16.mxu1 %v4443_v36 }
  0xbe   :  { %1295 = vmatpush1.bf16.msra.mxu1 %v4451_v38 }
  0xbf   :  { %1296 = vmatprep.subr.bf16.mxu1 %v4457_v39 }
  0xc2   :  { %1297 = vmatpush1.bf16.msra.mxu1 %v4467_v40  ;;  %v4585_v40 = vrot.slane %v4566_v4, %v100_v62 }
  0xc3   :  { %1368 = vmatprep.subr.bf16.mxu1 %v4471_v41 }
  0xe5   :  { %v4555_v61 = vpop.f32.mrf.mxu1 }
  0xe7   :  { %v4558_v63 = vpop.f32.mrf.mxu1 }
  0xe9   :  { %v197_v3 = vpop.f32.mrf.mxu1 }
  0xea   :  { %v4572_v7 = vadd.f32 %v197_v3, %v4561_v1  ;;  %v4574_v27 = vpop.f32.mrf.mxu0 }
  0xeb   :  { %v199_v31 = vpop.f32.mrf.mxu1 }
  0xec   :  { %6123 = vst [vmem:[#allocation27_spill] sm:$0xff] %v4572_v7  ;;  %v4580_v0 = vadd.f32 %v199_v31, %v4569_v6  ;;  %v4582_v41 = vpop.f32.mrf.mxu0 }
  0xed   :  { %v203_v5 = vpop.f32.mrf.mxu1 }
  0xee   :  { %6124 = vst [vmem:[#allocation28_spill] sm:$0xff] %v4580_v0  ;;  %v4588_v2 = vadd.f32 %v203_v5, %v4561_v1  ;;  %v474_v3 = vpop.f32.mrf.mxu0 }
  0xef   :  { %v205_v7 = vpop.f32.mrf.mxu1  ;;  %v4591_v39 = vadd.f32 %v474_v3, %v4577_v57 }
  0xf0   :  { %6125 = vst [vmem:[#allocation29_spill] sm:$0xff] %v4588_v2  ;;  %v4594_v59 = vadd.f32 %v205_v7, %v4569_v6  ;;  %v476_v38 = vpop.f32.mrf.mxu0 }
  0xf1   :  { %6126 = vst [vmem:[#allocation30_spill] sm:$0xff] %v4591_v39  ;;  %v207_v31 = vpop.f32.mrf.mxu1  ;;  %v4597_v0 = vadd.f32 %v476_v38, %v4585_v40 }
  0xf2   :  { %6127 = vst [vmem:[#allocation31_spill] sm:$0xff] %v4594_v59  ;;  %v4600_v36 = vadd.f32 %v207_v31, %v4561_v1  ;;  %v480_v62 = vpop.f32.mrf.mxu0 }
  0xf3   :  { %6128 = vst [vmem:[#allocation32_spill] sm:$0xff] %v4597_v0  ;;  %v209_v33 = vpop.f32.mrf.mxu1  ;;  %v4603_v5 = vadd.f32 %v480_v62, %v4577_v57 }
  0xf4   :  { %6129 = vst [vmem:[#allocation33_spill] sm:$0xff] %v4600_v36  ;;  %v4606_v2 = vadd.f32 %v209_v33, %v4569_v6  ;;  %v482_v3 = vpop.f32.mrf.mxu0 }
  0xf5   :  { %6130 = vst [vmem:[#allocation34_spill] sm:$0xff] %v4603_v5  ;;  %v213_v39 = vpop.f32.mrf.mxu1  ;;  %v4609_v7 = vadd.f32 %v482_v3, %v4585_v40 }
  0xf6   :  { %6131 = vst [vmem:[#allocation35_spill] sm:$0xff] %v4606_v2  ;;  %v4612_v59 = vadd.f32 %v213_v39, %v4561_v1  ;;  %v484_v38 = vpop.f32.mrf.mxu0 }
  0xf7   :  { %6132 = vst [vmem:[#allocation36_spill] sm:$0xff] %v4609_v7  ;;  %v215_v0 = vpop.f32.mrf.mxu1  ;;  %v4615_v31 = vadd.f32 %v484_v38, %v4577_v57 }
  0xf8   :  { %6133 = vst [vmem:[#allocation37_spill] sm:$0xff] %v4612_v59  ;;  %v4618_v36 = vadd.f32 %v215_v0, %v4569_v6  ;;  %v486_v62 = vpop.f32.mrf.mxu0 }
  0xf9   :  { %6134 = vst [vmem:[#allocation38_spill] sm:$0xff] %v4615_v31  ;;  %v217_v5 = vpop.f32.mrf.mxu1  ;;  %v4621_v33 = vadd.f32 %v486_v62, %v4585_v40 }
  0xfa   :  { %6135 = vst [vmem:[#allocation39_spill] sm:$0xff] %v4618_v36  ;;  %v4624_v2 = vadd.f32 %v217_v5, %v4561_v1  ;;  %v490_v3 = vpop.f32.mrf.mxu0 }
  0xfb   :  { %6136 = vst [vmem:[#allocation40_spill] sm:$0xff] %v4621_v33  ;;  %v219_v7 = vpop.f32.mrf.mxu1  ;;  %v4627_v39 = vadd.f32 %v490_v3, %v4577_v57 }
  0xfc   :  { %6137 = vst [vmem:[#allocation41_spill] sm:$0xff] %v4624_v2  ;;  %v4630_v59 = vadd.f32 %v219_v7, %v4569_v6  ;;  %v492_v38 = vpop.f32.mrf.mxu0 }
  0xfd   :  { %6138 = vst [vmem:[#allocation42_spill] sm:$0xff] %v4627_v39  ;;  %v223_v31 = vpop.f32.mrf.mxu1  ;;  %v4633_v0 = vadd.f32 %v492_v38, %v4585_v40 }
  0xfe   :  { %6139 = vst [vmem:[#allocation43_spill] sm:$0xff] %v4630_v59  ;;  %v4636_v36 = vadd.f32 %v223_v31, %v4561_v1  ;;  %v494_v62 = vpop.f32.mrf.mxu0 }
  0xff   :  { %6140 = vst [vmem:[#allocation44_spill] sm:$0xff] %v4633_v0  ;;  %v225_v33 = vpop.f32.mrf.mxu1  ;;  %v4639_v5 = vadd.f32 %v494_v62, %v4577_v57  ;;  %v104_v62 = vsub.s32 2, %v4547_v58 }
 0x100   :  { %6141 = vst [vmem:[#allocation45_spill] sm:$0xff] %v4636_v36  ;;  %v4642_v2 = vadd.f32 %v225_v33, %v4569_v6  ;;  %v496_v3 = vpop.f32.mrf.mxu0 }
 0x101   :  { %6142 = vst [vmem:[#allocation46_spill] sm:$0xff] %v4639_v5  ;;  %v227_v39 = vpop.f32.mrf.mxu1  ;;  %v4645_v7 = vadd.f32 %v496_v3, %v4585_v40  ;;  %v108_v3 = vsub.s32 3, %v4547_v58 }
 0x102   :  { %6143 = vst [vmem:[#allocation47_spill] sm:$0xff] %v4642_v2  ;;  %v4648_v59 = vadd.f32 %v227_v39, %v4561_v1  ;;  %v500_v38 = vpop.f32.mrf.mxu0 }
 0x103   :  { %6144 = vst [vmem:[#allocation48_spill] sm:$0xff] %v4645_v7  ;;  %v229_v0 = vpop.f32.mrf.mxu1  ;;  %v4651_v31 = vadd.f32 %v500_v38, %v4577_v57  ;;  %v4666_v7 = vrot.slane %v4553_v60, %v104_v62 }
 0x104   :  { %6145 = vst [vmem:[#allocation49_spill] sm:$0xff] %v4648_v59  ;;  %v4654_v36 = vadd.f32 %v229_v0, %v4569_v6  ;;  %v502_v33 = vpop.f32.mrf.mxu0 }
 0x105   :  { %6146 = vst [vmem:[#allocation50_spill] sm:$0xff] %v4651_v31  ;;  %v4657_v2 = vpop.f32.mrf.mxu1  ;;  %v4660_v5 = vadd.f32 %v502_v33, %v4585_v40  ;;  %v4672_v31 = vrot.slane %v4553_v60, %v108_v3 }
 0x106   :  { %6147 = vst [vmem:[#allocation51_spill] sm:$0xff] %v4654_v36  ;;  %v504_v39 = vpop.f32.mrf.mxu0 }
 0x107   :  { %6148 = vst [vmem:[#allocation52_spill] sm:$0xff] %v4660_v5  ;;  %v4663_v59 = vpop.f32.mrf.mxu1  ;;  %v4669_v38 = vadd.f32 %v504_v39, %v4577_v57 }
 0x108   :  { %v506_v0 = vpop.f32.mrf.mxu0 }
 0x109   :  { %6149 = vst [vmem:[#allocation53_spill] sm:$0xff] %v4669_v38  ;;  %v270_v36 = vpop.f32.mrf.mxu1  ;;  %v4675_v37 = vadd.f32 %v506_v0, %v4585_v40 }
 0x10a   :  { %v4678_v33 = vadd.f32 %v270_v36, %v4666_v7  ;;  %v889_v58 = vpop.f32.mrf.mxu0 }
 0x10b   :  { %6150 = vst [vmem:[#allocation54_spill] sm:$0xff] %v4675_v37  ;;  %v272_v5 = vpop.f32.mrf.mxu1 }
 0x10c   :  { %6151 = vst [vmem:[#allocation55_spill] sm:$0xff] %v4678_v33  ;;  %v4681_v32 = vadd.f32 %v272_v5, %v4672_v31  ;;  %v891_v30 = vpop.f32.mrf.mxu0 }
 0x10d   :  { %v276_v26 = vpop.f32.mrf.mxu1 }
 0x10e   :  { %6152 = vst [vmem:[#allocation56_spill] sm:$0xff] %v4681_v32  ;;  %v4684_v39 = vadd.f32 %v276_v26, %v4666_v7  ;;  %v893_v35 = vpop.f32.mrf.mxu0 }
 0x10f   :  { %v278_v38 = vpop.f32.mrf.mxu1 }
 0x110   :  { %6153 = vst [vmem:[#allocation57_spill] sm:$0xff] %v4684_v39  ;;  %v4687_v60 = vadd.f32 %v278_v38, %v4672_v31  ;;  %v894_v37 = vpop.f32.mrf.mxu0 }
 0x111   :  { %v280_v0 = vpop.f32.mrf.mxu1 }
 0x112   :  { %6154 = vst [vmem:[#allocation58_spill] sm:$0xff] %v4687_v60  ;;  %v4690_v36 = vadd.f32 %v280_v0, %v4666_v7 }
 0x113   :  { %v282_v33 = vpop.f32.mrf.mxu1 }
 0x114   :  { %6155 = vst [vmem:[#allocation59_spill] sm:$0xff] %v4690_v36  ;;  %v4693_v29 = vadd.f32 %v282_v33, %v4672_v31 }
 0x115   :  { %v286_v5 = vpop.f32.mrf.mxu1 }
 0x116   :  { %6156 = vst [vmem:[#allocation60_spill] sm:$0xff] %v4693_v29  ;;  %v4696_v32 = vadd.f32 %v286_v5, %v4666_v7 }
 0x117   :  { %v288_v26 = vpop.f32.mrf.mxu1 }
 0x118   :  { %6157 = vst [vmem:[#allocation61_spill] sm:$0xff] %v4696_v32  ;;  %v4699_v39 = vadd.f32 %v288_v26, %v4672_v31 }
 0x119   :  { %v290_v35 = vpop.f32.mrf.mxu1 }
 0x11a   :  { %6158 = vst [vmem:[#allocation62_spill] sm:$0xff] %v4699_v39  ;;  %v4702_v38 = vadd.f32 %v290_v35, %v4666_v7 }
 0x11b   :  { %v292_v37 = vpop.f32.mrf.mxu1 }
 0x11c   :  { %6159 = vst [vmem:[#allocation63_spill] sm:$0xff] %v4702_v38  ;;  %v4705_v0 = vadd.f32 %v292_v37, %v4672_v31 }
 0x11d   :  { %v296_v36 = vpop.f32.mrf.mxu1 }
 0x11e   :  { %6160 = vst [vmem:[#allocation64_spill] sm:$0xff] %v4705_v0  ;;  %v4708_v33 = vadd.f32 %v296_v36, %v4666_v7  ;;  %v4724_v0 = vrot.slane %v4566_v4, %v104_v62 }
 0x11f   :  { %v298_v29 = vpop.f32.mrf.mxu1 }
 0x120   :  { %6161 = vst [vmem:[#allocation65_spill] sm:$0xff] %v4708_v33  ;;  %v4711_v5 = vadd.f32 %v298_v29, %v4672_v31  ;;  %v4727_v33 = vrot.slane %v4566_v4, %v108_v3 }
 0x121   :  { %v300_v32 = vpop.f32.mrf.mxu1 }
 0x122   :  { %6162 = vst [vmem:[#allocation66_spill] sm:$0xff] %v4711_v5  ;;  %v4714_v26 = vadd.f32 %v300_v32, %v4666_v7 }
 0x123   :  { %v302_v39 = vpop.f32.mrf.mxu1 }
 0x124   :  { %6163 = vst [vmem:[#allocation67_spill] sm:$0xff] %v4714_v26  ;;  %v4717_v35 = vadd.f32 %v302_v39, %v4672_v31 }
 0x125   :  { %v4719_v38 = vpop.f32.mrf.mxu1 }
 0x126   :  { %6164 = vst [vmem:[#allocation68_spill] sm:$0xff] %v4717_v35 }
 0x127   :  { %v4721_v37 = vpop.f32.mrf.mxu1 }
 0x129   :  { %v547_v36 = vpop.f32.mrf.mxu1 }
 0x12a   :  { %v4730_v29 = vadd.f32 %v547_v36, %v4724_v0  ;;  %v1135_v32 = vpop.f32.mrf.mxu0 }
 0x12b   :  { %v549_v26 = vpop.f32.mrf.mxu1 }
 0x12c   :  { %6165 = vst [vmem:[#allocation69_spill] sm:$0xff] %v4730_v29  ;;  %v4733_v5 = vadd.f32 %v549_v26, %v4727_v33  ;;  %v1137_v39 = vpop.f32.mrf.mxu0  ;;  %v196_v26 = vadd.f32 %v4558_v63, %v4569_v6 }
 0x12d   :  { %v553_v35 = vpop.f32.mrf.mxu1 }
 0x12e   :  { %6166 = vst [vmem:[#allocation70_spill] sm:$0xff] %v4733_v5  ;;  %v4736_v60 = vadd.f32 %v553_v35, %v4724_v0  ;;  %v1139_v62 = vpop.f32.mrf.mxu0  ;;  %v194_v35 = vadd.f32 %v4555_v61, %v4561_v1 }
 0x12f   :  { %v555_v34 = vpop.f32.mrf.mxu1  ;;  %v938_v62 = vadd.f32 %v891_v30, %v196_v26  ;;  %v267_v26 = vadd.f32 %v4657_v2, %v4666_v7  ;;  %v682_v2 = vld [vmem:[%s6019_s10] sm:$0xff]  ;;  %v473_v7 = vadd.f32 %v4582_v41, %v4585_v40  ;;  %v544_v40 = vadd.f32 %v4719_v38, %v4724_v0 }
 0x130   :  { %6167 = vst [vmem:[#allocation71_spill] sm:$0xff] %v4736_v60  ;;  %v4739_v28 = vadd.f32 %v555_v34, %v4727_v33  ;;  %v1140_v3 = vpop.f32.mrf.mxu0 }
 0x131   :  { %v557_v4 = vpop.f32.mrf.mxu1  ;;  %v937_v3 = vadd.f32 %v889_v58, %v194_v35  ;;  %v1191_v60 = vmul.f32 0.5, %v938_v62 }
 0x132   :  { %6168 = vst [vmem:[#allocation72_spill] sm:$0xff] %v4739_v28  ;;  %v4742_v36 = vadd.f32 %v557_v4, %v4724_v0 }
 0x133   :  { %v559_v29 = vpop.f32.mrf.mxu1  ;;  %3597 = vtanh.f32 %v1191_v60 }
 0x134   :  { %6169 = vst [vmem:[#allocation73_spill] sm:$0xff] %v4742_v36  ;;  %v4747_v5 = vadd.f32 %v559_v29, %v4727_v33  ;;  %v1187_v29 = vmul.f32 0.5, %v937_v3 }
 0x135   :  { %v563_v24 = vpop.f32.mrf.mxu1 }
 0x136   :  { %6170 = vst [vmem:[#allocation74_spill] sm:$0xff] %v4747_v5  ;;  %v4752_v34 = vadd.f32 %v563_v24, %v4724_v0  ;;  %3599 = vtanh.f32 %v1187_v29 }
 0x137   :  { %v565_v28 = vpop.f32.mrf.mxu1 }
 0x138   :  { %6171 = vst [vmem:[#allocation75_spill] sm:$0xff] %v4752_v34  ;;  %v4755_v4 = vadd.f32 %v565_v28, %v4727_v33 }
 0x139   :  { %v567_v36 = vpop.f32.mrf.mxu1 }
 0x13a   :  { %6172 = vst [vmem:[#allocation76_spill] sm:$0xff] %v4755_v4  ;;  %v4758_v63 = vadd.f32 %v567_v36, %v4724_v0 }
 0x13b   :  { %v569_v6 = vpop.f32.mrf.mxu1 }
 0x13c   :  { %6173 = vst [vmem:[#allocation77_spill] sm:$0xff] %v4758_v63  ;;  %v4761_v5 = vadd.f32 %v569_v6, %v4727_v33  ;;  %v269_v6 = vadd.f32 %v4663_v59, %v4672_v31  ;;  %v471_v31 = vadd.f32 %v4574_v27, %v4577_v57 }
 0x13d   :  { %v573_v61 = vpop.f32.mrf.mxu1 }
 0x13e   :  { %6174 = vst [vmem:[#allocation78_spill] sm:$0xff] %v4761_v5  ;;  %v4764_v24 = vadd.f32 %v573_v61, %v4724_v0 }
 0x13f   :  { %v575_v30 = vpop.f32.mrf.mxu1 }
 0x140   :  { %6175 = vst [vmem:[#allocation79_spill] sm:$0xff] %v4764_v24  ;;  %v4767_v28 = vadd.f32 %v575_v30, %v4727_v33  ;;  %v3598_v30 = vpop.eup %3597 }
 0x141   :  { %v577_v1 = vpop.f32.mrf.mxu1 }
 0x142   :  { %6176 = vst [vmem:[#allocation80_spill] sm:$0xff] %v4767_v28  ;;  %v4770_v58 = vadd.f32 %v577_v1, %v4724_v0 }
 0x143   :  { %v579_v36 = vpop.f32.mrf.mxu1  ;;  %v3600_v1 = vpop.eup %3599 }
 0x144   :  { %6177 = vst [vmem:[#allocation81_spill] sm:$0xff] %v4770_v58  ;;  %v4775_v35 = vadd.f32 %v579_v36, %v4727_v33  ;;  %v1193_v58 = vmul.f32 0.5, %v3598_v30  ;;  %v1189_v5 = vmul.f32 0.5, %v3600_v1 }
 0x145   :  { %v930_v60 = vpop.f32.mrf.mxu1 }
 0x146   :  { %6178 = vst [vmem:[#allocation82_spill] sm:$0xff] %v4775_v35  ;;  %v939_v62 = vadd.f32 %v930_v60, %v267_v26  ;;  %v1194_v63 = vadd.f32 0.5, %v1193_v58  ;;  %v1190_v36 = vadd.f32 0.5, %v1189_v5 }
 0x147   :  { %v932_v3 = vpop.f32.mrf.mxu1 }
 0x148   :  { %3601 = vtanh.f32 %v939_v62  ;;  %v940_v61 = vadd.f32 %v932_v3, %v269_v6  ;;  %v1200_v26 = vmul.f32 %v1194_v63, %v682_v2  ;;  %v1183_v62 = vadd.f32 %v1135_v32, %v471_v31 }
 0x149   :  { %v934_v29 = vpop.f32.mrf.mxu1  ;;  %v546_v32 = vadd.f32 %v4721_v37, %v4727_v33  ;;  %v6180_v33 = vmov 0  }
 0x14a   :  { %v1196_v24 = vmul.f32 0.5, %v940_v61 }
 0x14b   :  { %v935_v28 = vpop.f32.mrf.mxu1 }
 0x14c   :  { %3603 = vtanh.f32 %v1196_v24  ;;  %v1184_v28 = vadd.f32 %v1137_v39, %v473_v7  ;;  %v1205_v24 = vmul.f32 0.5, %v1183_v62  ;;  %v4872_v62 = vld [vmem:[%s6013_s4 + $0xa4] ss:$16 sps:$4 sm:$0xff]  }
 0x14e   :  { %v1209_v58 = vmul.f32 0.5, %v1184_v28 }
 0x155   :  { %v3602_v59 = vpop.eup %3601 }
 0x156   :  { %v1201_v60 = vmul.f32 %v3602_v59, %v1190_v36 }
 0x158   :  { %v4786_v3 = vadd.f32 %v1201_v60, %v1200_v26  ;;  %v6182_v60 = vld [vmem:[#allocation12_spill] sm:$0xff] }
 0x159   :  { %v3604_v6 = vpop.eup %3603 }
 0x15a   :  { %3605 = vtanh.f32 %v4786_v3  ;;  %v1198_v29 = vmul.f32 0.5, %v3604_v6  ;;  %v6186_v6 = vld [vmem:[#allocation15_spill] sm:$0xff] }
 0x15b   :  { %3607 = vtanh.f32 %v1209_v58  ;;  %v6184_v58 = vld [vmem:[#allocation14_spill] sm:$0xff] }
 0x15c   :  { %3609 = vtanh.f32 %v1205_v24  ;;  %v1199_v5 = vadd.f32 0.5, %v1198_v29  ;;  %v4879_v24 = vld [vmem:[%s6013_s4 + $0xa0] ss:$16 sps:$4 sm:$0xff]   ;;  %v4886_v29 = vld [vmem:[%s6013_s4 + $0x84] ss:$16 sps:$4 sm:$0xff]  }
 0x15d   :  { %6185 = vst [vmem:[#allocation12_spill] sm:$0xff] %v4879_v24 }
 0x165   :  { %v1176_v41 = vpop.f32.mrf.mxu1 }
 0x166   :  { %v1185_v27 = vadd.f32 %v1176_v41, %v544_v40  ;;  %v6188_v40 = vld [vmem:[#allocation16_spill] sm:$0xff] }
 0x167   :  { %v3606_v57 = vpop.eup %3605  ;;  %v1178_v39 = vpop.f32.mrf.mxu1  ;;  %v4893_v41 = vld [vmem:[%s6013_s4 + $0x80] ss:$16 sps:$4 sm:$0xff]  }
 0x168   :  { %v4793_v63 = vmul.f32 %v3606_v57, %v1199_v5  ;;  %3611 = vtanh.f32 %v1185_v27  ;;  %v1186_v30 = vadd.f32 %v1178_v39, %v546_v32  ;;  %v3608_v2 = vpop.eup %3607  ;;  %6189 = vst [vmem:[#allocation14_spill] sm:$0xff] %v4893_v41  ;;  %v6190_v5 = vld [vmem:[#allocation17_spill] sm:$0xff]  ;;  %v4900_v27 = vld [vmem:[%s6013_s4 + $0x64] ss:$16 sps:$4 sm:$0xff]   ;;  %v4907_v39 = vld [vmem:[%s6013_s4 + $0x60] ss:$16 sps:$4 sm:$0xff]  }
 0x169   :  { %v1180_v61 = vpop.f32.mrf.mxu1  ;;  %v3610_v38 = vpop.eup %3609  ;;  %v1211_v0 = vmul.f32 0.5, %v3608_v2  ;;  %6191 = vst [vmem:[#allocation15_spill] sm:$0xff] %v4900_v27  ;;  %v6192_v57 = vld [vmem:[#allocation18_spill] sm:$0xff]  ;;  %6193 = vst [vmem:[#allocation16_spill] sm:$0xff] %v4907_v39  ;;  %v6194_v32 = vld [vmem:[#allocation19_spill] sm:$0xff] }
 0x16a   :  { %6179 = vst [vmem:[#allocation83_spill] sm:$0xff] %v4793_v63  ;;  %v1228_v1 = vpack.c.bf16 %v4793_v63, %v4793_v63  ;;  %v1214_v36 = vmul.f32 0.5, %v1186_v30  ;;  %v1207_v37 = vmul.f32 0.5, %v3610_v38  ;;  %v4914_v61 = vld [vmem:[%s6013_s4 + $0x44] ss:$16 sps:$4 sm:$0xff]   ;;  %v6198_v2 = vld [vmem:[#allocation21_spill] sm:$0xff] }
 0x16b   :  { %v1181_v7 = vpop.f32.mrf.mxu1  ;;  %v1212_v59 = vadd.f32 0.5, %v1211_v0  ;;  %6195 = vst [vmem:[#allocation17_spill] sm:$0xff] %v4914_v61  ;;  %v6196_v30 = vld [vmem:[#allocation20_spill] sm:$0xff]  ;;  %v6200_v38 = vld [vmem:[#allocation22_spill] sm:$0xff] }
 0x16c   :  { %1274 = vmatmul.mubr.bf16.vlgmr.msra.gmra.mxu0 %v1228_v1  ;;  %1315 = vmatmul.mubr.bf16.vlgmr.msra.gmra.mxu1 %v1228_v1  ;;  %3613 = vtanh.f32 %v1214_v36  ;;  %v4921_v1 = vld [vmem:[%s6013_s4 + $0x40] ss:$16 sps:$4 sm:$0xff]   ;;  %v4928_v7 = vld [vmem:[%s6013_s4 + $0x24] ss:$16 sps:$4 sm:$0xff]   ;;  %v6202_v36 = vld [vmem:[#allocation23_spill] sm:$0xff] }
 0x16d   :  { %1328 = vmatpush1.bf16.msra.mxu0 %v4294_v9  ;;  %1369 = vmatpush1.bf16.msra.mxu1 %v4476_v42  ;;  %v683_v9 = vld [vmem:[%s6020_s11] sm:$0xff]  ;;  %6197 = vst [vmem:[#allocation18_spill] sm:$0xff] %v4921_v1  ;;  %6199 = vst [vmem:[#allocation19_spill] sm:$0xff] %v4928_v7 }
 0x16e   :  { %1329 = vmatprep.subr.bf16.mxu0 %v4297_v10  ;;  %1370 = vmatprep.subr.bf16.mxu1 %v4479_v43  ;;  %v1208_v10 = vadd.f32 0.5, %v1207_v37  ;;  %v1218_v26 = vmul.f32 %v1212_v59, %v683_v9  ;;  %v4935_v0 = vld [vmem:[%s6013_s4 + $0x20] ss:$16 sps:$4 sm:$0xff]   ;;  %v4942_v37 = vld [vmem:[%s6013_s4 + $0x4] ss:$16 sps:$4 sm:$0xff]  }
 0x16f   :  { %1359 = vmatprep.mubr.bf16.mxu0 %v6180_v33  ;;  %1400 = vmatprep.mubr.bf16.mxu1 %v6180_v33  ;;  %6201 = vst [vmem:[#allocation20_spill] sm:$0xff] %v4935_v0  ;;  %6203 = vst [vmem:[#allocation21_spill] sm:$0xff] %v4942_v37  ;;  %v6204_v59 = vld [vmem:[#allocation24_spill] sm:$0xff]  ;;  %v6205_v9 = vld [vmem:[#allocation10_spill] sm:$0xff] }
 0x171   :  { %1330 = vmatpush1.bf16.msra.mxu0 %v4302_v11  ;;  %1371 = vmatpush1.bf16.msra.mxu1 %v4485_v44 }
 0x172   :  { %1331 = vmatprep.subr.bf16.mxu0 %v4308_v12  ;;  %1372 = vmatprep.subr.bf16.mxu1 %v4489_v45 }
 0x175   :  { %v3612_v31 = vpop.eup %3611  ;;  %1332 = vmatpush1.bf16.msra.mxu0 %v4312_v13  ;;  %1373 = vmatpush1.bf16.msra.mxu1 %v4494_v46 }
 0x176   :  { %v1219_v11 = vmul.f32 %v3612_v31, %v1208_v10  ;;  %1333 = vmatprep.subr.bf16.mxu0 %v4315_v14  ;;  %1374 = vmatprep.subr.bf16.mxu1 %v4497_v47  ;;  %v6206_v10 = vld [vmem:[#allocation25_spill] sm:$0xff]  ;;  %v6207_v31 = vld [vmem:[#allocation11_spill] sm:$0xff] }
 0x178   :  { %v4814_v28 = vadd.f32 %v1219_v11, %v1218_v26  ;;  %v6208_v26 = vld [vmem:[#allocation26_spill] sm:$0xff] }
 0x179   :  { %1334 = vmatpush1.bf16.msra.mxu0 %v4317_v15  ;;  %1375 = vmatpush1.bf16.msra.mxu1 %v4500_v48  ;;  %v3614_v12 = vpop.eup %3613 }
 0x17a   :  { %3615 = vtanh.f32 %v4814_v28  ;;  %1335 = vmatprep.subr.bf16.mxu0 %v4320_v16  ;;  %1376 = vmatprep.subr.bf16.mxu1 %v4503_v49  ;;  %v1216_v13 = vmul.f32 0.5, %v3614_v12 }
 0x17c   :  { %v1217_v14 = vadd.f32 0.5, %v1216_v13  ;;  %v6209_v13 = vld [vmem:[#allocation27_spill] sm:$0xff] }
 0x17d   :  { %1336 = vmatpush1.bf16.msra.mxu0 %v4325_v17  ;;  %1377 = vmatpush1.bf16.msra.mxu1 %v4506_v50 }
 0x17e   :  { %1337 = vmatprep.subr.bf16.mxu0 %v4328_v18  ;;  %1378 = vmatprep.subr.bf16.mxu1 %v4509_v51  ;;  %v4842_v18 = vld [vmem:[%s6013_s4 + $0xe4] ss:$16 sps:$4 sm:$0xff]  }
 0x181   :  { %1338 = vmatpush1.bf16.msra.mxu0 %v4332_v19  ;;  %1379 = vmatpush1.bf16.msra.mxu1 %v4512_v52  ;;  %v4849_v19 = vld [vmem:[%s6013_s4 + $0xe0] ss:$16 sps:$4 sm:$0xff]  }
 0x182   :  { %1339 = vmatprep.subr.bf16.mxu0 %v4334_v20  ;;  %1380 = vmatprep.subr.bf16.mxu1 %v4515_v53  ;;  %v4856_v20 = vld [vmem:[%s6013_s4 + $0xc4] ss:$16 sps:$4 sm:$0xff]  }
 0x185   :  { %1340 = vmatpush1.bf16.msra.mxu0 %v4342_v21  ;;  %1381 = vmatpush1.bf16.msra.mxu1 %v4518_v54 }
 0x186   :  { %1341 = vmatprep.subr.bf16.mxu0 %v4345_v22  ;;  %1382 = vmatprep.subr.bf16.mxu1 %v4521_v55 }
 0x187   :  { %v3616_v15 = vpop.eup %3615 }
 0x188   :  { %v4833_v16 = vmul.f32 %v3616_v15, %v1217_v14 }
 0x189   :  { %1342 = vmatpush1.bf16.msra.mxu0 %v4358_v25  ;;  %1383 = vmatpush1.bf16.msra.mxu1 %v4524_v56 }
 0x18a   :  { %6181 = vst [vmem:[#allocation84_spill] sm:$0xff] %v4833_v16  ;;  %v1229_v17 = vpack.c.bf16 %v4833_v16, %v4833_v16  ;;  %1467 = vmatprep.subr.bf16.mxu0 %v4842_v18  ;;  %1508 = vmatprep.subr.bf16.mxu1 %v4291_v8  ;;  %v4865_v8 = vld [vmem:[%s6013_s4 + $0xc0] ss:$16 sps:$4 sm:$0xff]   ;;  %v6211_v16 = vld [vmem:[#allocation55_spill] sm:$0xff] }
 0x18c   :  { %1360 = vmatmul.mubr.bf16.vlgmr.msra.gmra.mxu0 %v1229_v17  ;;  %1401 = vmatmul.mubr.bf16.vlgmr.msra.gmra.mxu1 %v1229_v17 }
 0x18d   :  { %1468 = vmatpush1.bf16.msra.mxu0 %v4849_v19  ;;  %1509 = vmatpush1.bf16.msra.mxu1 %v4350_v23  ;;  %v6183_v23 = vld [vmem:[#allocation13_spill] sm:$0xff] }
 0x18e   :  { %1469 = vmatprep.subr.bf16.mxu0 %v4856_v20  ;;  %1510 = vmatprep.subr.bf16.mxu1 %v6182_v60  ;;  %6187 = vst [vmem:[#allocation13_spill] sm:$0xff] %v4886_v29 }
 0x18f   :  { %1499 = vmatprep.mubr.bf16.mxu0 %v6180_v33  ;;  %1540 = vmatprep.mubr.bf16.mxu1 %v6180_v33 }
 0x191   :  { %1470 = vmatpush1.bf16.msra.mxu0 %v4865_v8  ;;  %1511 = vmatpush1.bf16.msra.mxu1 %v6183_v23  ;;  %v6210_v23 = vld [vmem:[#allocation28_spill] sm:$0xff] }
 0x192   :  { %1471 = vmatprep.subr.bf16.mxu0 %v4872_v62  ;;  %1512 = vmatprep.subr.bf16.mxu1 %v6184_v58 }
 0x195   :  { %1472 = vmatpush1.bf16.msra.mxu0 %v4879_v24  ;;  %1513 = vmatpush1.bf16.msra.mxu1 %v6186_v6 }
 0x196   :  { %1473 = vmatprep.subr.bf16.mxu0 %v4886_v29  ;;  %1514 = vmatprep.subr.bf16.mxu1 %v6188_v40 }
 0x199   :  { %1474 = vmatpush1.bf16.msra.mxu0 %v4893_v41  ;;  %1515 = vmatpush1.bf16.msra.mxu1 %v6190_v5 }
 0x19a   :  { %1475 = vmatprep.subr.bf16.mxu0 %v4900_v27  ;;  %1516 = vmatprep.subr.bf16.mxu1 %v6192_v57 }
 0x19d   :  { %1476 = vmatpush1.bf16.msra.mxu0 %v4907_v39  ;;  %1517 = vmatpush1.bf16.msra.mxu1 %v6194_v32 }
 0x19e   :  { %1477 = vmatprep.subr.bf16.mxu0 %v4914_v61  ;;  %1518 = vmatprep.subr.bf16.mxu1 %v6196_v30 }
 0x1a1   :  { %1478 = vmatpush1.bf16.msra.mxu0 %v4921_v1  ;;  %1519 = vmatpush1.bf16.msra.mxu1 %v6198_v2 }
 0x1a2   :  { %1479 = vmatprep.subr.bf16.mxu0 %v4928_v7  ;;  %1520 = vmatprep.subr.bf16.mxu1 %v6200_v38 }
 0x1a5   :  { %1480 = vmatpush1.bf16.msra.mxu0 %v4935_v0  ;;  %1521 = vmatpush1.bf16.msra.mxu1 %v6202_v36 }
 0x1a6   :  { %1481 = vmatprep.subr.bf16.mxu0 %v4942_v37  ;;  %1522 = vmatprep.subr.bf16.mxu1 %v6204_v59 }
 0x1a9   :  { %1482 = vmatpush1.bf16.msra.mxu0 %v6205_v9  ;;  %1523 = vmatpush1.bf16.msra.mxu1 %v6206_v10 }
 0x1aa   :  { %1553 = vmatprep.subr.bf16.mxu0 %v6207_v31  ;;  %1594 = vmatprep.subr.bf16.mxu1 %v6208_v26  ;;  %v6212_v31 = vld [vmem:[#allocation56_spill] sm:$0xff] }
 0x22c   :  { %v1275_v11 = vpop.f32.mrf.mxu0  ;;  %v1316_v12 = vpop.f32.mrf.mxu1 }
 0x22d   :  { %v1323_v14 = vadd.f32 %v1275_v11, %v6209_v13  ;;  %v1325_v9 = vadd.f32 %v1316_v12, %v6211_v16 }
 0x22e   :  { %v1277_v15 = vpop.f32.mrf.mxu0  ;;  %v1318_v17 = vpop.f32.mrf.mxu1 }
 0x22f   :  { %v1413_v60 = vmul.f32 0.5, %v1323_v14  ;;  %v1324_v58 = vadd.f32 %v1277_v15, %v6210_v23  ;;  %v1326_v26 = vadd.f32 %v1318_v17, %v6212_v31 }
 0x230   :  { %v1279_v35 = vpop.f32.mrf.mxu0  ;;  %v1320_v63 = vpop.f32.mrf.mxu1 }
 0x231   :  { %3617 = vtanh.f32 %v1413_v60  ;;  %v1417_v4 = vmul.f32 0.5, %v1324_v58  ;;  %v1422_v59 = vmul.f32 0.5, %v1326_v26  ;;  %v6214_v58 = vld [vmem:[#allocation32_spill] sm:$0xff] }
 0x232   :  { %v1280_v34 = vpop.f32.mrf.mxu0  ;;  %v1321_v10 = vpop.f32.mrf.mxu1 }
 0x233   :  { %3619 = vtanh.f32 %v1417_v4  ;;  %v6213_v10 = vld [vmem:[#allocation30_spill] sm:$0xff] }
 0x234   :  { %3621 = vtanh.f32 %v1325_v9 }
 0x235   :  { %3623 = vtanh.f32 %v1422_v59 }
 0x23e   :  { %v3618_v37 = vpop.eup %3617 }
 0x23f   :  { %v1415_v11 = vmul.f32 0.5, %v3618_v37 }
 0x240   :  { %v3620_v13 = vpop.eup %3619 }
 0x241   :  { %v1416_v36 = vadd.f32 0.5, %v1415_v11  ;;  %v1419_v14 = vmul.f32 0.5, %v3620_v13  ;;  %v3622_v15 = vpop.eup %3621 }
 0x242   :  { %v3624_v26 = vpop.eup %3623 }
 0x243   :  { %v1420_v35 = vadd.f32 0.5, %v1419_v14  ;;  %v1427_v63 = vmul.f32 %v3622_v15, %v1416_v36  ;;  %v1424_v11 = vmul.f32 0.5, %v3624_v26  ;;  %v6215_v36 = vld [vmem:[#allocation69_spill] sm:$0xff]  ;;  %v4966_v26 = vld [vmem:[#allocation6 + $0xe0] ss:$16 sps:$4 sm:$0xff]  }
 0x245   :  { %v1426_v60 = vmul.f32 %v1420_v35, %v4786_v3  ;;  %v1425_v35 = vadd.f32 0.5, %v1424_v11 }
 0x247   :  { %v4955_v16 = vadd.f32 %v1427_v63, %v1426_v60 }
 0x249   :  { %3625 = vtanh.f32 %v4955_v16 }
 0x24c   :  { %v1361_v34 = vpop.f32.mrf.mxu0  ;;  %v1402_v4 = vpop.f32.mrf.mxu1 }
 0x24d   :  { %v1409_v12 = vadd.f32 %v1361_v34, %v6213_v10  ;;  %v1411_v3 = vadd.f32 %v1402_v4, %v6215_v36  ;;  %v6217_v34 = vld [vmem:[#allocation70_spill] sm:$0xff] }
 0x24e   :  { %v1363_v17 = vpop.f32.mrf.mxu0  ;;  %v1404_v37 = vpop.f32.mrf.mxu1 }
 0x24f   :  { %v1431_v23 = vmul.f32 0.5, %v1409_v12  ;;  %v1410_v9 = vadd.f32 %v1363_v17, %v6214_v58  ;;  %v1412_v10 = vadd.f32 %v1404_v37, %v6217_v34  ;;  %v4970_v17 = vld [vmem:[#allocation6 + $0xc4] ss:$16 sps:$4 sm:$0xff]  }
 0x250   :  { %v1365_v59 = vpop.f32.mrf.mxu0  ;;  %v1406_v31 = vpop.f32.mrf.mxu1 }
 0x251   :  { %3627 = vtanh.f32 %v1431_v23  ;;  %v1435_v13 = vmul.f32 0.5, %v1410_v9  ;;  %v1440_v4 = vmul.f32 0.5, %v1412_v10  ;;  %v4976_v9 = vld [vmem:[#allocation6 + $0xc0] ss:$16 sps:$4 sm:$0xff]   ;;  %v4980_v31 = vld [vmem:[#allocation6 + $0xa4] ss:$16 sps:$4 sm:$0xff]  }
 0x252   :  { %v1366_v14 = vpop.f32.mrf.mxu0  ;;  %v1407_v15 = vpop.f32.mrf.mxu1 }
 0x253   :  { %3629 = vtanh.f32 %v1435_v13  ;;  %v4989_v13 = vld [vmem:[#allocation6 + $0x84] ss:$16 sps:$4 sm:$0xff]  }
 0x254   :  { %3631 = vtanh.f32 %v1411_v3  ;;  %v4984_v3 = vld [vmem:[#allocation6 + $0xa0] ss:$16 sps:$4 sm:$0xff]   ;;  %v5000_v15 = vld [vmem:[#allocation6 + $0x64] ss:$16 sps:$4 sm:$0xff]  }
 0x255   :  { %3633 = vtanh.f32 %v1440_v4 }
 0x256   :  { %v3626_v63 = vpop.eup %3625 }
 0x257   :  { %v4961_v60 = vmul.f32 %v3626_v63, %v1425_v35  ;;  %v5016_v35 = vld [vmem:[#allocation6 + $0x24] ss:$16 sps:$4 sm:$0xff]  }
 0x259   :  { %6216 = vst [vmem:[#allocation22_spill] sm:$0xff] %v4961_v60  ;;  %v1454_v12 = vpack.c.bf16 %v4961_v60, %v4961_v60  ;;  %v5255_v60 = vld [vmem:[%s6013_s4 + $0x2c] ss:$16 sps:$4 sm:$0xff]  }
 0x25b   :  { %1500 = vmatmul.mubr.bf16.vlgmr.msra.gmra.mxu0 %v1454_v12  ;;  %1541 = vmatmul.mubr.bf16.vlgmr.msra.gmra.mxu1 %v1454_v12 }
 0x25c   :  { %1554 = vmatpush1.bf16.msra.mxu0 %v4966_v26  ;;  %1595 = vmatpush1.bf16.msra.mxu1 %v4476_v42 }
 0x25d   :  { %1555 = vmatprep.subr.bf16.mxu0 %v4970_v17  ;;  %1596 = vmatprep.subr.bf16.mxu1 %v4479_v43 }
 0x25e   :  { %v3628_v23 = vpop.eup %3627  ;;  %1585 = vmatprep.mubr.bf16.mxu0 %v6180_v33  ;;  %1626 = vmatprep.mubr.bf16.mxu1 %v6180_v33 }
 0x25f   :  { %v1433_v37 = vmul.f32 0.5, %v3628_v23  ;;  %v6227_v23 = vld [vmem:[#allocation31_spill] sm:$0xff] }
 0x260   :  { %v3630_v58 = vpop.eup %3629  ;;  %1556 = vmatpush1.bf16.msra.mxu0 %v4976_v9  ;;  %1597 = vmatpush1.bf16.msra.mxu1 %v4485_v44 }
 0x261   :  { %v1434_v42 = vadd.f32 0.5, %v1433_v37  ;;  %v1437_v59 = vmul.f32 0.5, %v3630_v58  ;;  %1557 = vmatprep.subr.bf16.mxu0 %v4980_v31  ;;  %1598 = vmatprep.subr.bf16.mxu1 %v4489_v45  ;;  %v3632_v43 = vpop.eup %3631  ;;  %v4995_v45 = vld [vmem:[#allocation6 + $0x80] ss:$16 sps:$4 sm:$0xff]  }
 0x263   :  { %v1438_v11 = vadd.f32 0.5, %v1437_v59  ;;  %v1445_v36 = vmul.f32 %v3632_v43, %v1434_v42  ;;  %v6228_v59 = vld [vmem:[#allocation57_spill] sm:$0xff] }
 0x264   :  { %1558 = vmatpush1.bf16.msra.mxu0 %v4984_v3  ;;  %1599 = vmatpush1.bf16.msra.mxu1 %v4494_v46  ;;  %v5004_v46 = vld [vmem:[#allocation6 + $0x60] ss:$16 sps:$4 sm:$0xff]  }
 0x265   :  { %v1444_v44 = vmul.f32 %v1438_v11, %v4814_v28  ;;  %1559 = vmatprep.subr.bf16.mxu0 %v4989_v13  ;;  %1600 = vmatprep.subr.bf16.mxu1 %v4497_v47  ;;  %v5008_v47 = vld [vmem:[#allocation6 + $0x44] ss:$16 sps:$4 sm:$0xff]   ;;  %v5012_v28 = vld [vmem:[#allocation6 + $0x40] ss:$16 sps:$4 sm:$0xff]  }
 0x267   :  { %v4993_v14 = vadd.f32 %v1445_v36, %v1444_v44 }
 0x268   :  { %1560 = vmatpush1.bf16.msra.mxu0 %v4995_v45  ;;  %1601 = vmatpush1.bf16.msra.mxu1 %v4500_v48  ;;  %v3634_v48 = vpop.eup %3633 }
 0x269   :  { %3635 = vtanh.f32 %v4993_v14  ;;  %1561 = vmatprep.subr.bf16.mxu0 %v5000_v15  ;;  %1602 = vmatprep.subr.bf16.mxu1 %v4503_v49  ;;  %v1442_v49 = vmul.f32 0.5, %v3634_v48  ;;  %v6229_v48 = vld [vmem:[#allocation58_spill] sm:$0xff] }
 0x26c   :  { %1562 = vmatpush1.bf16.msra.mxu0 %v5004_v46  ;;  %1603 = vmatpush1.bf16.msra.mxu1 %v4506_v50  ;;  %v1443_v50 = vadd.f32 0.5, %v1442_v49 }
 0x26d   :  { %1563 = vmatprep.subr.bf16.mxu0 %v5008_v47  ;;  %1604 = vmatprep.subr.bf16.mxu1 %v4509_v51 }
 0x270   :  { %1564 = vmatpush1.bf16.msra.mxu0 %v5012_v28  ;;  %1605 = vmatpush1.bf16.msra.mxu1 %v4512_v52 }
 0x271   :  { %1565 = vmatprep.subr.bf16.mxu0 %v5016_v35  ;;  %1606 = vmatprep.subr.bf16.mxu1 %v4515_v53  ;;  %v5057_v53 = vld [vmem:[%s6013_s4 + $0xc8] ss:$16 sps:$4 sm:$0xff]  }
 0x274   :  { %1566 = vmatpush1.bf16.msra.mxu0 %v4342_v21  ;;  %1607 = vmatpush1.bf16.msra.mxu1 %v4518_v54  ;;  %v5034_v21 = vld [vmem:[%s6013_s4 + $0xec] ss:$16 sps:$4 sm:$0xff]  }
 0x275   :  { %1567 = vmatprep.subr.bf16.mxu0 %v4345_v22  ;;  %1608 = vmatprep.subr.bf16.mxu1 %v4521_v55  ;;  %v5041_v22 = vld [vmem:[%s6013_s4 + $0xe8] ss:$16 sps:$4 sm:$0xff]   ;;  %v5064_v54 = vld [vmem:[%s6013_s4 + $0xac] ss:$16 sps:$4 sm:$0xff]  }
 0x276   :  { %v3636_v51 = vpop.eup %3635  ;;  %v6219_v55 = vld [vmem:[#allocation23_spill] sm:$0xff] }
 0x277   :  { %v5024_v63 = vmul.f32 %v3636_v51, %v1443_v50 }
 0x278   :  { %1568 = vmatpush1.bf16.msra.mxu0 %v4358_v25  ;;  %1609 = vmatpush1.bf16.msra.mxu1 %v4524_v56  ;;  %v5048_v25 = vld [vmem:[%s6013_s4 + $0xcc] ss:$16 sps:$4 sm:$0xff]  }
 0x279   :  { %6218 = vst [vmem:[#allocation10_spill] sm:$0xff] %v5024_v63  ;;  %v1455_v52 = vpack.c.bf16 %v5024_v63, %v5024_v63  ;;  %1693 = vmatprep.subr.bf16.mxu0 %v4842_v18  ;;  %1734 = vmatprep.subr.bf16.mxu1 %v5034_v21  ;;  %v6220_v56 = vld [vmem:[#allocation21_spill] sm:$0xff] }
 0x27a   :  { %v5262_v63 = vld [vmem:[%s6013_s4 + $0x28] ss:$16 sps:$4 sm:$0xff]  }
 0x27b   :  { %1586 = vmatmul.mubr.bf16.vlgmr.msra.gmra.mxu0 %v1455_v52  ;;  %1627 = vmatmul.mubr.bf16.vlgmr.msra.gmra.mxu1 %v1455_v52 }
 0x27c   :  { %1694 = vmatpush1.bf16.msra.mxu0 %v4849_v19  ;;  %1735 = vmatpush1.bf16.msra.mxu1 %v5041_v22 }
 0x27d   :  { %1695 = vmatprep.subr.bf16.mxu0 %v4856_v20  ;;  %1736 = vmatprep.subr.bf16.mxu1 %v5048_v25 }
 0x27e   :  { %1725 = vmatprep.mubr.bf16.mxu0 %v6180_v33  ;;  %1766 = vmatprep.mubr.bf16.mxu1 %v6180_v33 }
 0x280   :  { %1696 = vmatpush1.bf16.msra.mxu0 %v4865_v8  ;;  %1737 = vmatpush1.bf16.msra.mxu1 %v5057_v53 }
 0x281   :  { %1697 = vmatprep.subr.bf16.mxu0 %v4872_v62  ;;  %1738 = vmatprep.subr.bf16.mxu1 %v5064_v54 }
 0x284   :  { %1698 = vmatpush1.bf16.msra.mxu0 %v4879_v24  ;;  %1739 = vmatpush1.bf16.msra.mxu1 %v6186_v6  ;;  %v6221_v6 = vld [vmem:[#allocation24_spill] sm:$0xff] }
 0x285   :  { %1699 = vmatprep.subr.bf16.mxu0 %v4886_v29  ;;  %1740 = vmatprep.subr.bf16.mxu1 %v6188_v40  ;;  %v5090_v40 = vld [vmem:[%s6013_s4] ss:$16 sps:$4 sm:$0xff]  }
 0x286   :  { %6222 = vst [vmem:[#allocation11_spill] sm:$0xff] %v5090_v40 }
 0x288   :  { %1700 = vmatpush1.bf16.msra.mxu0 %v4893_v41  ;;  %1741 = vmatpush1.bf16.msra.mxu1 %v6190_v5  ;;  %v6223_v5 = vld [vmem:[#allocation25_spill] sm:$0xff] }
 0x289   :  { %1701 = vmatprep.subr.bf16.mxu0 %v4900_v27  ;;  %1742 = vmatprep.subr.bf16.mxu1 %v6192_v57  ;;  %v5094_v57 = vld [vmem:[#allocation6 + $0xe4] ss:$16 sps:$4 sm:$0xff]   ;;  %6243 = vst [vmem:[#allocation25_spill] sm:$0xff] %v5255_v60 }
 0x28a   :  { %6224 = vst [vmem:[#allocation27_spill] sm:$0xff] %v5094_v57 }
 0x28c   :  { %1702 = vmatpush1.bf16.msra.mxu0 %v4907_v39  ;;  %1743 = vmatpush1.bf16.msra.mxu1 %v6194_v32  ;;  %v6225_v32 = vld [vmem:[#allocation26_spill] sm:$0xff] }
 0x28d   :  { %1703 = vmatprep.subr.bf16.mxu0 %v4914_v61  ;;  %1744 = vmatprep.subr.bf16.mxu1 %v6196_v30  ;;  %6244 = vst [vmem:[#allocation26_spill] sm:$0xff] %v5262_v63 }
 0x290   :  { %1704 = vmatpush1.bf16.msra.mxu0 %v4921_v1  ;;  %1745 = vmatpush1.bf16.msra.mxu1 %v6198_v2 }
 0x291   :  { %1705 = vmatprep.subr.bf16.mxu0 %v4928_v7  ;;  %1746 = vmatprep.subr.bf16.mxu1 %v6200_v38  ;;  %v6226_v38 = vld [vmem:[#allocation29_spill] sm:$0xff] }
 0x294   :  { %1706 = vmatpush1.bf16.msra.mxu0 %v4935_v0  ;;  %1747 = vmatpush1.bf16.msra.mxu1 %v6219_v55 }
 0x295   :  { %1707 = vmatprep.subr.bf16.mxu0 %v6220_v56  ;;  %1748 = vmatprep.subr.bf16.mxu1 %v6221_v6 }
 0x298   :  { %1708 = vmatpush1.bf16.msra.mxu0 %v5090_v40  ;;  %1749 = vmatpush1.bf16.msra.mxu1 %v6223_v5 }
 0x299   :  { %1779 = vmatprep.subr.bf16.mxu0 %v5094_v57  ;;  %1820 = vmatprep.subr.bf16.mxu1 %v6225_v32 }
 0x31b   :  { %v1501_v30 = vpop.f32.mrf.mxu0  ;;  %v1542_v2 = vpop.f32.mrf.mxu1 }
 0x31c   :  { %v1549_v34 = vadd.f32 %v1501_v30, %v6226_v38  ;;  %v1551_v43 = vadd.f32 %v1542_v2, %v6228_v59 }
 0x31d   :  { %v1503_v10 = vpop.f32.mrf.mxu0  ;;  %v1544_v12 = vpop.f32.mrf.mxu1 }
 0x31e   :  { %v1639_v4 = vmul.f32 0.5, %v1549_v34  ;;  %v1550_v37 = vadd.f32 %v1503_v10, %v6227_v23  ;;  %v1552_v49 = vadd.f32 %v1544_v12, %v6229_v48  ;;  %v6230_v23 = vld [vmem:[#allocation34_spill] sm:$0xff] }
 0x31f   :  { %v1505_v58 = vpop.f32.mrf.mxu0  ;;  %v1546_v42 = vpop.f32.mrf.mxu1 }
 0x320   :  { %3637 = vtanh.f32 %v1639_v4  ;;  %v1643_v11 = vmul.f32 0.5, %v1550_v37  ;;  %v1648_v50 = vmul.f32 0.5, %v1552_v49  ;;  %v6232_v49 = vld [vmem:[#allocation71_spill] sm:$0xff] }
 0x321   :  { %v1506_v36 = vpop.f32.mrf.mxu0  ;;  %v1547_v44 = vpop.f32.mrf.mxu1 }
 0x322   :  { %3639 = vtanh.f32 %v1643_v11 }
 0x323   :  { %3641 = vtanh.f32 %v1551_v43  ;;  %v6231_v43 = vld [vmem:[#allocation36_spill] sm:$0xff] }
 0x324   :  { %3643 = vtanh.f32 %v1648_v50 }
 0x32d   :  { %v3638_v51 = vpop.eup %3637 }
 0x32e   :  { %v1641_v52 = vmul.f32 0.5, %v3638_v51 }
 0x32f   :  { %v3640_v55 = vpop.eup %3639 }
 0x330   :  { %v1642_v6 = vadd.f32 0.5, %v1641_v52  ;;  %v1645_v5 = vmul.f32 0.5, %v3640_v55  ;;  %v3642_v32 = vpop.eup %3641 }
 0x331   :  { %v3644_v37 = vpop.eup %3643 }
 0x332   :  { %v1646_v30 = vadd.f32 0.5, %v1645_v5  ;;  %v1653_v38 = vmul.f32 %v3642_v32, %v1642_v6  ;;  %v1650_v48 = vmul.f32 0.5, %v3644_v37  ;;  %v6234_v32 = vld [vmem:[#allocation72_spill] sm:$0xff] }
 0x334   :  { %v1652_v34 = vmul.f32 %v1646_v30, %v4955_v16  ;;  %v1651_v55 = vadd.f32 0.5, %v1650_v48  ;;  %v5133_v48 = vld [vmem:[#allocation6 + $0xa8] ss:$16 sps:$4 sm:$0xff]  }
 0x336   :  { %v5103_v2 = vadd.f32 %v1653_v38, %v1652_v34  ;;  %v5115_v34 = vld [vmem:[#allocation6 + $0xe8] ss:$16 sps:$4 sm:$0xff]  }
 0x338   :  { %3645 = vtanh.f32 %v5103_v2 }
 0x33b   :  { %v1587_v10 = vpop.f32.mrf.mxu0  ;;  %v1628_v4 = vpop.f32.mrf.mxu1 }
 0x33c   :  { %v1635_v12 = vadd.f32 %v1587_v10, %v6230_v23  ;;  %v1637_v16 = vadd.f32 %v1628_v4, %v6232_v49  ;;  %v5119_v4 = vld [vmem:[#allocation6 + $0xcc] ss:$16 sps:$4 sm:$0xff]  }
 0x33d   :  { %v1589_v58 = vpop.f32.mrf.mxu0  ;;  %v1630_v42 = vpop.f32.mrf.mxu1 }
 0x33e   :  { %v1657_v59 = vmul.f32 0.5, %v1635_v12  ;;  %v1636_v11 = vadd.f32 %v1589_v58, %v6231_v43  ;;  %v1638_v30 = vadd.f32 %v1630_v42, %v6234_v32  ;;  %v5125_v58 = vld [vmem:[#allocation6 + $0xc8] ss:$16 sps:$4 sm:$0xff]   ;;  %v5129_v43 = vld [vmem:[#allocation6 + $0xac] ss:$16 sps:$4 sm:$0xff]  }
 0x33f   :  { %v1591_v36 = vpop.f32.mrf.mxu0  ;;  %v1632_v44 = vpop.f32.mrf.mxu1  ;;  %v5161_v32 = vld [vmem:[#allocation6 + $0x48] ss:$16 sps:$4 sm:$0xff]  }
 0x340   :  { %3647 = vtanh.f32 %v1657_v59  ;;  %v1661_v50 = vmul.f32 0.5, %v1636_v11  ;;  %v1666_v10 = vmul.f32 0.5, %v1638_v30 }
 0x341   :  { %v1592_v51 = vpop.f32.mrf.mxu0  ;;  %v1633_v52 = vpop.f32.mrf.mxu1 }
 0x342   :  { %3649 = vtanh.f32 %v1661_v50  ;;  %v5144_v51 = vld [vmem:[#allocation6 + $0x88] ss:$16 sps:$4 sm:$0xff]   ;;  %v5149_v52 = vld [vmem:[#allocation6 + $0x6c] ss:$16 sps:$4 sm:$0xff]  }
 0x343   :  { %3651 = vtanh.f32 %v1637_v16  ;;  %v5138_v16 = vld [vmem:[#allocation6 + $0x8c] ss:$16 sps:$4 sm:$0xff]  }
 0x344   :  { %3653 = vtanh.f32 %v1666_v10  ;;  %v5168_v10 = vld [vmem:[#allocation6 + $0x20] ss:$16 sps:$4 sm:$0xff]  }
 0x345   :  { %v3646_v6 = vpop.eup %3645 }
 0x346   :  { %v5109_v5 = vmul.f32 %v3646_v6, %v1651_v55  ;;  %v5157_v55 = vld [vmem:[#allocation6 + $0x4c] ss:$16 sps:$4 sm:$0xff]  }
 0x348   :  { %6233 = vst [vmem:[#allocation28_spill] sm:$0xff] %v5109_v5  ;;  %v1680_v38 = vpack.c.bf16 %v5109_v5, %v5109_v5  ;;  %v5241_v5 = vld [vmem:[%s6013_s4 + $0x4c] ss:$16 sps:$4 sm:$0xff]  }
 0x349   :  { %6241 = vst [vmem:[#allocation23_spill] sm:$0xff] %v5241_v5 }
 0x34a   :  { %1726 = vmatmul.mubr.bf16.vlgmr.msra.gmra.mxu0 %v1680_v38  ;;  %1767 = vmatmul.mubr.bf16.vlgmr.msra.gmra.mxu1 %v1680_v38  ;;  %v5165_v38 = vld [vmem:[#allocation6 + $0x2c] ss:$16 sps:$4 sm:$0xff]  }
 0x34b   :  { %1780 = vmatpush1.bf16.msra.mxu0 %v4966_v26  ;;  %1821 = vmatpush1.bf16.msra.mxu1 %v5115_v34 }
 0x34c   :  { %1781 = vmatprep.subr.bf16.mxu0 %v4970_v17  ;;  %1822 = vmatprep.subr.bf16.mxu1 %v5119_v4 }
 0x34d   :  { %v3648_v23 = vpop.eup %3647  ;;  %1811 = vmatprep.mubr.bf16.mxu0 %v6180_v33  ;;  %1852 = vmatprep.mubr.bf16.mxu1 %v6180_v33 }
 0x34e   :  { %v1659_v12 = vmul.f32 0.5, %v3648_v23  ;;  %v5171_v23 = vld [vmem:[#allocation6 + $0x28] ss:$16 sps:$4 sm:$0xff]  }
 0x34f   :  { %v3650_v37 = vpop.eup %3649  ;;  %1782 = vmatpush1.bf16.msra.mxu0 %v4976_v9  ;;  %1823 = vmatpush1.bf16.msra.mxu1 %v5125_v58 }
 0x350   :  { %v1660_v42 = vadd.f32 0.5, %v1659_v12  ;;  %v1663_v59 = vmul.f32 0.5, %v3650_v37  ;;  %1783 = vmatprep.subr.bf16.mxu0 %v4980_v31  ;;  %1824 = vmatprep.subr.bf16.mxu1 %v5129_v43  ;;  %v3652_v11 = vpop.eup %3651  ;;  %v5174_v37 = vld [vmem:[#allocation6 + $0x4] ss:$16 sps:$4 sm:$0xff]  }
 0x351   :  { %v3654_v6 = vpop.eup %3653 }
 0x352   :  { %v1664_v36 = vadd.f32 0.5, %v1663_v59  ;;  %v1671_v44 = vmul.f32 %v3652_v11, %v1660_v42  ;;  %v1668_v30 = vmul.f32 0.5, %v3654_v6  ;;  %v5177_v42 = vld [vmem:[#allocation6 + $0xc] ss:$16 sps:$4 sm:$0xff]   ;;  %v5206_v6 = vld [vmem:[%s6013_s4 + $0xa8] ss:$16 sps:$4 sm:$0xff]  }
 0x353   :  { %1784 = vmatpush1.bf16.msra.mxu0 %v4984_v3  ;;  %1825 = vmatpush1.bf16.msra.mxu1 %v5133_v48  ;;  %6236 = vst [vmem:[#allocation56_spill] sm:$0xff] %v5206_v6 }
 0x354   :  { %v1670_v49 = vmul.f32 %v1664_v36, %v4993_v14  ;;  %1785 = vmatprep.subr.bf16.mxu0 %v4989_v13  ;;  %1826 = vmatprep.subr.bf16.mxu1 %v5138_v16  ;;  %v5153_v14 = vld [vmem:[#allocation6 + $0x68] ss:$16 sps:$4 sm:$0xff]   ;;  %v1669_v12 = vadd.f32 0.5, %v1668_v30  ;;  %v5182_v36 = vld [vmem:[#allocation6] ss:$16 sps:$4 sm:$0xff]  }
 0x355   :  { %v5213_v30 = vld [vmem:[%s6013_s4 + $0x8c] ss:$16 sps:$4 sm:$0xff]  }
 0x356   :  { %v5141_v50 = vadd.f32 %v1671_v44, %v1670_v49  ;;  %v5185_v44 = vld [vmem:[#allocation6 + $0x8] ss:$16 sps:$4 sm:$0xff]   ;;  %6237 = vst [vmem:[#allocation30_spill] sm:$0xff] %v5213_v30 }
 0x357   :  { %1786 = vmatpush1.bf16.msra.mxu0 %v4995_v45  ;;  %1827 = vmatpush1.bf16.msra.mxu1 %v5144_v51 }
 0x358   :  { %3655 = vtanh.f32 %v5141_v50  ;;  %1787 = vmatprep.subr.bf16.mxu0 %v5000_v15  ;;  %1828 = vmatprep.subr.bf16.mxu1 %v5149_v52 }
 0x35b   :  { %1788 = vmatpush1.bf16.msra.mxu0 %v5004_v46  ;;  %1829 = vmatpush1.bf16.msra.mxu1 %v5153_v14 }
 0x35c   :  { %1789 = vmatprep.subr.bf16.mxu0 %v5008_v47  ;;  %1830 = vmatprep.subr.bf16.mxu1 %v5157_v55 }
 0x35f   :  { %1790 = vmatpush1.bf16.msra.mxu0 %v5012_v28  ;;  %1831 = vmatpush1.bf16.msra.mxu1 %v5161_v32 }
 0x360   :  { %1791 = vmatprep.subr.bf16.mxu0 %v5016_v35  ;;  %1832 = vmatprep.subr.bf16.mxu1 %v5165_v38 }
 0x363   :  { %1792 = vmatpush1.bf16.msra.mxu0 %v5168_v10  ;;  %1833 = vmatpush1.bf16.msra.mxu1 %v5171_v23 }
 0x364   :  { %1793 = vmatprep.subr.bf16.mxu0 %v5174_v37  ;;  %1834 = vmatprep.subr.bf16.mxu1 %v5177_v42 }
 0x365   :  { %v3656_v59 = vpop.eup %3655 }
 0x366   :  { %v5180_v11 = vmul.f32 %v3656_v59, %v1669_v12  ;;  %v5220_v12 = vld [vmem:[%s6013_s4 + $0x88] ss:$16 sps:$4 sm:$0xff]   ;;  %v5227_v59 = vld [vmem:[%s6013_s4 + $0x6c] ss:$16 sps:$4 sm:$0xff]  }
 0x367   :  { %1794 = vmatpush1.bf16.msra.mxu0 %v5182_v36  ;;  %1835 = vmatpush1.bf16.msra.mxu1 %v5185_v44  ;;  %6238 = vst [vmem:[#allocation32_spill] sm:$0xff] %v5220_v12  ;;  %6239 = vst [vmem:[#allocation69_spill] sm:$0xff] %v5227_v59 }
 0x368   :  { %6235 = vst [vmem:[#allocation55_spill] sm:$0xff] %v5180_v11  ;;  %v1681_v49 = vpack.c.bf16 %v5180_v11, %v5180_v11  ;;  %1919 = vmatprep.subr.bf16.mxu0 %v4842_v18  ;;  %1960 = vmatprep.subr.bf16.mxu1 %v5034_v21  ;;  %v5248_v11 = vld [vmem:[%s6013_s4 + $0x48] ss:$16 sps:$4 sm:$0xff]  }
 0x369   :  { %6242 = vst [vmem:[#allocation24_spill] sm:$0xff] %v5248_v11 }
 0x36a   :  { %1812 = vmatmul.mubr.bf16.vlgmr.msra.gmra.mxu0 %v1681_v49  ;;  %1853 = vmatmul.mubr.bf16.vlgmr.msra.gmra.mxu1 %v1681_v49  ;;  %v5234_v49 = vld [vmem:[%s6013_s4 + $0x68] ss:$16 sps:$4 sm:$0xff]  }
 0x36b   :  { %1920 = vmatpush1.bf16.msra.mxu0 %v4849_v19  ;;  %1961 = vmatpush1.bf16.msra.mxu1 %v5041_v22  ;;  %6240 = vst [vmem:[#allocation70_spill] sm:$0xff] %v5234_v49 }
 0x36c   :  { %1921 = vmatprep.subr.bf16.mxu0 %v4856_v20  ;;  %1962 = vmatprep.subr.bf16.mxu1 %v5048_v25 }
 0x36d   :  { %1951 = vmatprep.mubr.bf16.mxu0 %v6180_v33  ;;  %1992 = vmatprep.mubr.bf16.mxu1 %v6180_v33 }
 0x36f   :  { %1922 = vmatpush1.bf16.msra.mxu0 %v4865_v8  ;;  %1963 = vmatpush1.bf16.msra.mxu1 %v5057_v53 }
 0x370   :  { %1923 = vmatprep.subr.bf16.mxu0 %v4872_v62  ;;  %1964 = vmatprep.subr.bf16.mxu1 %v5064_v54 }
 0x373   :  { %1924 = vmatpush1.bf16.msra.mxu0 %v4879_v24  ;;  %1965 = vmatpush1.bf16.msra.mxu1 %v5206_v6 }
 0x374   :  { %1925 = vmatprep.subr.bf16.mxu0 %v4886_v29  ;;  %1966 = vmatprep.subr.bf16.mxu1 %v5213_v30 }
 0x377   :  { %1926 = vmatpush1.bf16.msra.mxu0 %v4893_v41  ;;  %1967 = vmatpush1.bf16.msra.mxu1 %v5220_v12 }
 0x378   :  { %1927 = vmatprep.subr.bf16.mxu0 %v4900_v27  ;;  %1968 = vmatprep.subr.bf16.mxu1 %v5227_v59  ;;  %v6250_v27 = vld [vmem:[#allocation59_spill] sm:$0xff] }
 0x37b   :  { %1928 = vmatpush1.bf16.msra.mxu0 %v4907_v39  ;;  %1969 = vmatpush1.bf16.msra.mxu1 %v5234_v49 }
 0x37c   :  { %1929 = vmatprep.subr.bf16.mxu0 %v4914_v61  ;;  %1970 = vmatprep.subr.bf16.mxu1 %v5241_v5  ;;  %v6249_v61 = vld [vmem:[#allocation35_spill] sm:$0xff] }
 0x37f   :  { %1930 = vmatpush1.bf16.msra.mxu0 %v4921_v1  ;;  %1971 = vmatpush1.bf16.msra.mxu1 %v5248_v11  ;;  %v6248_v11 = vld [vmem:[#allocation33_spill] sm:$0xff] }
 0x380   :  { %1931 = vmatprep.subr.bf16.mxu0 %v4928_v7  ;;  %1972 = vmatprep.subr.bf16.mxu1 %v5255_v60  ;;  %v5269_v7 = vld [vmem:[%s6013_s4 + $0xc] ss:$16 sps:$4 sm:$0xff]  }
 0x381   :  { %6245 = vst [vmem:[#allocation29_spill] sm:$0xff] %v5269_v7 }
 0x383   :  { %1932 = vmatpush1.bf16.msra.mxu0 %v4935_v0  ;;  %1973 = vmatpush1.bf16.msra.mxu1 %v5262_v63  ;;  %v5276_v0 = vld [vmem:[%s6013_s4 + $0x8] ss:$16 sps:$4 sm:$0xff]   ;;  %v5280_v63 = vld [vmem:[#allocation6 + $0xec] ss:$16 sps:$4 sm:$0xff]  }
 0x384   :  { %1933 = vmatprep.subr.bf16.mxu0 %v6220_v56  ;;  %1974 = vmatprep.subr.bf16.mxu1 %v5269_v7  ;;  %6246 = vst [vmem:[#allocation31_spill] sm:$0xff] %v5276_v0  ;;  %6247 = vst [vmem:[#allocation57_spill] sm:$0xff] %v5280_v63 }
 0x387   :  { %1934 = vmatpush1.bf16.msra.mxu0 %v5090_v40  ;;  %1975 = vmatpush1.bf16.msra.mxu1 %v5276_v0 }
 0x388   :  { %2005 = vmatprep.subr.bf16.mxu0 %v5094_v57  ;;  %2046 = vmatprep.subr.bf16.mxu1 %v5280_v63  ;;  %v6251_v63 = vld [vmem:[#allocation60_spill] sm:$0xff] }
 0x40a   :  { %v1727_v56 = vpop.f32.mrf.mxu0  ;;  %v1768_v60 = vpop.f32.mrf.mxu1 }
 0x40b   :  { %v1775_v1 = vadd.f32 %v1727_v56, %v6248_v11  ;;  %v1777_v0 = vadd.f32 %v1768_v60, %v6250_v27  ;;  %v6252_v60 = vld [vmem:[#allocation38_spill] sm:$0xff] }
 0x40c   :  { %v1729_v7 = vpop.f32.mrf.mxu0  ;;  %v1770_v5 = vpop.f32.mrf.mxu1 }
 0x40d   :  { %v1865_v40 = vmul.f32 0.5, %v1775_v1  ;;  %v1776_v49 = vadd.f32 %v1729_v7, %v6249_v61  ;;  %v1778_v30 = vadd.f32 %v1770_v5, %v6251_v63 }
 0x40e   :  { %v1731_v39 = vpop.f32.mrf.mxu0  ;;  %v1772_v59 = vpop.f32.mrf.mxu1 }
 0x40f   :  { %3657 = vtanh.f32 %v1865_v40  ;;  %v1869_v12 = vmul.f32 0.5, %v1776_v49  ;;  %v1874_v29 = vmul.f32 0.5, %v1778_v30 }
 0x410   :  { %v1732_v57 = vpop.f32.mrf.mxu0  ;;  %v1773_v41 = vpop.f32.mrf.mxu1 }
 0x411   :  { %3659 = vtanh.f32 %v1869_v12  ;;  %v6253_v12 = vld [vmem:[#allocation40_spill] sm:$0xff] }
 0x412   :  { %3661 = vtanh.f32 %v1777_v0 }
 0x413   :  { %3663 = vtanh.f32 %v1874_v29 }
 0x41c   :  { %v3658_v6 = vpop.eup %3657 }
 0x41d   :  { %v1867_v56 = vmul.f32 0.5, %v3658_v6 }
 0x41e   :  { %v3660_v11 = vpop.eup %3659 }
 0x41f   :  { %v1868_v24 = vadd.f32 0.5, %v1867_v56  ;;  %v1871_v1 = vmul.f32 0.5, %v3660_v11  ;;  %v3662_v61 = vpop.eup %3661 }
 0x420   :  { %v3664_v57 = vpop.eup %3663 }
 0x421   :  { %v1872_v39 = vadd.f32 0.5, %v1871_v1  ;;  %v1879_v7 = vmul.f32 %v3662_v61, %v1868_v24  ;;  %v1876_v56 = vmul.f32 0.5, %v3664_v57  ;;  %v6254_v24 = vld [vmem:[#allocation73_spill] sm:$0xff] }
 0x423   :  { %v1878_v40 = vmul.f32 %v1872_v39, %v5103_v2  ;;  %v1877_v39 = vadd.f32 0.5, %v1876_v56 }
 0x425   :  { %v5288_v27 = vadd.f32 %v1879_v7, %v1878_v40 }
 0x427   :  { %3665 = vtanh.f32 %v5288_v27 }
 0x42a   :  { %v1813_v41 = vpop.f32.mrf.mxu0  ;;  %v1854_v0 = vpop.f32.mrf.mxu1 }
 0x42b   :  { %v1861_v63 = vadd.f32 %v1813_v41, %v6252_v60  ;;  %v1863_v2 = vadd.f32 %v1854_v0, %v6254_v24  ;;  %v6256_v41 = vld [vmem:[#allocation74_spill] sm:$0xff] }
 0x42c   :  { %v1815_v5 = vpop.f32.mrf.mxu0  ;;  %v1856_v6 = vpop.f32.mrf.mxu1 }
 0x42d   :  { %v1883_v30 = vmul.f32 0.5, %v1861_v63  ;;  %v1862_v59 = vadd.f32 %v1815_v5, %v6253_v12  ;;  %v1864_v60 = vadd.f32 %v1856_v6, %v6256_v41  ;;  %v6262_v41 = vld [vmem:[#allocation14_spill] sm:$0xff] }
 0x42e   :  { %v1817_v29 = vpop.f32.mrf.mxu0  ;;  %v1858_v49 = vpop.f32.mrf.mxu1 }
 0x42f   :  { %3667 = vtanh.f32 %v1883_v30  ;;  %v1887_v11 = vmul.f32 0.5, %v1862_v59  ;;  %v1892_v0 = vmul.f32 0.5, %v1864_v60  ;;  %v6263_v60 = vld [vmem:[#allocation32_spill] sm:$0xff] }
 0x430   :  { %v1818_v1 = vpop.f32.mrf.mxu0  ;;  %v1859_v61 = vpop.f32.mrf.mxu1 }
 0x431   :  { %3669 = vtanh.f32 %v1887_v11 }
 0x432   :  { %3671 = vtanh.f32 %v1863_v2 }
 0x433   :  { %3673 = vtanh.f32 %v1892_v0  ;;  %v6266_v0 = vld [vmem:[#allocation16_spill] sm:$0xff] }
 0x434   :  { %v3666_v7 = vpop.eup %3665 }
 0x435   :  { %v5294_v40 = vmul.f32 %v3666_v7, %v1877_v39  ;;  %v6260_v7 = vld [vmem:[#allocation13_spill] sm:$0xff] }
 0x437   :  { %6255 = vst [vmem:[#allocation58_spill] sm:$0xff] %v5294_v40  ;;  %v1906_v63 = vpack.c.bf16 %v5294_v40, %v5294_v40 }
 0x439   :  { %1952 = vmatmul.mubr.bf16.vlgmr.msra.gmra.mxu0 %v1906_v63  ;;  %1993 = vmatmul.mubr.bf16.vlgmr.msra.gmra.mxu1 %v1906_v63  ;;  %v6264_v63 = vld [vmem:[#allocation15_spill] sm:$0xff] }
 0x43a   :  { %2006 = vmatpush1.bf16.msra.mxu0 %v4966_v26  ;;  %2047 = vmatpush1.bf16.msra.mxu1 %v5115_v34 }
 0x43b   :  { %2007 = vmatprep.subr.bf16.mxu0 %v4970_v17  ;;  %2048 = vmatprep.subr.bf16.mxu1 %v5119_v4 }
 0x43c   :  { %v3668_v57 = vpop.eup %3667  ;;  %2037 = vmatprep.mubr.bf16.mxu0 %v6180_v33  ;;  %2078 = vmatprep.mubr.bf16.mxu1 %v6180_v33 }
 0x43d   :  { %v1885_v5 = vmul.f32 0.5, %v3668_v57  ;;  %v6268_v57 = vld [vmem:[#allocation17_spill] sm:$0xff] }
 0x43e   :  { %v3670_v6 = vpop.eup %3669  ;;  %2008 = vmatpush1.bf16.msra.mxu0 %v4976_v9  ;;  %2049 = vmatpush1.bf16.msra.mxu1 %v5125_v58 }
 0x43f   :  { %v1886_v30 = vadd.f32 0.5, %v1885_v5  ;;  %v1889_v12 = vmul.f32 0.5, %v3670_v6  ;;  %2009 = vmatprep.subr.bf16.mxu0 %v4980_v31  ;;  %2050 = vmatprep.subr.bf16.mxu1 %v5129_v43  ;;  %v3672_v59 = vpop.eup %3671  ;;  %v6269_v5 = vld [vmem:[#allocation23_spill] sm:$0xff]  ;;  %v6270_v6 = vld [vmem:[#allocation18_spill] sm:$0xff] }
 0x441   :  { %v1890_v29 = vadd.f32 0.5, %v1889_v12  ;;  %v1897_v49 = vmul.f32 %v3672_v59, %v1886_v30  ;;  %v6271_v30 = vld [vmem:[#allocation24_spill] sm:$0xff]  ;;  %v6272_v12 = vld [vmem:[#allocation19_spill] sm:$0xff]  ;;  %v6273_v59 = vld [vmem:[#allocation25_spill] sm:$0xff] }
 0x442   :  { %2010 = vmatpush1.bf16.msra.mxu0 %v4984_v3  ;;  %2051 = vmatpush1.bf16.msra.mxu1 %v5133_v48 }
 0x443   :  { %v1896_v56 = vmul.f32 %v1890_v29, %v5141_v50  ;;  %2011 = vmatprep.subr.bf16.mxu0 %v4989_v13  ;;  %2052 = vmatprep.subr.bf16.mxu1 %v5138_v16  ;;  %v3674_v50 = vpop.eup %3673  ;;  %v6274_v29 = vld [vmem:[#allocation20_spill] sm:$0xff] }
 0x444   :  { %v1894_v2 = vmul.f32 0.5, %v3674_v50  ;;  %v6277_v50 = vld [vmem:[#allocation29_spill] sm:$0xff] }
 0x445   :  { %v5314_v24 = vadd.f32 %v1897_v49, %v1896_v56  ;;  %v6275_v49 = vld [vmem:[#allocation26_spill] sm:$0xff]  ;;  %v6276_v56 = vld [vmem:[#allocation21_spill] sm:$0xff] }
 0x446   :  { %2012 = vmatpush1.bf16.msra.mxu0 %v4995_v45  ;;  %2053 = vmatpush1.bf16.msra.mxu1 %v5144_v51  ;;  %v1895_v11 = vadd.f32 0.5, %v1894_v2  ;;  %v6278_v2 = vld [vmem:[#allocation11_spill] sm:$0xff] }
 0x447   :  { %3675 = vtanh.f32 %v5314_v24  ;;  %2013 = vmatprep.subr.bf16.mxu0 %v5000_v15  ;;  %2054 = vmatprep.subr.bf16.mxu1 %v5149_v52 }
 0x44a   :  { %2014 = vmatpush1.bf16.msra.mxu0 %v5004_v46  ;;  %2055 = vmatpush1.bf16.msra.mxu1 %v5153_v14 }
 0x44b   :  { %2015 = vmatprep.subr.bf16.mxu0 %v5008_v47  ;;  %2056 = vmatprep.subr.bf16.mxu1 %v5157_v55 }
 0x44e   :  { %2016 = vmatpush1.bf16.msra.mxu0 %v5012_v28  ;;  %2057 = vmatpush1.bf16.msra.mxu1 %v5161_v32 }
 0x44f   :  { %2017 = vmatprep.subr.bf16.mxu0 %v5016_v35  ;;  %2058 = vmatprep.subr.bf16.mxu1 %v5165_v38 }
 0x452   :  { %2018 = vmatpush1.bf16.msra.mxu0 %v5168_v10  ;;  %2059 = vmatpush1.bf16.msra.mxu1 %v5171_v23 }
 0x453   :  { %2019 = vmatprep.subr.bf16.mxu0 %v5174_v37  ;;  %2060 = vmatprep.subr.bf16.mxu1 %v5177_v42 }
 0x454   :  { %v3676_v1 = vpop.eup %3675 }
 0x455   :  { %v5333_v61 = vmul.f32 %v3676_v1, %v1895_v11  ;;  %v6279_v11 = vld [vmem:[#allocation31_spill] sm:$0xff] }
 0x456   :  { %2020 = vmatpush1.bf16.msra.mxu0 %v5182_v36  ;;  %2061 = vmatpush1.bf16.msra.mxu1 %v5185_v44  ;;  %v6280_v1 = vld [vmem:[#allocation27_spill] sm:$0xff] }
 0x457   :  { %6257 = vst [vmem:[#allocation34_spill] sm:$0xff] %v5333_v61  ;;  %v1907_v39 = vpack.c.bf16 %v5333_v61, %v5333_v61  ;;  %2145 = vmatprep.subr.bf16.mxu0 %v4842_v18  ;;  %2186 = vmatprep.subr.bf16.mxu1 %v5034_v21  ;;  %v6258_v18 = vld [vmem:[#allocation12_spill] sm:$0xff]  ;;  %v6284_v61 = vld [vmem:[#allocation61_spill] sm:$0xff] }
 0x459   :  { %2038 = vmatmul.mubr.bf16.vlgmr.msra.gmra.mxu0 %v1907_v39  ;;  %2079 = vmatmul.mubr.bf16.vlgmr.msra.gmra.mxu1 %v1907_v39  ;;  %v6281_v39 = vld [vmem:[#allocation57_spill] sm:$0xff] }
 0x45a   :  { %2146 = vmatpush1.bf16.msra.mxu0 %v4849_v19  ;;  %2187 = vmatpush1.bf16.msra.mxu1 %v5041_v22  ;;  %v6259_v19 = vld [vmem:[#allocation56_spill] sm:$0xff] }
 0x45b   :  { %2147 = vmatprep.subr.bf16.mxu0 %v4856_v20  ;;  %2188 = vmatprep.subr.bf16.mxu1 %v5048_v25  ;;  %v6261_v20 = vld [vmem:[#allocation30_spill] sm:$0xff] }
 0x45c   :  { %2177 = vmatprep.mubr.bf16.mxu0 %v6180_v33  ;;  %2218 = vmatprep.mubr.bf16.mxu1 %v6180_v33 }
 0x45e   :  { %2148 = vmatpush1.bf16.msra.mxu0 %v4865_v8  ;;  %2189 = vmatpush1.bf16.msra.mxu1 %v5057_v53  ;;  %v6265_v8 = vld [vmem:[#allocation69_spill] sm:$0xff] }
 0x45f   :  { %2149 = vmatprep.subr.bf16.mxu0 %v4872_v62  ;;  %2190 = vmatprep.subr.bf16.mxu1 %v5064_v54  ;;  %v6267_v62 = vld [vmem:[#allocation70_spill] sm:$0xff] }
 0x462   :  { %2150 = vmatpush1.bf16.msra.mxu0 %v6258_v18  ;;  %2191 = vmatpush1.bf16.msra.mxu1 %v6259_v19 }
 0x463   :  { %2151 = vmatprep.subr.bf16.mxu0 %v6260_v7  ;;  %2192 = vmatprep.subr.bf16.mxu1 %v6261_v20 }
 0x466   :  { %2152 = vmatpush1.bf16.msra.mxu0 %v6262_v41  ;;  %2193 = vmatpush1.bf16.msra.mxu1 %v6263_v60  ;;  %v6282_v41 = vld [vmem:[#allocation37_spill] sm:$0xff] }
 0x467   :  { %2153 = vmatprep.subr.bf16.mxu0 %v6264_v63  ;;  %2194 = vmatprep.subr.bf16.mxu1 %v6265_v8 }
 0x46a   :  { %2154 = vmatpush1.bf16.msra.mxu0 %v6266_v0  ;;  %2195 = vmatpush1.bf16.msra.mxu1 %v6267_v62 }
 0x46b   :  { %2155 = vmatprep.subr.bf16.mxu0 %v6268_v57  ;;  %2196 = vmatprep.subr.bf16.mxu1 %v6269_v5 }
 0x46e   :  { %2156 = vmatpush1.bf16.msra.mxu0 %v6270_v6  ;;  %2197 = vmatpush1.bf16.msra.mxu1 %v6271_v30 }
 0x46f   :  { %2157 = vmatprep.subr.bf16.mxu0 %v6272_v12  ;;  %2198 = vmatprep.subr.bf16.mxu1 %v6273_v59  ;;  %v6283_v12 = vld [vmem:[#allocation39_spill] sm:$0xff] }
 0x472   :  { %2158 = vmatpush1.bf16.msra.mxu0 %v6274_v29  ;;  %2199 = vmatpush1.bf16.msra.mxu1 %v6275_v49 }
 0x473   :  { %2159 = vmatprep.subr.bf16.mxu0 %v6276_v56  ;;  %2200 = vmatprep.subr.bf16.mxu1 %v6277_v50 }
 0x476   :  { %2160 = vmatpush1.bf16.msra.mxu0 %v6278_v2  ;;  %2201 = vmatpush1.bf16.msra.mxu1 %v6279_v11 }
 0x477   :  { %2231 = vmatprep.subr.bf16.mxu0 %v6280_v1  ;;  %2272 = vmatprep.subr.bf16.mxu1 %v6281_v39  ;;  %v6285_v39 = vld [vmem:[#allocation62_spill] sm:$0xff] }
 0x4f9   :  { %v1953_v18 = vpop.f32.mrf.mxu0  ;;  %v1994_v7 = vpop.f32.mrf.mxu1 }
 0x4fa   :  { %v2001_v63 = vadd.f32 %v1953_v18, %v6282_v41  ;;  %v2003_v2 = vadd.f32 %v1994_v7, %v6284_v61 }
 0x4fb   :  { %v1955_v0 = vpop.f32.mrf.mxu0  ;;  %v1996_v57 = vpop.f32.mrf.mxu1 }
 0x4fc   :  { %v2091_v6 = vmul.f32 0.5, %v2001_v63  ;;  %v2002_v29 = vadd.f32 %v1955_v0, %v6283_v12  ;;  %v2004_v1 = vadd.f32 %v1996_v57, %v6285_v39  ;;  %v6287_v57 = vld [vmem:[#allocation44_spill] sm:$0xff] }
 0x4fd   :  { %v1957_v56 = vpop.f32.mrf.mxu0  ;;  %v1998_v40 = vpop.f32.mrf.mxu1 }
 0x4fe   :  { %3677 = vtanh.f32 %v2091_v6  ;;  %v2095_v50 = vmul.f32 0.5, %v2002_v29  ;;  %v2100_v59 = vmul.f32 0.5, %v2004_v1 }
 0x4ff   :  { %v1958_v11 = vpop.f32.mrf.mxu0  ;;  %v1999_v49 = vpop.f32.mrf.mxu1 }
 0x500   :  { %3679 = vtanh.f32 %v2095_v50 }
 0x501   :  { %3681 = vtanh.f32 %v2003_v2  ;;  %v6286_v2 = vld [vmem:[#allocation42_spill] sm:$0xff] }
 0x502   :  { %3683 = vtanh.f32 %v2100_v59 }
 0x50b   :  { %v3678_v30 = vpop.eup %3677 }
 0x50c   :  { %v2093_v18 = vmul.f32 0.5, %v3678_v30 }
 0x50d   :  { %v3680_v41 = vpop.eup %3679 }
 0x50e   :  { %v2094_v5 = vadd.f32 0.5, %v2093_v18  ;;  %v2097_v63 = vmul.f32 0.5, %v3680_v41  ;;  %v3682_v0 = vpop.eup %3681 }
 0x50f   :  { %v3684_v1 = vpop.eup %3683 }
 0x510   :  { %v2098_v12 = vadd.f32 0.5, %v2097_v63  ;;  %v2105_v40 = vmul.f32 %v3682_v0, %v2094_v5  ;;  %v2102_v18 = vmul.f32 0.5, %v3684_v1  ;;  %v6288_v5 = vld [vmem:[#allocation75_spill] sm:$0xff] }
 0x512   :  { %v2104_v6 = vmul.f32 %v2098_v12, %v5288_v27  ;;  %v2103_v12 = vadd.f32 0.5, %v2102_v18  ;;  %v5506_v18 = vld [vmem:[%s6013_s4 + $0x44] ss:$16 sps:$4 sm:$0xff]  }
 0x514   :  { %v5380_v61 = vadd.f32 %v2105_v40, %v2104_v6 }
 0x516   :  { %3685 = vtanh.f32 %v5380_v61 }
 0x519   :  { %v2039_v49 = vpop.f32.mrf.mxu0  ;;  %v2080_v50 = vpop.f32.mrf.mxu1 }
 0x51a   :  { %v2087_v11 = vadd.f32 %v2039_v49, %v6286_v2  ;;  %v2089_v27 = vadd.f32 %v2080_v50, %v6288_v5  ;;  %v6290_v49 = vld [vmem:[#allocation76_spill] sm:$0xff]  ;;  %v6292_v5 = vld [vmem:[#allocation23_spill] sm:$0xff] }
 0x51b   :  { %v2041_v39 = vpop.f32.mrf.mxu0  ;;  %v2082_v30 = vpop.f32.mrf.mxu1 }
 0x51c   :  { %v2109_v7 = vmul.f32 0.5, %v2087_v11  ;;  %v2088_v29 = vadd.f32 %v2041_v39, %v6287_v57  ;;  %v2090_v2 = vadd.f32 %v2082_v30, %v6290_v49  ;;  %v5534_v49 = vld [vmem:[%s6013_s4 + $0x4] ss:$16 sps:$4 sm:$0xff]  }
 0x51d   :  { %v2043_v59 = vpop.f32.mrf.mxu0  ;;  %v2084_v56 = vpop.f32.mrf.mxu1  ;;  %6296 = vst [vmem:[#allocation72_spill] sm:$0xff] %v5534_v49 }
 0x51e   :  { %3687 = vtanh.f32 %v2109_v7  ;;  %v2113_v41 = vmul.f32 0.5, %v2088_v29  ;;  %v2118_v50 = vmul.f32 0.5, %v2090_v2  ;;  %v5499_v56 = vld [vmem:[%s6013_s4 + $0x60] ss:$16 sps:$4 sm:$0xff]   ;;  %v6297_v2 = vld [vmem:[#allocation29_spill] sm:$0xff] }
 0x51f   :  { %v2044_v63 = vpop.f32.mrf.mxu0  ;;  %v2085_v0 = vpop.f32.mrf.mxu1 }
 0x520   :  { %3689 = vtanh.f32 %v2113_v41  ;;  %v6293_v41 = vld [vmem:[#allocation24_spill] sm:$0xff]  ;;  %v6294_v0 = vld [vmem:[#allocation25_spill] sm:$0xff] }
 0x521   :  { %3691 = vtanh.f32 %v2089_v27  ;;  %v5513_v27 = vld [vmem:[%s6013_s4 + $0x40] ss:$16 sps:$4 sm:$0xff]   ;;  %v5520_v63 = vld [vmem:[%s6013_s4 + $0x24] ss:$16 sps:$4 sm:$0xff]  }
 0x522   :  { %3693 = vtanh.f32 %v2118_v50  ;;  %v6299_v50 = vld [vmem:[#allocation31_spill] sm:$0xff] }
 0x523   :  { %v3686_v40 = vpop.eup %3685 }
 0x524   :  { %v5386_v6 = vmul.f32 %v3686_v40, %v2103_v12  ;;  %v5527_v12 = vld [vmem:[%s6013_s4 + $0x20] ss:$16 sps:$4 sm:$0xff]  }
 0x525   :  { %v6295_v40 = vld [vmem:[#allocation26_spill] sm:$0xff] }
 0x526   :  { %6289 = vst [vmem:[#allocation36_spill] sm:$0xff] %v5386_v6  ;;  %v2132_v11 = vpack.c.bf16 %v5386_v6, %v5386_v6 }
 0x528   :  { %2178 = vmatmul.mubr.bf16.vlgmr.msra.gmra.mxu0 %v2132_v11  ;;  %2219 = vmatmul.mubr.bf16.vlgmr.msra.gmra.mxu1 %v2132_v11  ;;  %v6298_v11 = vld [vmem:[#allocation11_spill] sm:$0xff] }
 0x529   :  { %2232 = vmatpush1.bf16.msra.mxu0 %v4966_v26  ;;  %2273 = vmatpush1.bf16.msra.mxu1 %v5115_v34 }
 0x52a   :  { %2233 = vmatprep.subr.bf16.mxu0 %v4970_v17  ;;  %2274 = vmatprep.subr.bf16.mxu1 %v5119_v4 }
 0x52b   :  { %v3688_v1 = vpop.eup %3687  ;;  %2263 = vmatprep.mubr.bf16.mxu0 %v6180_v33  ;;  %2304 = vmatprep.mubr.bf16.mxu1 %v6180_v33 }
 0x52c   :  { %v2111_v39 = vmul.f32 0.5, %v3688_v1  ;;  %v6300_v1 = vld [vmem:[#allocation27_spill] sm:$0xff] }
 0x52d   :  { %v3690_v30 = vpop.eup %3689  ;;  %2234 = vmatpush1.bf16.msra.mxu0 %v4976_v9  ;;  %2275 = vmatpush1.bf16.msra.mxu1 %v5125_v58 }
 0x52e   :  { %v2112_v7 = vadd.f32 0.5, %v2111_v39  ;;  %v2115_v26 = vmul.f32 0.5, %v3690_v30  ;;  %2235 = vmatprep.subr.bf16.mxu0 %v4980_v31  ;;  %2276 = vmatprep.subr.bf16.mxu1 %v5129_v43  ;;  %v3692_v17 = vpop.eup %3691  ;;  %v6301_v39 = vld [vmem:[#allocation57_spill] sm:$0xff] }
 0x52f   :  { %v3694_v31 = vpop.eup %3693 }
 0x530   :  { %v2116_v57 = vadd.f32 0.5, %v2115_v26  ;;  %v2123_v29 = vmul.f32 %v3692_v17, %v2112_v7  ;;  %v6302_v26 = vld [vmem:[#allocation41_spill] sm:$0xff] }
 0x531   :  { %2236 = vmatpush1.bf16.msra.mxu0 %v4984_v3  ;;  %2277 = vmatpush1.bf16.msra.mxu1 %v5133_v48  ;;  %v2120_v3 = vmul.f32 0.5, %v3694_v31  ;;  %v6303_v31 = vld [vmem:[#allocation43_spill] sm:$0xff] }
 0x532   :  { %v2122_v59 = vmul.f32 %v2116_v57, %v5314_v24  ;;  %2237 = vmatprep.subr.bf16.mxu0 %v4989_v13  ;;  %2278 = vmatprep.subr.bf16.mxu1 %v5138_v16  ;;  %v5492_v24 = vld [vmem:[%s6013_s4 + $0x64] ss:$16 sps:$4 sm:$0xff]  }
 0x533   :  { %v2121_v13 = vadd.f32 0.5, %v2120_v3 }
 0x534   :  { %v5406_v9 = vadd.f32 %v2123_v29, %v2122_v59 }
 0x535   :  { %2238 = vmatpush1.bf16.msra.mxu0 %v4995_v45  ;;  %2279 = vmatpush1.bf16.msra.mxu1 %v5144_v51 }
 0x536   :  { %3695 = vtanh.f32 %v5406_v9  ;;  %2239 = vmatprep.subr.bf16.mxu0 %v5000_v15  ;;  %2280 = vmatprep.subr.bf16.mxu1 %v5149_v52 }
 0x539   :  { %2240 = vmatpush1.bf16.msra.mxu0 %v5004_v46  ;;  %2281 = vmatpush1.bf16.msra.mxu1 %v5153_v14 }
 0x53a   :  { %2241 = vmatprep.subr.bf16.mxu0 %v5008_v47  ;;  %2282 = vmatprep.subr.bf16.mxu1 %v5157_v55  ;;  %v5434_v47 = vld [vmem:[%s6013_s4 + $0xe4] ss:$16 sps:$4 sm:$0xff]  }
 0x53d   :  { %2242 = vmatpush1.bf16.msra.mxu0 %v5012_v28  ;;  %2283 = vmatpush1.bf16.msra.mxu1 %v5161_v32  ;;  %v5441_v28 = vld [vmem:[%s6013_s4 + $0xe0] ss:$16 sps:$4 sm:$0xff]  }
 0x53e   :  { %2243 = vmatprep.subr.bf16.mxu0 %v5016_v35  ;;  %2284 = vmatprep.subr.bf16.mxu1 %v5165_v38  ;;  %v5448_v35 = vld [vmem:[%s6013_s4 + $0xc4] ss:$16 sps:$4 sm:$0xff]  }
 0x541   :  { %2244 = vmatpush1.bf16.msra.mxu0 %v5168_v10  ;;  %2285 = vmatpush1.bf16.msra.mxu1 %v5171_v23 }
 0x542   :  { %2245 = vmatprep.subr.bf16.mxu0 %v5174_v37  ;;  %2286 = vmatprep.subr.bf16.mxu1 %v5177_v42 }
 0x543   :  { %v3696_v45 = vpop.eup %3695 }
 0x544   :  { %v5425_v15 = vmul.f32 %v3696_v45, %v2121_v13 }
 0x545   :  { %2246 = vmatpush1.bf16.msra.mxu0 %v5182_v36  ;;  %2287 = vmatpush1.bf16.msra.mxu1 %v5185_v44 }
 0x546   :  { %6291 = vst [vmem:[#allocation71_spill] sm:$0xff] %v5425_v15  ;;  %v2133_v46 = vpack.c.bf16 %v5425_v15, %v5425_v15  ;;  %2371 = vmatprep.subr.bf16.mxu0 %v5434_v47  ;;  %2412 = vmatprep.subr.bf16.mxu1 %v5034_v21  ;;  %v5457_v21 = vld [vmem:[%s6013_s4 + $0xc0] ss:$16 sps:$4 sm:$0xff]  }
 0x548   :  { %2264 = vmatmul.mubr.bf16.vlgmr.msra.gmra.mxu0 %v2133_v46  ;;  %2305 = vmatmul.mubr.bf16.vlgmr.msra.gmra.mxu1 %v2133_v46  ;;  %v6304_v46 = vld [vmem:[#allocation63_spill] sm:$0xff] }
 0x549   :  { %2372 = vmatpush1.bf16.msra.mxu0 %v5441_v28  ;;  %2413 = vmatpush1.bf16.msra.mxu1 %v5041_v22  ;;  %v5464_v22 = vld [vmem:[%s6013_s4 + $0xa4] ss:$16 sps:$4 sm:$0xff]  }
 0x54a   :  { %2373 = vmatprep.subr.bf16.mxu0 %v5448_v35  ;;  %2414 = vmatprep.subr.bf16.mxu1 %v5048_v25  ;;  %v5471_v25 = vld [vmem:[%s6013_s4 + $0xa0] ss:$16 sps:$4 sm:$0xff]  }
 0x54b   :  { %2403 = vmatprep.mubr.bf16.mxu0 %v6180_v33  ;;  %2444 = vmatprep.mubr.bf16.mxu1 %v6180_v33 }
 0x54d   :  { %2374 = vmatpush1.bf16.msra.mxu0 %v5457_v21  ;;  %2415 = vmatpush1.bf16.msra.mxu1 %v5057_v53  ;;  %v5478_v53 = vld [vmem:[%s6013_s4 + $0x84] ss:$16 sps:$4 sm:$0xff]  }
 0x54e   :  { %2375 = vmatprep.subr.bf16.mxu0 %v5464_v22  ;;  %2416 = vmatprep.subr.bf16.mxu1 %v5064_v54  ;;  %v5485_v54 = vld [vmem:[%s6013_s4 + $0x80] ss:$16 sps:$4 sm:$0xff]  }
 0x551   :  { %2376 = vmatpush1.bf16.msra.mxu0 %v5471_v25  ;;  %2417 = vmatpush1.bf16.msra.mxu1 %v6259_v19 }
 0x552   :  { %2377 = vmatprep.subr.bf16.mxu0 %v5478_v53  ;;  %2418 = vmatprep.subr.bf16.mxu1 %v6261_v20 }
 0x555   :  { %2378 = vmatpush1.bf16.msra.mxu0 %v5485_v54  ;;  %2419 = vmatpush1.bf16.msra.mxu1 %v6263_v60 }
 0x556   :  { %2379 = vmatprep.subr.bf16.mxu0 %v5492_v24  ;;  %2420 = vmatprep.subr.bf16.mxu1 %v6265_v8 }
 0x559   :  { %2380 = vmatpush1.bf16.msra.mxu0 %v5499_v56  ;;  %2421 = vmatpush1.bf16.msra.mxu1 %v6267_v62 }
 0x55a   :  { %2381 = vmatprep.subr.bf16.mxu0 %v5506_v18  ;;  %2422 = vmatprep.subr.bf16.mxu1 %v6292_v5 }
 0x55d   :  { %2382 = vmatpush1.bf16.msra.mxu0 %v5513_v27  ;;  %2423 = vmatpush1.bf16.msra.mxu1 %v6293_v41 }
 0x55e   :  { %2383 = vmatprep.subr.bf16.mxu0 %v5520_v63  ;;  %2424 = vmatprep.subr.bf16.mxu1 %v6294_v0 }
 0x561   :  { %2384 = vmatpush1.bf16.msra.mxu0 %v5527_v12  ;;  %2425 = vmatpush1.bf16.msra.mxu1 %v6295_v40 }
 0x562   :  { %2385 = vmatprep.subr.bf16.mxu0 %v5534_v49  ;;  %2426 = vmatprep.subr.bf16.mxu1 %v6297_v2 }
 0x565   :  { %2386 = vmatpush1.bf16.msra.mxu0 %v6298_v11  ;;  %2427 = vmatpush1.bf16.msra.mxu1 %v6299_v50 }
 0x566   :  { %2457 = vmatprep.subr.bf16.mxu0 %v6300_v1  ;;  %2498 = vmatprep.subr.bf16.mxu1 %v6301_v39  ;;  %v6305_v1 = vld [vmem:[#allocation64_spill] sm:$0xff] }
 0x5e8   :  { %v2179_v30 = vpop.f32.mrf.mxu0  ;;  %v2220_v7 = vpop.f32.mrf.mxu1 }
 0x5e9   :  { %v2227_v17 = vadd.f32 %v2179_v30, %v6302_v26  ;;  %v2229_v11 = vadd.f32 %v2220_v7, %v6304_v46  ;;  %v6307_v46 = vld [vmem:[#allocation48_spill] sm:$0xff] }
 0x5ea   :  { %v2181_v57 = vpop.f32.mrf.mxu0  ;;  %v2222_v29 = vpop.f32.mrf.mxu1 }
 0x5eb   :  { %v2317_v59 = vmul.f32 0.5, %v2227_v17  ;;  %v2228_v3 = vadd.f32 %v2181_v57, %v6303_v31  ;;  %v2230_v39 = vadd.f32 %v2222_v29, %v6305_v1 }
 0x5ec   :  { %v2183_v13 = vpop.f32.mrf.mxu0  ;;  %v2224_v45 = vpop.f32.mrf.mxu1 }
 0x5ed   :  { %3697 = vtanh.f32 %v2317_v59  ;;  %v2321_v6 = vmul.f32 0.5, %v2228_v3  ;;  %v2326_v2 = vmul.f32 0.5, %v2230_v39 }
 0x5ee   :  { %v2184_v15 = vpop.f32.mrf.mxu0  ;;  %v2225_v50 = vpop.f32.mrf.mxu1 }
 0x5ef   :  { %3699 = vtanh.f32 %v2321_v6  ;;  %v6306_v50 = vld [vmem:[#allocation46_spill] sm:$0xff] }
 0x5f0   :  { %3701 = vtanh.f32 %v2229_v11 }
 0x5f1   :  { %3703 = vtanh.f32 %v2326_v2 }
 0x5fa   :  { %v3698_v49 = vpop.eup %3697 }
 0x5fb   :  { %v2319_v30 = vmul.f32 0.5, %v3698_v49 }
 0x5fc   :  { %v3700_v26 = vpop.eup %3699 }
 0x5fd   :  { %v2320_v40 = vadd.f32 0.5, %v2319_v30  ;;  %v2323_v17 = vmul.f32 0.5, %v3700_v26  ;;  %v3702_v57 = vpop.eup %3701 }
 0x5fe   :  { %v3704_v39 = vpop.eup %3703 }
 0x5ff   :  { %v2324_v31 = vadd.f32 0.5, %v2323_v17  ;;  %v2331_v13 = vmul.f32 %v3702_v57, %v2320_v40  ;;  %v2328_v30 = vmul.f32 0.5, %v3704_v39  ;;  %v6308_v40 = vld [vmem:[#allocation77_spill] sm:$0xff]  ;;  %v5558_v39 = vld [vmem:[#allocation6 + $0xe0] ss:$16 sps:$4 sm:$0xff]  }
 0x601   :  { %v2330_v59 = vmul.f32 %v2324_v31, %v5380_v61  ;;  %v2329_v31 = vadd.f32 0.5, %v2328_v30 }
 0x603   :  { %v5547_v7 = vadd.f32 %v2331_v13, %v2330_v59 }
 0x605   :  { %3705 = vtanh.f32 %v5547_v7 }
 0x608   :  { %v2265_v6 = vpop.f32.mrf.mxu0  ;;  %v2306_v15 = vpop.f32.mrf.mxu1 }
 0x609   :  { %v2313_v29 = vadd.f32 %v2265_v6, %v6306_v50  ;;  %v2315_v61 = vadd.f32 %v2306_v15, %v6308_v40  ;;  %v6309_v6 = vld [vmem:[#allocation78_spill] sm:$0xff] }
 0x60a   :  { %v2267_v3 = vpop.f32.mrf.mxu0  ;;  %v2308_v49 = vpop.f32.mrf.mxu1 }
 0x60b   :  { %v2335_v45 = vmul.f32 0.5, %v2313_v29  ;;  %v2314_v11 = vadd.f32 %v2267_v3, %v6307_v46  ;;  %v2316_v50 = vadd.f32 %v2308_v49, %v6309_v6  ;;  %v5562_v3 = vld [vmem:[#allocation6 + $0xc4] ss:$16 sps:$4 sm:$0xff]  }
 0x60c   :  { %v2269_v2 = vpop.f32.mrf.mxu0  ;;  %v2310_v1 = vpop.f32.mrf.mxu1 }
 0x60d   :  { %3707 = vtanh.f32 %v2335_v45  ;;  %v2339_v26 = vmul.f32 0.5, %v2314_v11  ;;  %v2344_v15 = vmul.f32 0.5, %v2316_v50  ;;  %v5568_v11 = vld [vmem:[#allocation6 + $0xc0] ss:$16 sps:$4 sm:$0xff]   ;;  %v5572_v1 = vld [vmem:[#allocation6 + $0xa4] ss:$16 sps:$4 sm:$0xff]  }
 0x60e   :  { %v2270_v17 = vpop.f32.mrf.mxu0  ;;  %v2311_v57 = vpop.f32.mrf.mxu1 }
 0x60f   :  { %3709 = vtanh.f32 %v2339_v26  ;;  %v5581_v26 = vld [vmem:[#allocation6 + $0x84] ss:$16 sps:$4 sm:$0xff]  }
 0x610   :  { %3711 = vtanh.f32 %v2315_v61  ;;  %v5576_v61 = vld [vmem:[#allocation6 + $0xa0] ss:$16 sps:$4 sm:$0xff]   ;;  %v5592_v57 = vld [vmem:[#allocation6 + $0x64] ss:$16 sps:$4 sm:$0xff]  }
 0x611   :  { %3713 = vtanh.f32 %v2344_v15 }
 0x612   :  { %v3706_v13 = vpop.eup %3705 }
 0x613   :  { %v5553_v59 = vmul.f32 %v3706_v13, %v2329_v31  ;;  %v5608_v31 = vld [vmem:[#allocation6 + $0x24] ss:$16 sps:$4 sm:$0xff]  }
 0x615   :  { %v2358_v29 = vpack.c.bf16 %v5553_v59, %v5553_v59 }
 0x617   :  { %2404 = vmatmul.mubr.bf16.vlgmr.msra.gmra.mxu0 %v2358_v29  ;;  %2445 = vmatmul.mubr.bf16.vlgmr.msra.gmra.mxu1 %v2358_v29 }
 0x618   :  { %2458 = vmatpush1.bf16.msra.mxu0 %v5558_v39  ;;  %2499 = vmatpush1.bf16.msra.mxu1 %v5115_v34 }
 0x619   :  { %2459 = vmatprep.subr.bf16.mxu0 %v5562_v3  ;;  %2500 = vmatprep.subr.bf16.mxu1 %v5119_v4 }
 0x61a   :  { %v3708_v45 = vpop.eup %3707  ;;  %2489 = vmatprep.mubr.bf16.mxu0 %v6180_v33  ;;  %2530 = vmatprep.mubr.bf16.mxu1 %v6180_v33 }
 0x61b   :  { %v2337_v49 = vmul.f32 0.5, %v3708_v45 }
 0x61c   :  { %v3710_v46 = vpop.eup %3709  ;;  %2460 = vmatpush1.bf16.msra.mxu0 %v5568_v11  ;;  %2501 = vmatpush1.bf16.msra.mxu1 %v5125_v58 }
 0x61d   :  { %v2338_v34 = vadd.f32 0.5, %v2337_v49  ;;  %v2341_v2 = vmul.f32 0.5, %v3710_v46  ;;  %2461 = vmatprep.subr.bf16.mxu0 %v5572_v1  ;;  %2502 = vmatprep.subr.bf16.mxu1 %v5129_v43  ;;  %v3712_v4 = vpop.eup %3711  ;;  %v5587_v43 = vld [vmem:[#allocation6 + $0x80] ss:$16 sps:$4 sm:$0xff]  }
 0x61f   :  { %v2342_v30 = vadd.f32 0.5, %v2341_v2  ;;  %v2349_v40 = vmul.f32 %v3712_v4, %v2338_v34 }
 0x620   :  { %2462 = vmatpush1.bf16.msra.mxu0 %v5576_v61  ;;  %2503 = vmatpush1.bf16.msra.mxu1 %v5133_v48  ;;  %v5596_v48 = vld [vmem:[#allocation6 + $0x60] ss:$16 sps:$4 sm:$0xff]  }
 0x621   :  { %v2348_v58 = vmul.f32 %v2342_v30, %v5406_v9  ;;  %2463 = vmatprep.subr.bf16.mxu0 %v5581_v26  ;;  %2504 = vmatprep.subr.bf16.mxu1 %v5138_v16  ;;  %v5600_v16 = vld [vmem:[#allocation6 + $0x44] ss:$16 sps:$4 sm:$0xff]   ;;  %v5604_v9 = vld [vmem:[#allocation6 + $0x40] ss:$16 sps:$4 sm:$0xff]  }
 0x623   :  { %v5585_v17 = vadd.f32 %v2349_v40, %v2348_v58 }
 0x624   :  { %2464 = vmatpush1.bf16.msra.mxu0 %v5587_v43  ;;  %2505 = vmatpush1.bf16.msra.mxu1 %v5144_v51  ;;  %v3714_v51 = vpop.eup %3713 }
 0x625   :  { %3715 = vtanh.f32 %v5585_v17  ;;  %2465 = vmatprep.subr.bf16.mxu0 %v5592_v57  ;;  %2506 = vmatprep.subr.bf16.mxu1 %v5149_v52  ;;  %v2346_v52 = vmul.f32 0.5, %v3714_v51 }
 0x628   :  { %2466 = vmatpush1.bf16.msra.mxu0 %v5596_v48  ;;  %2507 = vmatpush1.bf16.msra.mxu1 %v5153_v14  ;;  %v2347_v14 = vadd.f32 0.5, %v2346_v52  ;;  %v6319_v52 = vld [vmem:[#allocation50_spill] sm:$0xff] }
 0x629   :  { %2467 = vmatprep.subr.bf16.mxu0 %v5600_v16  ;;  %2508 = vmatprep.subr.bf16.mxu1 %v5157_v55 }
 0x62c   :  { %2468 = vmatpush1.bf16.msra.mxu0 %v5604_v9  ;;  %2509 = vmatpush1.bf16.msra.mxu1 %v5161_v32 }
 0x62d   :  { %2469 = vmatprep.subr.bf16.mxu0 %v5608_v31  ;;  %2510 = vmatprep.subr.bf16.mxu1 %v5165_v38  ;;  %v3912_v38 = vld [vmem:[%s6013_s4 + $0xec] ss:$16 sps:$4 sm:$0xff]  }
 0x630   :  { %2470 = vmatpush1.bf16.msra.mxu0 %v5168_v10  ;;  %2511 = vmatpush1.bf16.msra.mxu1 %v5171_v23  ;;  %v3913_v10 = vld [vmem:[%s6013_s4 + $0xe8] ss:$16 sps:$4 sm:$0xff]   ;;  %v3914_v23 = vld [vmem:[%s6013_s4 + $0xcc] ss:$16 sps:$4 sm:$0xff]  }
 0x631   :  { %2471 = vmatprep.subr.bf16.mxu0 %v5174_v37  ;;  %2512 = vmatprep.subr.bf16.mxu1 %v5177_v42  ;;  %v3915_v37 = vld [vmem:[%s6013_s4 + $0xc8] ss:$16 sps:$4 sm:$0xff]   ;;  %v3916_v42 = vld [vmem:[%s6013_s4 + $0xac] ss:$16 sps:$4 sm:$0xff]  }
 0x632   :  { %v3716_v55 = vpop.eup %3715 }
 0x633   :  { %v5616_v13 = vmul.f32 %v3716_v55, %v2347_v14 }
 0x634   :  { %2472 = vmatpush1.bf16.msra.mxu0 %v5182_v36  ;;  %2513 = vmatpush1.bf16.msra.mxu1 %v5185_v44  ;;  %v6310_v36 = vld [vmem:[#allocation26_spill] sm:$0xff]  ;;  %v6311_v44 = vld [vmem:[#allocation72_spill] sm:$0xff] }
 0x635   :  { %v2359_v32 = vpack.c.bf16 %v5616_v13, %v5616_v13  ;;  %2597 = vmatprep.subr.bf16.mxu0 %v5434_v47  ;;  %2638 = vmatprep.subr.bf16.mxu1 %v3912_v38 }
 0x637   :  { %2490 = vmatmul.mubr.bf16.vlgmr.msra.gmra.mxu0 %v2359_v32  ;;  %2531 = vmatmul.mubr.bf16.vlgmr.msra.gmra.mxu1 %v2359_v32 }
 0x638   :  { %2598 = vmatpush1.bf16.msra.mxu0 %v5441_v28  ;;  %2639 = vmatpush1.bf16.msra.mxu1 %v3913_v10 }
 0x639   :  { %2599 = vmatprep.subr.bf16.mxu0 %v5448_v35  ;;  %2640 = vmatprep.subr.bf16.mxu1 %v3914_v23  ;;  %v6315_v35 = vld [vmem:[#allocation45_spill] sm:$0xff]  ;;  %v6320_v23 = vld [vmem:[#allocation52_spill] sm:$0xff] }
 0x63a   :  { %2629 = vmatprep.mubr.bf16.mxu0 %v6180_v33  ;;  %2670 = vmatprep.mubr.bf16.mxu1 %v6180_v33 }
 0x63c   :  { %2600 = vmatpush1.bf16.msra.mxu0 %v5457_v21  ;;  %2641 = vmatpush1.bf16.msra.mxu1 %v3915_v37 }
 0x63d   :  { %2601 = vmatprep.subr.bf16.mxu0 %v5464_v22  ;;  %2642 = vmatprep.subr.bf16.mxu1 %v3916_v42 }
 0x640   :  { %2602 = vmatpush1.bf16.msra.mxu0 %v5471_v25  ;;  %2643 = vmatpush1.bf16.msra.mxu1 %v6259_v19  ;;  %v6312_v19 = vld [vmem:[#allocation29_spill] sm:$0xff] }
 0x641   :  { %2603 = vmatprep.subr.bf16.mxu0 %v5478_v53  ;;  %2644 = vmatprep.subr.bf16.mxu1 %v6261_v20  ;;  %v3917_v20 = vld [vmem:[%s6013_s4] ss:$16 sps:$4 sm:$0xff]  }
 0x644   :  { %2604 = vmatpush1.bf16.msra.mxu0 %v5485_v54  ;;  %2645 = vmatpush1.bf16.msra.mxu1 %v6263_v60  ;;  %v6313_v60 = vld [vmem:[#allocation31_spill] sm:$0xff] }
 0x645   :  { %2605 = vmatprep.subr.bf16.mxu0 %v5492_v24  ;;  %2646 = vmatprep.subr.bf16.mxu1 %v6265_v8  ;;  %v3918_v8 = vld [vmem:[#allocation6 + $0xe4] ss:$16 sps:$4 sm:$0xff]   ;;  %v6316_v54 = vld [vmem:[#allocation47_spill] sm:$0xff] }
 0x648   :  { %2606 = vmatpush1.bf16.msra.mxu0 %v5499_v56  ;;  %2647 = vmatpush1.bf16.msra.mxu1 %v6267_v62  ;;  %v6314_v62 = vld [vmem:[#allocation57_spill] sm:$0xff] }
 0x649   :  { %2607 = vmatprep.subr.bf16.mxu0 %v5506_v18  ;;  %2648 = vmatprep.subr.bf16.mxu1 %v6292_v5  ;;  %v6317_v5 = vld [vmem:[#allocation65_spill] sm:$0xff] }
 0x64c   :  { %2608 = vmatpush1.bf16.msra.mxu0 %v5513_v27  ;;  %2649 = vmatpush1.bf16.msra.mxu1 %v6293_v41 }
 0x64d   :  { %2609 = vmatprep.subr.bf16.mxu0 %v5520_v63  ;;  %2650 = vmatprep.subr.bf16.mxu1 %v6294_v0 }
 0x650   :  { %2610 = vmatpush1.bf16.msra.mxu0 %v5527_v12  ;;  %2651 = vmatpush1.bf16.msra.mxu1 %v6310_v36  ;;  %v6318_v12 = vld [vmem:[#allocation66_spill] sm:$0xff] }
 0x651   :  { %2611 = vmatprep.subr.bf16.mxu0 %v6311_v44  ;;  %2652 = vmatprep.subr.bf16.mxu1 %v6312_v19  ;;  %v6321_v19 = vld [vmem:[#allocation79_spill] sm:$0xff] }
 0x654   :  { %2612 = vmatpush1.bf16.msra.mxu0 %v3917_v20  ;;  %2653 = vmatpush1.bf16.msra.mxu1 %v6313_v60 }
 0x655   :  { %2683 = vmatprep.subr.bf16.mxu0 %v3918_v8  ;;  %2724 = vmatprep.subr.bf16.mxu1 %v6314_v62 }
 0x6d7   :  { %v2405_v47 = vpop.f32.mrf.mxu0  ;;  %v2446_v28 = vpop.f32.mrf.mxu1 }
 0x6d8   :  { %v2453_v21 = vadd.f32 %v2405_v47, %v6315_v35  ;;  %v2455_v27 = vadd.f32 %v2446_v28, %v6317_v5  ;;  %v6322_v35 = vld [vmem:[#allocation80_spill] sm:$0xff]  ;;  %v3921_v5 = vld [vmem:[#allocation6 + $0xc8] ss:$16 sps:$4 sm:$0xff]  }
 0x6d9   :  { %v2407_v22 = vpop.f32.mrf.mxu0  ;;  %v2448_v25 = vpop.f32.mrf.mxu1 }
 0x6da   :  { %v2543_v53 = vmul.f32 0.5, %v2453_v21  ;;  %v2454_v24 = vadd.f32 %v2407_v22, %v6316_v54  ;;  %v2456_v6 = vadd.f32 %v2448_v25, %v6318_v12  ;;  %v3919_v25 = vld [vmem:[#allocation6 + $0xe8] ss:$16 sps:$4 sm:$0xff]   ;;  %v3920_v54 = vld [vmem:[#allocation6 + $0xcc] ss:$16 sps:$4 sm:$0xff]  }
 0x6db   :  { %v2409_v56 = vpop.f32.mrf.mxu0  ;;  %v2450_v18 = vpop.f32.mrf.mxu1  ;;  %v3923_v12 = vld [vmem:[#allocation6 + $0xa8] ss:$16 sps:$4 sm:$0xff]  }
 0x6dc   :  { %3717 = vtanh.f32 %v2543_v53  ;;  %v2547_v41 = vmul.f32 0.5, %v2454_v24  ;;  %v2552_v50 = vmul.f32 0.5, %v2456_v6 }
 0x6dd   :  { %v2410_v63 = vpop.f32.mrf.mxu0  ;;  %v2451_v0 = vpop.f32.mrf.mxu1 }
 0x6de   :  { %3719 = vtanh.f32 %v2547_v41  ;;  %v3922_v41 = vld [vmem:[#allocation6 + $0xac] ss:$16 sps:$4 sm:$0xff]  }
 0x6df   :  { %3721 = vtanh.f32 %v2455_v27 }
 0x6e0   :  { %3723 = vtanh.f32 %v2552_v50  ;;  %v3926_v50 = vld [vmem:[#allocation6 + $0x6c] ss:$16 sps:$4 sm:$0xff]  }
 0x6e9   :  { %v3718_v29 = vpop.eup %3717 }
 0x6ea   :  { %v2545_v15 = vmul.f32 0.5, %v3718_v29 }
 0x6eb   :  { %v3720_v45 = vpop.eup %3719 }
 0x6ec   :  { %v2546_v49 = vadd.f32 0.5, %v2545_v15  ;;  %v2549_v46 = vmul.f32 0.5, %v3720_v45  ;;  %v3722_v34 = vpop.eup %3721  ;;  %v3930_v15 = vld [vmem:[#allocation6 + $0x2c] ss:$16 sps:$4 sm:$0xff]   ;;  %v3932_v45 = vld [vmem:[#allocation6 + $0x28] ss:$16 sps:$4 sm:$0xff]  }
 0x6ed   :  { %v3724_v55 = vpop.eup %3723 }
 0x6ee   :  { %v2550_v2 = vadd.f32 0.5, %v2549_v46  ;;  %v2557_v4 = vmul.f32 %v3722_v34, %v2546_v49  ;;  %v2554_v44 = vmul.f32 0.5, %v3724_v55  ;;  %v3933_v49 = vld [vmem:[#allocation6 + $0x4] ss:$16 sps:$4 sm:$0xff]  }
 0x6ef   :  { %v3584_v55 = vld [vmem:[%s6021_s12 + $0x30] sm:$0xff]  }
 0x6f0   :  { %v2556_v30 = vmul.f32 %v2550_v2, %v5547_v7  ;;  %v2555_v62 = vadd.f32 0.5, %v2554_v44  ;;  %v3935_v2 = vld [vmem:[#allocation6] ss:$16 sps:$4 sm:$0xff]  }
 0x6f1   :  { %v3592_v44 = vld [vmem:[%s6021_s12 + $0x10] sm:$0xff]  }
 0x6f2   :  { %v5674_v40 = vadd.f32 %v2557_v4, %v2556_v30  ;;  %v3582_v4 = vld [vmem:[%s6021_s12 + $0x38] sm:$0xff]  }
 0x6f4   :  { %3725 = vtanh.f32 %v5674_v40 }
 0x6f7   :  { %v2491_v58 = vpop.f32.mrf.mxu0  ;;  %v2532_v51 = vpop.f32.mrf.mxu1 }
 0x6f8   :  { %v2539_v14 = vadd.f32 %v2491_v58, %v6319_v52  ;;  %v2541_v7 = vadd.f32 %v2532_v51, %v6321_v19  ;;  %v3583_v58 = vld [vmem:[%s6021_s12 + $0x70] sm:$0xff]   ;;  %v6324_v52 = vld [vmem:[#allocation10_spill] sm:$0xff]  ;;  %v3593_v19 = vld [vmem:[%s6021_s12 + $0x48] sm:$0xff]  }
 0x6f9   :  { %v2493_v32 = vpop.f32.mrf.mxu0  ;;  %v2534_v38 = vpop.f32.mrf.mxu1  ;;  %v6323_v51 = vld [vmem:[#allocation84_spill] sm:$0xff] }
 0x6fa   :  { %v2561_v10 = vmul.f32 0.5, %v2539_v14  ;;  %v2540_v37 = vadd.f32 %v2493_v32, %v6320_v23  ;;  %v2542_v21 = vadd.f32 %v2534_v38, %v6322_v35  ;;  %v2827_v14 = vpack.c.bf16 %v6324_v52, %v6323_v51  ;;  %v3585_v32 = vld [vmem:[%s6021_s12 + $0x68] sm:$0xff]   ;;  %v3588_v23 = vld [vmem:[%s6021_s12 + $0x20] sm:$0xff]   ;;  %v6337_v51 = vld [vmem:[#allocation53_spill] sm:$0xff] }
 0x6fb   :  { %v2495_v42 = vpop.f32.mrf.mxu0  ;;  %v2536_v36 = vpop.f32.mrf.mxu1  ;;  %v3586_v38 = vld [vmem:[%s6021_s12 + $0x28] sm:$0xff]  }
 0x6fc   :  { %3727 = vtanh.f32 %v2561_v10  ;;  %v2565_v20 = vmul.f32 0.5, %v2540_v37  ;;  %v2570_v53 = vmul.f32 0.5, %v2542_v21  ;;  %v3587_v10 = vld [vmem:[%s6021_s12 + $0x60] sm:$0xff]   ;;  %v3589_v37 = vld [vmem:[%s6021_s12 + $0x58] sm:$0xff]   ;;  %v3591_v36 = vld [vmem:[%s6021_s12 + $0x50] sm:$0xff]  }
 0x6fd   :  { %v2496_v60 = vpop.f32.mrf.mxu0  ;;  %v2537_v8 = vpop.f32.mrf.mxu1  ;;  %v3590_v42 = vld [vmem:[%s6021_s12 + $0x18] sm:$0xff]   ;;  %v6327_v35 = vld [vmem:[#allocation55_spill] sm:$0xff]  ;;  %v6328_v21 = vld [vmem:[#allocation34_spill] sm:$0xff] }
 0x6fe   :  { %3729 = vtanh.f32 %v2565_v20  ;;  %v3595_v20 = vld [vmem:[%s6021_s12 + $0x40] sm:$0xff]   ;;  %v6325_v8 = vld [vmem:[#allocation83_spill] sm:$0xff] }
 0x6ff   :  { %3731 = vtanh.f32 %v2541_v7  ;;  %v3594_v7 = vld [vmem:[%s6021_s12 + $0x8] sm:$0xff]   ;;  %v3596_v60 = vld [vmem:[%s6021_s12] sm:$0xff]  }
 0x700   :  { %3733 = vtanh.f32 %v2570_v53  ;;  %v6330_v53 = vld [vmem:[#allocation58_spill] sm:$0xff] }
 0x701   :  { %v3726_v47 = vpop.eup %3725 }
 0x702   :  { %v5680_v28 = vmul.f32 %v3726_v47, %v2555_v62  ;;  %v6326_v62 = vld [vmem:[#allocation22_spill] sm:$0xff] }
 0x703   :  { %v2826_v47 = vpack.c.bf16 %v6326_v62, %v6325_v8 }
 0x704   :  { %v2584_v22 = vpack.c.bf16 %v5680_v28, %v5680_v28 }
 0x706   :  { %2630 = vmatmul.mubr.bf16.vlgmr.msra.gmra.mxu0 %v2584_v22  ;;  %2671 = vmatmul.mubr.bf16.vlgmr.msra.gmra.mxu1 %v2584_v22  ;;  %v2829_v22 = vpack.c.bf16 %v6328_v21, %v6327_v35 }
 0x707   :  { %2684 = vmatpush1.bf16.msra.mxu0 %v5558_v39  ;;  %2725 = vmatpush1.bf16.msra.mxu1 %v3919_v25  ;;  %v6329_v25 = vld [vmem:[#allocation28_spill] sm:$0xff] }
 0x708   :  { %2685 = vmatprep.subr.bf16.mxu0 %v5562_v3  ;;  %2726 = vmatprep.subr.bf16.mxu1 %v3920_v54  ;;  %v2828_v54 = vpack.c.bf16 %v6330_v53, %v6329_v25 }
 0x709   :  { %v3728_v24 = vpop.eup %3727  ;;  %2715 = vmatprep.mubr.bf16.mxu0 %v6180_v33  ;;  %2756 = vmatprep.mubr.bf16.mxu1 %v6180_v33 }
 0x70a   :  { %v2563_v56 = vmul.f32 0.5, %v3728_v24  ;;  %v6331_v24 = vld [vmem:[#allocation71_spill] sm:$0xff] }
 0x70b   :  { %v3730_v18 = vpop.eup %3729  ;;  %2686 = vmatpush1.bf16.msra.mxu0 %v5568_v11  ;;  %2727 = vmatpush1.bf16.msra.mxu1 %v3921_v5  ;;  %v3924_v11 = vld [vmem:[#allocation6 + $0x8c] ss:$16 sps:$4 sm:$0xff]  }
 0x70c   :  { %v2564_v27 = vadd.f32 0.5, %v2563_v56  ;;  %v2567_v39 = vmul.f32 0.5, %v3730_v18  ;;  %2687 = vmatprep.subr.bf16.mxu0 %v5572_v1  ;;  %2728 = vmatprep.subr.bf16.mxu1 %v3922_v41  ;;  %v3732_v3 = vpop.eup %3731  ;;  %v3925_v1 = vld [vmem:[#allocation6 + $0x88] ss:$16 sps:$4 sm:$0xff]   ;;  %v2831_v56 = vpack.c.bf16 %v5616_v13, %v6331_v24  ;;  %v6332_v18 = vld [vmem:[#allocation36_spill] sm:$0xff] }
 0x70d   :  { %v2830_v5 = vpack.c.bf16 %v5553_v59, %v6332_v18  ;;  %v6333_v41 = vld [vmem:[#allocation49_spill] sm:$0xff]  ;;  %v6336_v59 = vld [vmem:[#allocation68_spill] sm:$0xff] }
 0x70e   :  { %v2568_v63 = vadd.f32 0.5, %v2567_v39  ;;  %v2575_v0 = vmul.f32 %v3732_v3, %v2564_v27 }
 0x70f   :  { %2688 = vmatpush1.bf16.msra.mxu0 %v5576_v61  ;;  %2729 = vmatpush1.bf16.msra.mxu1 %v3923_v12  ;;  %v3927_v61 = vld [vmem:[#allocation6 + $0x68] ss:$16 sps:$4 sm:$0xff]  }
 0x710   :  { %v2574_v33 = vmul.f32 %v2568_v63, %v5585_v17  ;;  %2689 = vmatprep.subr.bf16.mxu0 %v5581_v26  ;;  %2730 = vmatprep.subr.bf16.mxu1 %v3924_v11  ;;  %v3928_v26 = vld [vmem:[#allocation6 + $0x4c] ss:$16 sps:$4 sm:$0xff]   ;;  %v3734_v17 = vpop.eup %3733 }
 0x711   :  { %v2572_v29 = vmul.f32 0.5, %v3734_v17 }
 0x712   :  { %v5694_v6 = vadd.f32 %v2575_v0, %v2574_v33  ;;  %v6334_v33 = vld [vmem:[#allocation51_spill] sm:$0xff] }
 0x713   :  { %2690 = vmatpush1.bf16.msra.mxu0 %v5587_v43  ;;  %2731 = vmatpush1.bf16.msra.mxu1 %v3925_v1  ;;  %v3929_v43 = vld [vmem:[#allocation6 + $0x48] ss:$16 sps:$4 sm:$0xff]  }
 0x714   :  { %3735 = vtanh.f32 %v5694_v6  ;;  %2691 = vmatprep.subr.bf16.mxu0 %v5592_v57  ;;  %2732 = vmatprep.subr.bf16.mxu1 %v3926_v50  ;;  %v3931_v57 = vld [vmem:[#allocation6 + $0x20] ss:$16 sps:$4 sm:$0xff]  }
 0x717   :  { %2692 = vmatpush1.bf16.msra.mxu0 %v5596_v48  ;;  %2733 = vmatpush1.bf16.msra.mxu1 %v3927_v61  ;;  %v2573_v48 = vadd.f32 0.5, %v2572_v29  ;;  %v6335_v61 = vld [vmem:[#allocation67_spill] sm:$0xff] }
 0x718   :  { %2693 = vmatprep.subr.bf16.mxu0 %v5600_v16  ;;  %2734 = vmatprep.subr.bf16.mxu1 %v3928_v26  ;;  %v3934_v16 = vld [vmem:[#allocation6 + $0xc] ss:$16 sps:$4 sm:$0xff]  }
 0x71b   :  { %2694 = vmatpush1.bf16.msra.mxu0 %v5604_v9  ;;  %2735 = vmatpush1.bf16.msra.mxu1 %v3929_v43  ;;  %v3581_v9 = vld [vmem:[%s6021_s12 + $0x78] sm:$0xff]  }
 0x71c   :  { %2695 = vmatprep.subr.bf16.mxu0 %v5608_v31  ;;  %2736 = vmatprep.subr.bf16.mxu1 %v3930_v15  ;;  %v3936_v31 = vld [vmem:[#allocation6 + $0x8] ss:$16 sps:$4 sm:$0xff]  }
 0x71f   :  { %2696 = vmatpush1.bf16.msra.mxu0 %v3931_v57  ;;  %2737 = vmatpush1.bf16.msra.mxu1 %v3932_v45 }
 0x720   :  { %2697 = vmatprep.subr.bf16.mxu0 %v3933_v49  ;;  %2738 = vmatprep.subr.bf16.mxu1 %v3934_v16 }
 0x721   :  { %v3736_v46 = vpop.eup %3735 }
 0x722   :  { %v5706_v34 = vmul.f32 %v3736_v46, %v2573_v48 }
 0x723   :  { %2698 = vmatpush1.bf16.msra.mxu0 %v3935_v2  ;;  %2739 = vmatpush1.bf16.msra.mxu1 %v3936_v31 }
 0x724   :  { %v2585_v30 = vpack.c.bf16 %v5706_v34, %v5706_v34  ;;  %3422 = vmatprep.subr.bf16.mxu0 %v3581_v9 }
 0x726   :  { %2716 = vmatmul.mubr.bf16.vlgmr.msra.gmra.mxu0 %v2585_v30  ;;  %2757 = vmatmul.mubr.bf16.vlgmr.msra.gmra.mxu1 %v2585_v30 }
 0x727   :  { %3423 = vmatpush3.bf16.msra.mxu0 %v3582_v4  ;;  %3001 = vmatprep.mubr.bf16.mxu0 %v2827_v14 }
 0x728   :  { %3424 = vmatprep.subr.bf16.mxu0 %v3583_v58 }
 0x72b   :  { %3425 = vmatpush3.bf16.msra.mxu0 %v3584_v55 }
 0x72c   :  { %3426 = vmatprep.subr.bf16.mxu0 %v3585_v32 }
 0x72f   :  { %3427 = vmatpush3.bf16.msra.mxu0 %v3586_v38 }
 0x730   :  { %3428 = vmatprep.subr.bf16.mxu0 %v3587_v10  ;;  %v6338_v10 = vld [vmem:[#allocation54_spill] sm:$0xff] }
 0x733   :  { %3429 = vmatpush3.bf16.msra.mxu0 %v3588_v23 }
 0x734   :  { %3430 = vmatprep.subr.bf16.mxu0 %v3589_v37 }
 0x737   :  { %3431 = vmatpush3.bf16.msra.mxu0 %v3590_v42 }
 0x738   :  { %3432 = vmatprep.subr.bf16.mxu0 %v3591_v36 }
 0x73b   :  { %3433 = vmatpush3.bf16.msra.mxu0 %v3592_v44  ;;  %v6339_v44 = vld [vmem:[#allocation81_spill] sm:$0xff] }
 0x73c   :  { %3434 = vmatprep.subr.bf16.mxu0 %v3593_v19 }
 0x73f   :  { %3435 = vmatpush3.bf16.msra.mxu0 %v3594_v7 }
 0x740   :  { %3436 = vmatprep.subr.bf16.mxu0 %v3595_v20 }
 0x743   :  { %3437 = vmatpush3.bf16.msra.mxu0 %v3596_v60 }
 0x746   :  { %3002 = vmatmul.mubr.bf16.vlgmr.msra.gmra.mxu0 %v2826_v47  ;;  %v6340_v47 = vld [vmem:[#allocation82_spill] sm:$0xff] }
 0x747   :  { %3009 = vmatprep.mubr.bf16.mxu0 %v2829_v22 }
 0x74e   :  { %3010 = vmatmul.mubr.bf16.gmra.mxu0 %v2828_v54 }
 0x74f   :  { %3017 = vmatprep.mubr.bf16.mxu0 %v2831_v56 }
 0x756   :  { %3018 = vmatmul.mubr.bf16.gmra.mxu0 %v2830_v5 }
 0x7c6   :  { %v2631_v27 = vpop.f32.mrf.mxu0  ;;  %v2672_v39 = vpop.f32.mrf.mxu1 }
 0x7c7   :  { %v2679_v3 = vadd.f32 %v2631_v27, %v6333_v41  ;;  %v2681_v13 = vadd.f32 %v2672_v39, %v6335_v61 }
 0x7c8   :  { %v2633_v63 = vpop.f32.mrf.mxu0  ;;  %v2674_v0 = vpop.f32.mrf.mxu1 }
 0x7c9   :  { %v2769_v12 = vmul.f32 0.5, %v2679_v3  ;;  %v2680_v11 = vadd.f32 %v2633_v63, %v6334_v33  ;;  %v2682_v29 = vadd.f32 %v2674_v0, %v6336_v59  ;;  %v5780_v63 = vld [vmem:[%s6022_s13] ss:$0 sm:$0xff]  ;;  %s3987_s13 = smov 126  }
 0x7ca   :  { %v2635_v1 = vpop.f32.mrf.mxu0  ;;  %v2676_v50 = vpop.f32.mrf.mxu1 }
 0x7cb   :  { %3737 = vtanh.f32 %v2769_v12  ;;  %v2773_v26 = vmul.f32 0.5, %v2680_v11  ;;  %v2778_v15 = vmul.f32 0.5, %v2682_v29 }
 0x7cc   :  { %v2636_v17 = vpop.f32.mrf.mxu0  ;;  %v2677_v43 = vpop.f32.mrf.mxu1 }
 0x7cd   :  { %3739 = vtanh.f32 %v2773_v26 }
 0x7ce   :  { %3741 = vtanh.f32 %v2681_v13 }
 0x7cf   :  { %3743 = vtanh.f32 %v2778_v15 }
 0x7d8   :  { %v3738_v57 = vpop.eup %3737 }
 0x7d9   :  { %v2771_v45 = vmul.f32 0.5, %v3738_v57 }
 0x7da   :  { %v3740_v48 = vpop.eup %3739 }
 0x7db   :  { %v2772_v49 = vadd.f32 0.5, %v2771_v45  ;;  %v2775_v16 = vmul.f32 0.5, %v3740_v48  ;;  %v3742_v9 = vpop.eup %3741 }
 0x7dc   :  { %v3744_v14 = vpop.eup %3743 }
 0x7dd   :  { %v2776_v46 = vadd.f32 0.5, %v2775_v16  ;;  %v2783_v2 = vmul.f32 %v3742_v9, %v2772_v49  ;;  %v2780_v36 = vmul.f32 0.5, %v3744_v14 }
 0x7df   :  { %v2782_v31 = vmul.f32 %v2776_v46, %v5674_v40  ;;  %v2781_v60 = vadd.f32 0.5, %v2780_v36 }
 0x7e1   :  { %v2784_v4 = vadd.f32 %v2783_v2, %v2782_v31 }
 0x7e3   :  { %3745 = vtanh.f32 %v2784_v4 }
 0x7e6   :  { %v2717_v30 = vpop.f32.mrf.mxu0  ;;  %v2758_v58 = vpop.f32.mrf.mxu1 }
 0x7e7   :  { %v2765_v52 = vadd.f32 %v2717_v30, %v6337_v51  ;;  %v2767_v19 = vadd.f32 %v2758_v58, %v6339_v44 }
 0x7e8   :  { %v2719_v55 = vpop.f32.mrf.mxu0  ;;  %v2760_v32 = vpop.f32.mrf.mxu1 }
 0x7e9   :  { %v2787_v38 = vmul.f32 0.5, %v2765_v52  ;;  %v2766_v23 = vadd.f32 %v2719_v55, %v6338_v10  ;;  %v2768_v35 = vadd.f32 %v2760_v32, %v6340_v47 }
 0x7ea   :  { %v2721_v37 = vpop.f32.mrf.mxu0  ;;  %v2762_v42 = vpop.f32.mrf.mxu1 }
 0x7eb   :  { %3747 = vtanh.f32 %v2787_v38  ;;  %v2791_v7 = vmul.f32 0.5, %v2766_v23  ;;  %v2796_v21 = vmul.f32 0.5, %v2768_v35 }
 0x7ec   :  { %v2722_v40 = vpop.f32.mrf.mxu0  ;;  %v2763_v20 = vpop.f32.mrf.mxu1 }
 0x7ed   :  { %3749 = vtanh.f32 %v2791_v7 }
 0x7ee   :  { %3751 = vtanh.f32 %v2767_v19 }
 0x7ef   :  { %3753 = vtanh.f32 %v2796_v21 }
 0x7f0   :  { %v3746_v8 = vpop.eup %3745 }
 0x7f1   :  { %v2786_v62 = vmul.f32 %v3746_v8, %v2781_v60 }
 0x7f3   :  { %v2832_v46 = vpack.c.bf16 %v2786_v62, %v5680_v28 }
 0x7f8   :  { %v3748_v22 = vpop.eup %3747 }
 0x7f9   :  { %v2789_v25 = vmul.f32 0.5, %v3748_v22 }
 0x7fa   :  { %v3750_v53 = vpop.eup %3749 }
 0x7fb   :  { %v2790_v54 = vadd.f32 0.5, %v2789_v25  ;;  %v2793_v24 = vmul.f32 0.5, %v3750_v53  ;;  %v3752_v56 = vpop.eup %3751 }
 0x7fc   :  { %v3754_v3 = vpop.eup %3753 }
 0x7fd   :  { %v2794_v18 = vadd.f32 0.5, %v2793_v24  ;;  %v2801_v5 = vmul.f32 %v3752_v56, %v2790_v54  ;;  %v2798_v11 = vmul.f32 0.5, %v3754_v3 }
 0x7ff   :  { %v2800_v27 = vmul.f32 %v2794_v18, %v5694_v6  ;;  %v2799_v26 = vadd.f32 0.5, %v2798_v11 }
 0x801   :  { %v2802_v39 = vadd.f32 %v2801_v5, %v2800_v27 }
 0x803   :  { %3755 = vtanh.f32 %v2802_v39 }
 0x806   :  { %v3438_v41 = vpop.f32.mrf.mxu0 }
 0x808   :  { %v3439_v0 = vpop.f32.mrf.mxu0 }
 0x809   :  { %v3440_v12 = vadd.f32 %v3439_v0, %v3438_v41 }
 0x80a   :  { %v3441_v33 = vpop.f32.mrf.mxu0 }
 0x80b   :  { %v5783_v1 = vadd.f32 %v3440_v12, %v5780_v63 }
 0x80c   :  { %v3442_v50 = vpop.f32.mrf.mxu0 }
 0x80d   :  { %v3443_v61 = vadd.f32 %v3442_v50, %v3441_v33  ;;  %v3140_v6 = vsel %vm3139_vm6, %v5783_v1, -inf  ;;  %v3035_v57 = vsel %vm3034_vm7, %v5783_v1, -inf }
 0x80e   :  { %v3444_v13 = vpop.f32.mrf.mxu0  ;;  %3141 = vmax.xlane.f32.xlu0 %v3140_v6 }
 0x80f   :  { %v5788_v17 = vadd.f32 %v3443_v61, %v5780_v63 }
 0x810   :  { %v3756_v43 = vpop.eup %3755  ;;  %v3445_v59 = vpop.f32.mrf.mxu0 }
 0x811   :  { %v3446_v29 = vadd.f32 %v3445_v59, %v3444_v13  ;;  %v3038_v15 = vsel %vm3034_vm7, %v5788_v17, -inf  ;;  %v2804_v45 = vmul.f32 %v3756_v43, %v2799_v26  ;;  %v3143_v30 = vsel %vm3139_vm6, %v5788_v17, -inf }
 0x812   :  { %v3447_v48 = vpop.f32.mrf.mxu0  ;;  %3039 = vmax.xlane.f32.xlu1 %v3038_v15  ;;  %3036 = vmax.xlane.f32.xlu0 %v3035_v57 }
 0x813   :  { %v5795_v49 = vadd.f32 %v3446_v29, %v5780_v63  ;;  %v2833_v16 = vpack.c.bf16 %v2804_v45, %v5706_v34 }
 0x814   :  { %v3448_v9 = vpop.f32.mrf.mxu0 }
 0x815   :  { %v3449_v2 = vadd.f32 %v3448_v9, %v3447_v48  ;;  %3025 = vmatprep.mubr.bf16.mxu0 %v2833_v16  ;;  %v3146_v31 = vsel %vm3139_vm6, %v5795_v49, -inf  ;;  %v3041_v14 = vsel %vm3034_vm7, %v5795_v49, -inf }
 0x816   :  { %v3450_v4 = vpop.f32.mrf.mxu0  ;;  %3026 = vmatmul.mubr.bf16.gmra.mxu0 %v2832_v46  ;;  %3147 = vmax.xlane.f32.xlu1 %v3146_v31 }
 0x817   :  { %v5804_v58 = vadd.f32 %v3449_v2, %v5780_v63  ;;  %3144 = vmax.xlane.f32.xlu0 %v3143_v30 }
 0x818   :  { %v3451_v51 = vpop.f32.mrf.mxu0 }
 0x819   :  { %v3452_v34 = vadd.f32 %v3451_v51, %v3450_v4  ;;  %v3149_v28 = vsel %vm3139_vm6, %v5804_v58, -inf  ;;  %v3044_v10 = vsel %vm3034_vm7, %v5804_v58, -inf }
 0x81a   :  { %v3453_v52 = vpop.f32.mrf.mxu0  ;;  %3150 = vmax.xlane.f32.xlu1 %v3149_v28 }
 0x81b   :  { %v5811_v55 = vadd.f32 %v3452_v34, %v5780_v63  ;;  %3042 = vmax.xlane.f32.xlu0 %v3041_v14 }
 0x81c   :  { %v3454_v32 = vpop.f32.mrf.mxu0 }
 0x81d   :  { %v3455_v38 = vadd.f32 %v3454_v32, %v3453_v52  ;;  %v3152_v23 = vsel %vm3139_vm6, %v5811_v55, -inf  ;;  %v3047_v36 = vsel %vm3034_vm7, %v5811_v55, -inf }
 0x81e   :  { %3045 = vmax.xlane.f32.xlu1 %v3044_v10 }
 0x81f   :  { %v5818_v37 = vadd.f32 %v3455_v38, %v5780_v63  ;;  %3153 = vmax.xlane.f32.xlu0 %v3152_v23 }
 0x821   :  { %v3155_v42 = vsel %vm3139_vm6, %v5818_v37, -inf  ;;  %v3050_v44 = vsel %vm3034_vm7, %v5818_v37, -inf }
 0x822   :  { %3156 = vmax.xlane.f32.xlu1 %v3155_v42 }
 0x823   :  { %3048 = vmax.xlane.f32.xlu0 %v3047_v36 }
 0x826   :  { %3051 = vmax.xlane.f32.xlu1 %v3050_v44 }
 0x897   :  { %v5826_v19 = vpop.xlane.xlu0 %3141 }
 0x898   :  { %v3164_v61 = vsub.f32 %v5783_v1, %v5826_v19 }
 0x89a   :  { %v3172_v59 = vmul.f32 1.442695, %v3164_v61 }
 0x89b   :  { %v5828_v7 = vpop.xlane.xlu1 %3039  ;;  %v5830_v40 = vpop.xlane.xlu0 %3036 }
 0x89c   :  { %v3059_v10 = vsub.f32 %v5783_v1, %v5830_v40 }
 0x89e   :  { %v3067_v23 = vmul.f32 1.442695, %v3059_v10 }
 0x89f   :  { %v5832_v20 = vpop.xlane.xlu1 %3147 }
 0x8a0   :  { %v5834_v60 = vpop.xlane.xlu0 %3144  ;;  %v3166_v8 = vsub.f32 %v5795_v49, %v5832_v20 }
 0x8a1   :  { %v3165_v62 = vsub.f32 %v5788_v17, %v5834_v60 }
 0x8a2   :  { %v3176_v21 = vmul.f32 1.442695, %v3166_v8  ;;  %v3060_v8 = vsub.f32 %v5788_v17, %v5828_v7 }
 0x8a3   :  { %v3174_v47 = vmul.f32 1.442695, %v3165_v62  ;;  %v5840_v35 = vpop.xlane.xlu1 %3150 }
 0x8a4   :  { %v3167_v22 = vsub.f32 %v5804_v58, %v5840_v35  ;;  %v5849_v27 = vpop.xlane.xlu0 %3042 }
 0x8a5   :  { %3757 = vpow2.f32 %v3174_v47  ;;  %v3061_v42 = vsub.f32 %v5795_v49, %v5849_v27 }
 0x8a6   :  { %3759 = vpow2.f32 %v3176_v21  ;;  %v3178_v25 = vmul.f32 1.442695, %v3167_v22  ;;  %v3069_v21 = vmul.f32 1.442695, %v3060_v8 }
 0x8a7   :  { %v5847_v56 = vpop.xlane.xlu1 %3045  ;;  %v3071_v36 = vmul.f32 1.442695, %v3061_v42 }
 0x8a8   :  { %3761 = vpow2.f32 %v3178_v25  ;;  %v5862_v6 = vpop.xlane.xlu0 %3153  ;;  %v3062_v44 = vsub.f32 %v5804_v58, %v5847_v56 }
 0x8a9   :  { %v3168_v29 = vsub.f32 %v5811_v55, %v5862_v6 }
 0x8aa   :  { %v3073_v62 = vmul.f32 1.442695, %v3062_v44 }
 0x8ab   :  { %v5851_v41 = vpop.xlane.xlu1 %3156  ;;  %v3180_v15 = vmul.f32 1.442695, %v3168_v29 }
 0x8ac   :  { %v3169_v33 = vsub.f32 %v5818_v37, %v5851_v41  ;;  %v5884_v31 = vpop.xlane.xlu0 %3048 }
 0x8ad   :  { %v3063_v47 = vsub.f32 %v5811_v55, %v5884_v31 }
 0x8ae   :  { %v3182_v26 = vmul.f32 1.442695, %v3169_v33 }
 0x8af   :  { %v5878_v9 = vpop.xlane.xlu1 %3051  ;;  %v3075_v25 = vmul.f32 1.442695, %v3063_v47 }
 0x8b0   :  { %3763 = vpow2.f32 %v3182_v26  ;;  %v3064_v22 = vsub.f32 %v5818_v37, %v5878_v9 }
 0x8b1   :  { %3765 = vpow2.f32 %v3172_v59 }
 0x8b2   :  { %v3758_v53 = vpop.eup %3757  ;;  %3767 = vpow2.f32 %v3180_v15 }
 0x8b3   :  { %3198 = vrot.lane.b32.xlu1 %v3758_v53, %s3987_s13  ;;  %v3760_v54 = vpop.eup %3759  ;;  %v3077_v53 = vmul.f32 1.442695, %v3064_v22 }
 0x8b5   :  { %v3762_v24 = vpop.eup %3761 }
 0x8b7   :  { %3200 = vrot.lane.b32.xlu1 %v3760_v54, %s3987_s13 }
 0x8bb   :  { %3202 = vrot.lane.b32.xlu1 %v3762_v24, %s3987_s13 }
 0x8bd   :  { %v3764_v57 = vpop.eup %3763 }
 0x8be   :  { %v3766_v45 = vpop.eup %3765 }
 0x8d6   :  { %v3456_v18 = vpop.f32.mrf.mxu0 }
 0x8d8   :  { %v3457_v5 = vpop.f32.mrf.mxu0 }
 0x8d9   :  { %v3458_v39 = vadd.f32 %v3457_v5, %v3456_v18 }
 0x8da   :  { %v3459_v3 = vpop.f32.mrf.mxu0 }
 0x8db   :  { %v5854_v0 = vadd.f32 %v3458_v39, %v5780_v63 }
 0x8dc   :  { %v3460_v12 = vpop.f32.mrf.mxu0 }
 0x8dd   :  { %v3461_v11 = vadd.f32 %v3460_v12, %v3459_v3  ;;  %v3158_v50 = vsel %vm3139_vm6, %v5854_v0, -inf  ;;  %v3053_v16 = vsel %vm3034_vm7, %v5854_v0, -inf }
 0x8de   :  { %3159 = vmax.xlane.f32.xlu0 %v3158_v50 }
 0x8df   :  { %v5865_v13 = vadd.f32 %v3461_v11, %v5780_v63  ;;  %v3768_v63 = vpop.eup %3767 }
 0x8e1   :  { %v3161_v43 = vsel %vm3139_vm6, %v5865_v13, -inf  ;;  %v3056_v48 = vsel %vm3034_vm7, %v5865_v13, -inf }
 0x8e2   :  { %3162 = vmax.xlane.f32.xlu1 %v3161_v43 }
 0x8f3   :  { %3206 = vrot.lane.b32.xlu1 %v3764_v57, %s3987_s13 }
 0x8f4   :  { %3196 = vrot.lane.b32.xlu0 %v3766_v45, %s3987_s13 }
 0x8f8   :  { %3204 = vrot.lane.b32.xlu0 %v3768_v63, %s3987_s13 }
 0x917   :  { %3057 = vmax.xlane.f32.xlu1 %v3056_v48  ;;  %3054 = vmax.xlane.f32.xlu0 %v3053_v16 }
 0x925   :  { %v5880_v46 = vpop.permute.xlu1 %3198 }
 0x929   :  { %v5882_v2 = vpop.permute.xlu1 %3200 }
 0x92d   :  { %v3203_v4 = vpop.permute.xlu1 %3202 }
 0x967   :  { %v5886_v30 = vpop.xlane.xlu0 %3159 }
 0x968   :  { %v3170_v51 = vsub.f32 %v5854_v0, %v5886_v30 }
 0x96a   :  { %v3184_v34 = vmul.f32 1.442695, %v3170_v51  ;;  %v3223_v51 = vsel %vm3034_vm7, %v5880_v46, 0.0  ;;  %v3226_v46 = vsel %vm3034_vm7, %v5882_v2, 0.0 }
 0x96b   :  { %v5890_v28 = vpop.xlane.xlu1 %3162  ;;  %v3197_v24 = vpop.permute.xlu0 %3196 }
 0x96c   :  { %3769 = vpow2.f32 %v3184_v34  ;;  %v3171_v52 = vsub.f32 %v5865_v13, %v5890_v28  ;;  %v3229_v34 = vsel %vm3034_vm7, %v3203_v4, 0.0 }
 0x96e   :  { %v3186_v14 = vmul.f32 1.442695, %v3171_v52 }
 0x96f   :  { %v3207_v39 = vpop.permute.xlu1 %3206  ;;  %v3205_v3 = vpop.permute.xlu0 %3204 }
 0x970   :  { %3771 = vpow2.f32 %v3186_v14  ;;  %v3235_v52 = vsel %vm3034_vm7, %v3207_v39, 0.0  ;;  %v3232_v4 = vsel %vm3034_vm7, %v3205_v3, 0.0 }
 0x971   :  { %3773 = vpow2.f32 %v3067_v23  ;;  %v3220_v23 = vsel %vm3034_vm7, %v3197_v24, 0.0 }
 0x972   :  { %3775 = vpow2.f32 %v3071_v36 }
 0x973   :  { %3777 = vpow2.f32 %v3073_v62 }
 0x974   :  { %3779 = vpow2.f32 %v3069_v21 }
 0x975   :  { %3781 = vpow2.f32 %v3075_v25 }
 0x976   :  { %3783 = vpow2.f32 %v3077_v53 }
 0x979   :  { %v3770_v32 = vpop.eup %3769 }
 0x97a   :  { %3208 = vrot.lane.b32.xlu0 %v3770_v32, %s3987_s13 }
 0x97d   :  { %v3772_v38 = vpop.eup %3771 }
 0x97e   :  { %3210 = vrot.lane.b32.xlu1 %v3772_v38, %s3987_s13  ;;  %v3774_v54 = vpop.eup %3773 }
 0x97f   :  { %v3083_v18 = vsel %vm3034_vm7, %v3774_v54, 0.0  ;;  %v3776_v5 = vpop.eup %3775 }
 0x980   :  { %v3089_v12 = vsel %vm3034_vm7, %v3776_v5, 0.0  ;;  %v3778_v33 = vpop.eup %3777 }
 0x981   :  { %v3780_v11 = vpop.eup %3779  ;;  %v3092_v26 = vsel %vm3034_vm7, %v3778_v33, 0.0 }
 0x982   :  { %v3782_v43 = vpop.eup %3781  ;;  %v3086_v15 = vsel %vm3034_vm7, %v3780_v11, 0.0 }
 0x983   :  { %v3784_v57 = vpop.eup %3783  ;;  %v3095_v48 = vsel %vm3034_vm7, %v3782_v43, 0.0 }
 0x984   :  { %v3098_v16 = vsel %vm3034_vm7, %v3784_v57, 0.0 }
 0x999   :  { %3084 = vadd.xlane.f32.xlu0 %v3083_v18 }
 0x99d   :  { %3090 = vadd.xlane.f32.xlu0 %v3089_v12 }
 0x9a0   :  { %v5910_v50 = vpop.xlane.xlu1 %3057  ;;  %v5912_v61 = vpop.xlane.xlu0 %3054 }
 0x9a1   :  { %v3066_v59 = vsub.f32 %v5865_v13, %v5910_v50  ;;  %v3065_v29 = vsub.f32 %v5854_v0, %v5912_v61  ;;  %3093 = vadd.xlane.f32.xlu0 %v3092_v26 }
 0x9a2   :  { %3087 = vadd.xlane.f32.xlu1 %v3086_v15 }
 0x9a3   :  { %v3081_v45 = vmul.f32 1.442695, %v3066_v59  ;;  %v3079_v63 = vmul.f32 1.442695, %v3065_v29 }
 0x9a5   :  { %3785 = vpow2.f32 %v3081_v45  ;;  %3096 = vadd.xlane.f32.xlu0 %v3095_v48 }
 0x9a6   :  { %3787 = vpow2.f32 %v3079_v63  ;;  %3099 = vadd.xlane.f32.xlu1 %v3098_v16 }
 0x9aa   :  { %3224 = vadd.xlane.f32.xlu1 %v3223_v51 }
 0x9ae   :  { %3230 = vadd.xlane.f32.xlu1 %v3229_v34 }
 0x9b2   :  { %v3786_v14 = vpop.eup %3785  ;;  %3236 = vadd.xlane.f32.xlu1 %v3235_v52 }
 0x9b3   :  { %v3788_v32 = vpop.eup %3787  ;;  %v3104_v10 = vsel %vm3034_vm7, %v3786_v14, 0.0 }
 0x9b4   :  { %v3101_v38 = vsel %vm3034_vm7, %v3788_v32, 0.0 }
 0x9b5   :  { %3102 = vadd.xlane.f32.xlu0 %v3101_v38 }
 0x9b6   :  { %3105 = vadd.xlane.f32.xlu1 %v3104_v10 }
 0x9b9   :  { %3221 = vadd.xlane.f32.xlu0 %v3220_v23 }
 0x9bd   :  { %3227 = vadd.xlane.f32.xlu0 %v3226_v46 }
 0x9c1   :  { %3233 = vadd.xlane.f32.xlu0 %v3232_v4 }
 0x9ec   :  { %v3209_v42 = vpop.permute.xlu0 %3208 }
 0x9ed   :  { %v3238_v36 = vsel %vm3034_vm7, %v3209_v42, 0.0 }
 0x9ee   :  { %3239 = vadd.xlane.f32.xlu0 %v3238_v36 }
 0x9f0   :  { %v3211_v44 = vpop.permute.xlu1 %3210 }
 0x9f1   :  { %v3241_v8 = vsel %vm3034_vm7, %v3211_v44, 0.0 }
 0x9f2   :  { %3242 = vadd.xlane.f32.xlu1 %v3241_v8 }
 0xa22   :  { %v3085_v62 = vpop.xlane.xlu0 %3084 }
 0xa26   :  { %v3091_v47 = vpop.xlane.xlu0 %3090 }
 0xa2a   :  { %v3094_v22 = vpop.xlane.xlu0 %3093 }
 0xa2b   :  { %v3088_v21 = vpop.xlane.xlu1 %3087 }
 0xa2c   :  { %3789 = vlog2.f32 %v3088_v21 }
 0xa2d   :  { %3791 = vlog2.f32 %v3094_v22 }
 0xa2e   :  { %v3097_v54 = vpop.xlane.xlu0 %3096 }
 0xa2f   :  { %v3100_v25 = vpop.xlane.xlu1 %3099 }
 0xa33   :  { %v3225_v2 = vpop.xlane.xlu1 %3224 }
 0xa34   :  { %3793 = vlog2.f32 %v3225_v2 }
 0xa35   :  { %3795 = vlog2.f32 %v3100_v25 }
 0xa37   :  { %v3231_v53 = vpop.xlane.xlu1 %3230 }
 0xa38   :  { %3797 = vlog2.f32 %v3231_v53 }
 0xa39   :  { %v3790_v24 = vpop.eup %3789  ;;  %3799 = vlog2.f32 %v3085_v62 }
 0xa3a   :  { %v3792_v5 = vpop.eup %3791  ;;  %v3110_v39 = vmul.f32 0.6931472, %v3790_v24 }
 0xa3b   :  { %v3237_v18 = vpop.xlane.xlu1 %3236  ;;  %v3114_v33 = vmul.f32 0.6931472, %v3792_v5 }
 0xa3c   :  { %3801 = vlog2.f32 %v3237_v18  ;;  %v3124_v11 = vadd.f32 %v3110_v39, %v5828_v7 }
 0xa3d   :  { %3803 = vlog2.f32 %v3091_v47  ;;  %v3126_v57 = vadd.f32 %v3114_v33, %v5847_v56 }
 0xa3e   :  { %v5934_v3 = vpop.xlane.xlu0 %3102  ;;  %v3132_v45 = vsub.f32 %v5788_v17, %v3124_v11 }
 0xa41   :  { %v3794_v12 = vpop.eup %3793 }
 0xa42   :  { %v3247_v26 = vmul.f32 0.6931472, %v3794_v12  ;;  %v3222_v43 = vpop.xlane.xlu0 %3221  ;;  %v3796_v59 = vpop.eup %3795 }
 0xa43   :  { %3805 = vlog2.f32 %v3222_v43  ;;  %v3118_v63 = vmul.f32 0.6931472, %v3796_v59 }
 0xa44   :  { %v3261_v29 = vadd.f32 %v3247_v26, %v5834_v60  ;;  %3807 = vlog2.f32 %v3097_v54  ;;  %v3134_v60 = vsub.f32 %v5804_v58, %v3126_v57 }
 0xa45   :  { %v3798_v15 = vpop.eup %3797  ;;  %v3128_v56 = vadd.f32 %v3118_v63, %v5878_v9 }
 0xa46   :  { %v3269_v48 = vsub.f32 %v5788_v17, %v3261_v29  ;;  %v3251_v16 = vmul.f32 0.6931472, %v3798_v15  ;;  %v3228_v51 = vpop.xlane.xlu0 %3227  ;;  %v3800_v7 = vpop.eup %3799 }
 0xa47   :  { %3809 = vlog2.f32 %v3228_v51  ;;  %v3108_v10 = vmul.f32 0.6931472, %v3800_v7  ;;  %v3136_v4 = vsub.f32 %v5818_v37, %v3128_v56 }
 0xa48   :  { %v3277_v34 = vsel %vm3034_vm7, %v3132_v45, %v3269_v48  ;;  %v3263_v52 = vadd.f32 %v3251_v16, %v5840_v35 }
 0xa49   :  { %v3802_v14 = vpop.eup %3801  ;;  %3286 = vst.msk [vmem:[%s6023_s14 + $0x8] sm:$0xff] %vm3284_vm8, %v3277_v34 }
 0xa4a   :  { %v3271_v17 = vsub.f32 %v5804_v58, %v3263_v52  ;;  %v3255_v32 = vmul.f32 0.6931472, %v3802_v14  ;;  %v3234_v38 = vpop.xlane.xlu0 %3233  ;;  %v3804_v46 = vpop.eup %3803  ;;  %v3123_v58 = vadd.f32 %v3108_v10, %v5830_v40 }
 0xa4b   :  { %3811 = vlog2.f32 %v3234_v38  ;;  %v3112_v44 = vmul.f32 0.6931472, %v3804_v46 }
 0xa4c   :  { %v3279_v23 = vsel %vm3034_vm7, %v3134_v60, %v3271_v17  ;;  %v3265_v35 = vadd.f32 %v3255_v32, %v5851_v41  ;;  %v3131_v21 = vsub.f32 %v5783_v1, %v3123_v58  ;;  %3813 = vlog2.f32 %v5934_v3 }
 0xa4d   :  { %3288 = vst.msk [vmem:[%s6023_s14 + $0x18] sm:$0xff] %vm3284_vm8, %v3279_v23 }
 0xa4e   :  { %v3273_v9 = vsub.f32 %v5818_v37, %v3265_v35  ;;  %v3125_v37 = vadd.f32 %v3112_v44, %v5849_v27 }
 0xa50   :  { %v3806_v42 = vpop.eup %3805  ;;  %v3281_v36 = vsel %vm3034_vm7, %v3136_v4, %v3273_v9 }
 0xa51   :  { %3290 = vst.msk [vmem:[%s6023_s14 + $0x28] sm:$0xff] %vm3284_vm8, %v3281_v36  ;;  %v3245_v41 = vmul.f32 0.6931472, %v3806_v42  ;;  %v3808_v8 = vpop.eup %3807 }
 0xa52   :  { %v3116_v22 = vmul.f32 0.6931472, %v3808_v8 }
 0xa53   :  { %v3260_v62 = vadd.f32 %v3245_v41, %v5826_v19  ;;  %v3133_v19 = vsub.f32 %v5795_v49, %v3125_v37 }
 0xa54   :  { %v3810_v47 = vpop.eup %3809  ;;  %v3127_v24 = vadd.f32 %v3116_v22, %v5884_v31 }
 0xa55   :  { %v3268_v40 = vsub.f32 %v5783_v1, %v3260_v62  ;;  %v3249_v25 = vmul.f32 0.6931472, %v3810_v47 }
 0xa57   :  { %v3276_v2 = vsel %vm3034_vm7, %v3131_v21, %v3268_v40  ;;  %v3262_v53 = vadd.f32 %v3249_v25, %v5832_v20  ;;  %v3135_v20 = vsub.f32 %v5811_v55, %v3127_v24 }
 0xa58   :  { %v3812_v54 = vpop.eup %3811  ;;  %3285 = vst.msk [vmem:[%s6023_s14] sm:$0xff] %vm3284_vm8, %v3276_v2 }
 0xa59   :  { %v3270_v27 = vsub.f32 %v5795_v49, %v3262_v53  ;;  %v3253_v18 = vmul.f32 0.6931472, %v3812_v54  ;;  %v3106_v49 = vpop.xlane.xlu1 %3105  ;;  %v3814_v33 = vpop.eup %3813 }
 0xa5a   :  { %3815 = vlog2.f32 %v3106_v49  ;;  %v3120_v11 = vmul.f32 0.6931472, %v3814_v33 }
 0xa5b   :  { %v3278_v1 = vsel %vm3034_vm7, %v3133_v19, %v3270_v27  ;;  %v3264_v5 = vadd.f32 %v3253_v18, %v5862_v6 }
 0xa5c   :  { %3287 = vst.msk [vmem:[%s6023_s14 + $0x10] sm:$0xff] %vm3284_vm8, %v3278_v1 }
 0xa5d   :  { %v3272_v39 = vsub.f32 %v5811_v55, %v3264_v5  ;;  %v3129_v55 = vadd.f32 %v3120_v11, %v5912_v61 }
 0xa5f   :  { %v3280_v12 = vsel %vm3034_vm7, %v3135_v20, %v3272_v39  ;;  %v3137_v45 = vsub.f32 %v5854_v0, %v3129_v55 }
 0xa60   :  { %3289 = vst.msk [vmem:[%s6023_s14 + $0x20] sm:$0xff] %vm3284_vm8, %v3280_v12 }
 0xa67   :  { %v3816_v26 = vpop.eup %3815 }
 0xa68   :  { %v3122_v59 = vmul.f32 0.6931472, %v3816_v26 }
 0xa6a   :  { %v3130_v3 = vadd.f32 %v3122_v59, %v5910_v50 }
 0xa6c   :  { %v3138_v61 = vsub.f32 %v5865_v13, %v3130_v3 }
 0xa77   :  { %v3240_v6 = vpop.xlane.xlu0 %3239 }
 0xa78   :  { %3817 = vlog2.f32 %v3240_v6 }
 0xa7b   :  { %v3243_v31 = vpop.xlane.xlu1 %3242 }
 0xa7c   :  { %3819 = vlog2.f32 %v3243_v31 }
 0xa85   :  { %v3818_v43 = vpop.eup %3817 }
 0xa86   :  { %v3257_v29 = vmul.f32 0.6931472, %v3818_v43 }
 0xa88   :  { %v3266_v15 = vadd.f32 %v3257_v29, %v5886_v30 }
 0xa89   :  { %v3820_v57 = vpop.eup %3819 }
 0xa8a   :  { %v3274_v63 = vsub.f32 %v5854_v0, %v3266_v15  ;;  %v3259_v48 = vmul.f32 0.6931472, %v3820_v57 }
 0xa8c   :  { %v3282_v16 = vsel %vm3034_vm7, %v3137_v45, %v3274_v63  ;;  %v3267_v51 = vadd.f32 %v3259_v48, %v5890_v28 }
 0xa8d   :  { %3291 = vst.msk [vmem:[%s6023_s14 + $0x30] sm:$0xff] %vm3284_vm8, %v3282_v16 }
 0xa8e   :  { %v3275_v30 = vsub.f32 %v5865_v13, %v3267_v51 }
 0xa90   :  { %v3283_v7 = vsel %vm3034_vm7, %v3138_v61, %v3275_v30 }
 0xa91   :  { %3292 = vst.msk [vmem:[%s6023_s14 + $0x38] sm:$0xff] %vm3284_vm8, %v3283_v7 }
 0xa92   :  { %3297 = vsyncpa [#allocation5], 1 }
 0xa93   :  { %3298 = vsyncpa [#allocation7], 1 }

</bundles_post_ra>
